<compile_context>
chip_gen: v6e
topology: v6e:2x2x1
jax: 0.10.0
libtpu: 0.0.40
codegen_flags: <defaults>
</compile_context>

<pallas_src>
import numpy as np
import jax
import jax.numpy as jnp
from jax.experimental import pallas as pl
from jax.experimental.pallas import tpu as pltpu

BN_EPS = 1e-5


def _round_up(n, m):
    return ((n + m - 1) // m) * m


def _lane_multiple():
    """Pad matmul N dims to 256 on v6e/v7x (2x256^2 MXU), 128 elsewhere."""
    try:
        kind = jax.devices()[0].device_kind.lower()
    except Exception:
        return 128
    return 256 if any(t in kind for t in ("v6", "v7", "tpu7", "trillium")) else 128


# ------------------------------ Pallas kernel ------------------------------ #

def _vmem_spec():
    return pl.BlockSpec(memory_space=pltpu.MemorySpace.VMEM)


def _leaky_sinelu(v):
    # max(0.1 * (sin(x)^2 + x), sin(x)^2 + x)
    y = jnp.sin(v) ** 2 + v
    return jnp.maximum(0.1 * y, y)


def _mm(a, w_bf16):
    # bf16 x bf16 -> f32 accumulation on the MXU.  Casting the f32 lhs to bf16
    # matches what DEFAULT MXU precision did implicitly and avoids an implicit
    # bf16->f32 promote of the streamed weight tile.
    return jnp.dot(a.astype(jnp.bfloat16), w_bf16,
                   preferred_element_type=jnp.float32)


def make_decoder_kernel(n_modules):
    n_stages = 4 * n_modules

    def kernel(x_ref, wh_ref, b_ref, *rest):
        """Whole decoder forward on padded, flattened (B_pad, width) tiles.

        x_ref : (B_pad, R_pad)      padded latent input (VMEM, f32)
        wh_ref: (R_pad, P0)         composed fc@upsample weight (VMEM, bf16)
        b_ref : (n_stages, 1, PB)   BN bias rows (VMEM, f32)
        rest  : n_stages HBM Toeplitz refs (bf16, per-stage (pin, pout)),
                o_ref (B_pad, P_last) f32,
                wbuf (2, pin_max, pout_max) bf16 scratch, sem (2,) DMA sems
        """
        t_refs = rest[:n_stages]
        o_ref = rest[n_stages]
        wbuf = rest[n_stages + 1]
        sem = rest[n_stages + 2]

        copies = [None] * n_stages

        def start(s):
            pin, pout = t_refs[s].shape
            cp = pltpu.make_async_copy(
                t_refs[s], wbuf.at[s % 2, :pin, :pout], sem.at[s % 2])
            cp.start()
            copies[s] = cp

        # Prefetch stage-0 weights; the head matmul overlaps that DMA.
        start(0)
        # head: fc -> upsample (pre-composed) -> activation; the reshape is a
        # no-op on the flat (channel, length) layout.
        h = _leaky_sinelu(_mm(x_ref[...], wh_ref[...]))

        z = None
        for s in range(n_stages):                 # unrolled at trace time
            if s + 1 < n_stages:
                start(s + 1)                      # overlaps this stage's compute
            copies[s].wait()
            pin, pout = t_refs[s].shape
            w = wbuf[s % 2, :pin, :pout]
            bias = b_ref[s][:, :pout]             # plain row index, (1, pout)
            stage = s % 4
            if stage == 0:                        # convT k=3 + BN + act
                z = _leaky_sinelu(_mm(h, w) + bias)
            elif stage == 1:                      # convT k=5 + BN + act
                z = _leaky_sinelu(_mm(z, w) + bias)
            elif stage == 2:                      # convT k=7 + BN
                z = _mm(z, w) + bias
            else:                                 # 1x1 shortcut + BN, residual
                h = _leaky_sinelu(z + _mm(h, w) + bias)

        o_ref[...] = h

    return kernel


# ------------------------- parameter preprocessing -------------------------- #

def conv_taps_to_toeplitz(taps, L, transposed_conv):
    """taps: (Cout, Cin, k).  Returns T of shape (Cin*L, Cout*L) such that
    y_flat = x_flat @ T reproduces the (transpose-)conv with stride=1,
    padding=k//2 on length-L sequences (row-major (C, L) flattening)."""
    Cout, Cin, k = taps.shape
    p = k // 2
    s = jnp.arange(L)[:, None]          # input position
    t = jnp.arange(L)[None, :]          # output position
    j = (t - s + p) if transposed_conv else (s - t + p)
    valid = (j >= 0) & (j < k)
    jc = jnp.clip(j, 0, k - 1)
    w = taps[:, :, jc]                                   # (Cout, Cin, Ls, Lt)
    w = jnp.where(valid[None, None, :, :], w, 0.0)
    return jnp.transpose(w, (1, 2, 0, 3)).reshape(Cin * L, Cout * L)


def _bn_fold(gamma, beta, mean, var):
    scale = gamma / jnp.sqrt(var + BN_EPS)
    shift = beta - mean * scale
    return scale, shift


def preprocess_params(params, in_channels, out_channels, L, lane_mult):
    """One-time: compose head weights, build BN-scale-folded, per-stage-padded
    bf16 Toeplitz matrices and f32 bias rows."""
    C2 = in_channels * 2
    R = params["fc_w"].shape[1]
    Rp = _round_up(R, 128)                       # lane dim of x / sublane of wh
    P0 = _round_up(C2 * L, lane_mult)

    # head: x @ fc_w.T @ up_w.T -> single composed matrix (exact; one-time, so
    # HIGHEST precision here costs nothing at runtime), stored bf16.
    wh = jnp.dot(params["fc_w"].T, params["up_w"].T,
                 precision=jax.lax.Precision.HIGHEST)        # (R, C2*L)
    wh_p = jnp.zeros((Rp, P0), jnp.float32).at[:R, :C2 * L].set(wh)
    wh_p = wh_p.astype(jnp.bfloat16)

    ins = [C2, C2, in_channels]
    outs = [C2, in_channels, out_channels]
    t_mats, b_rows = [], []
    for m, cin, cout in zip(params["modules"], ins, outs):
        convs = [
            (jnp.transpose(m["wt1"], (1, 0, 2)), True,  m["bn1"], cin),
            (jnp.transpose(m["wt2"], (1, 0, 2)), True,  m["bn2"], cout),
            (jnp.transpose(m["wt3"], (1, 0, 2)), True,  m["bn3"], cout),
            (m["wsc"],                           False, m["bnsc"], cin),
        ]
        pout = _round_up(cout * L, lane_mult)
        for taps, transposed, bn, c_in in convs:
            pin = _round_up(c_in * L, lane_mult)
            T = conv_taps_to_toeplitz(taps, L, transposed)   # (c_in*L, cout*L)
            scale, shift = _bn_fold(**bn)
            T = T * jnp.repeat(scale, L)[None, :]            # fold BN scale
            Tp = jnp.zeros((pin, pout), jnp.float32).at[
                :c_in * L, :cout * L].set(T)
            t_mats.append(Tp.astype(jnp.bfloat16))
            b_rows.append(jnp.zeros((pout,), jnp.float32).at[:cout * L].set(
                jnp.repeat(shift, L)))

    PB = max(b.shape[0] for b in b_rows)
    b_stack = jnp.stack([
        jnp.zeros((1, PB), jnp.float32).at[0, :b.shape[0]].set(b)
        for b in b_rows])                                    # (12, 1, PB)
    return dict(wh=wh_p, t_list=t_mats, b=b_stack)


def build_decoder(params, in_channels, out_channels, representation_dim,
                  sequence_length):
    """Returns a jitted forward(x) -> (B, out_channels, L)."""
    L = sequence_length
    lane_mult = _lane_multiple()
    prep = preprocess_params(params, in_channels, out_channels, L, lane_mult)

    n_modules = len(params["modules"])
    n_stages = 4 * n_modules
    t_shapes = [t.shape for t in prep["t_list"]]
    pin_max = max(s[0] for s in t_shapes)
    pout_max = max(s[1] for s in t_shapes)
    P_last = t_shapes[-1][1]
    kernel = make_decoder_kernel(n_modules)

    def forward(prep_, x):
        B = x.shape[0]
        BP = max(8, _round_up(B, 8))             # sublane-aligned batch
        Rp = prep_["wh"].shape[0]
        xp = jnp.zeros((BP, Rp), jnp.float32).at[:B, :x.shape[1]].set(x)

        # Scoped-VMEM limit sized from the actual resident buffers + headroom
        # (defaults are only 16 MiB on v5e / 32 MiB on v6e/v7x).
        resident_bytes = (
            xp.size * 4                          # latent input
            + prep_["wh"].size * 2               # head weight (bf16)
            + prep_["b"].size * 4                # bias rows
            + 2 * pin_max * pout_max * 2         # double-buffered weight scratch
            + BP * P_last * 4                    # output tile
            + 4 * BP * pout_max * 4              # h/z activation temporaries
        )
        vmem_limit = int(min(max(2 * resident_bytes + (4 << 20), 16 << 20),
                             56 << 20))

        out_p = pl.pallas_call(
            kernel,
            out_shape=jax.ShapeDtypeStruct((BP, P_last), jnp.float32),
            in_specs=([_vmem_spec()] * 3
                      + [pl.BlockSpec(memory_space=pl.ANY)] * n_stages),
            out_specs=_vmem_spec(),
            scratch_shapes=[
                pltpu.VMEM((2, pin_max, pout_max), jnp.bfloat16),
                pltpu.SemaphoreType.DMA((2,)),
            ],
            compiler_params=pltpu.CompilerParams(vmem_limit_bytes=vmem_limit),
        )(xp, prep_["wh"], prep_["b"], *prep_["t_list"])
        return out_p[:B, :out_channels * L].reshape(B, out_channels, L)

    fwd = jax.jit(forward)
    return lambda x: fwd(prep, x)


# ------------------------------ initialization ------------------------------ #

def init_params(key, in_channels, out_channels, representation_dim,
                sequence_length):
    C2 = in_channels * 2
    keys = iter(jax.random.split(key, 64))

    def nrm(shape, scale=0.2):
        return scale * jax.random.normal(next(keys), shape, jnp.float32)

    params = {
        # PyTorch nn.Linear weight layout: (out_features, in_features), no bias
        "fc_w": nrm((C2, representation_dim)),
        "up_w": nrm((C2 * sequence_length, C2)),
        "modules": [],
    }
    ins = [C2, C2, in_channels]
    outs = [C2, in_channels, out_channels]
    for cin, cout in zip(ins, outs):
        m = {
            # ConvTranspose1d weight layout: (in_channels, out_channels, k)
            "wt1": nrm((cin, cout, 3)),
            "wt2": nrm((cout, cout, 5)),
            "wt3": nrm((cout, cout, 7)),
            # Conv1d weight layout: (out_channels, in_channels, k)
            "wsc": nrm((cout, cin, 1)),
        }
        for name in ("bn1", "bn2", "bn3", "bnsc"):
            m[name] = dict(
                gamma=1.0 + 0.1 * jax.random.normal(next(keys), (cout,),
                                                    jnp.float32),
                beta=0.1 * jax.random.normal(next(keys), (cout,), jnp.float32),
                mean=0.1 * jax.random.normal(next(keys), (cout,), jnp.float32),
                var=jax.random.uniform(next(keys), (cout,), jnp.float32,
                                       minval=0.5, maxval=1.5),
            )
        params["modules"].append(m)
    return params


# ------------------------- pure-numpy fp64 reference ------------------------ #

def _ref_act(v):
    y = np.sin(v) ** 2 + v
    return np.maximum(0.1 * y, y)


def _ref_bn(v, b):
    scale = b["gamma"] / np.sqrt(b["var"] + BN_EPS)
    shift = b["beta"] - b["mean"] * scale
    return v * scale[None, :, None] + shift[None, :, None]


def _ref_convT(x, Wt):  # x: (B, Cin, L), Wt: (Cin, Cout, k), stride=1, pad=k//2
    B, Cin, L = x.shape
    _, Cout, k = Wt.shape
    p = k // 2
    y = np.zeros((B, Cout, L), np.float64)
    for t in range(L):
        for s in range(L):
            j = t - s + p
            if 0 <= j < k:
                y[:, :, t] += x[:, :, s] @ Wt[:, :, j]
    return y


def _ref_conv1x1(x, W):  # W: (Cout, Cin, 1)
    return np.einsum("bcl,oc->bol", x, W[:, :, 0])


def ref_forward(params, x, in_channels, L):
    p = jax.tree.map(lambda a: np.asarray(a, np.float64), params)
    h = np.asarray(x, np.float64) @ p["fc_w"].T
    h = h @ p["up_w"].T
    h = h.reshape(x.shape[0], in_channels * 2, L)
    h = _ref_act(h)
    for m in p["modules"]:
        z = _ref_act(_ref_bn(_ref_convT(h, m["wt1"]), m["bn1"]))
        z = _ref_act(_ref_bn(_ref_convT(z, m["wt2"]), m["bn2"]))
        z = _ref_bn(_ref_convT(z, m["wt3"]), m["bn3"])
        sc = _ref_bn(_ref_conv1x1(h, m["wsc"]), m["bnsc"])
        h = _ref_act(z + sc)
    return h


# --------------------------------- main ------------------------------------- #

if __name__ == "__main__":
    in_channels = 4
    out_channels = 2
    representation_dim = 16
    sequence_length = 8
    batch = 2

    key = jax.random.PRNGKey(0)
    pkey, xkey = jax.random.split(key)
    params = init_params(pkey, in_channels, out_channels,
                         representation_dim, sequence_length)
    x = jax.random.normal(xkey, (batch, representation_dim), jnp.float32)

    forward = build_decoder(params, in_channels, out_channels,
                            representation_dim, sequence_length)
    out = jax.block_until_ready(forward(x))
    assert out.shape == (batch, out_channels, sequence_length)

    ref = ref_forward(params, np.asarray(x), in_channels, sequence_length)
    # Weights are stored and consumed as bf16 (single MXU pass) through 13
    # chained matmuls -> relaxed tolerance vs. the fp64 reference.
    np.testing.assert_allclose(np.asarray(out), ref, rtol=5e-2, atol=5e-2)

    print("KERNEL_OK")
</pallas_src>

<mosaic_0001>
module attributes {stable_mosaic.version = 11 : i64} {
  func.func @kernel(%arg0: memref<8x128xf32, #tpu.memory_space<vmem>>, %arg1: memref<128x128xbf16, #tpu.memory_space<vmem>>, %arg2: memref<12x1x128xf32, #tpu.memory_space<vmem>>, %arg3: memref<128x128xbf16, #tpu.memory_space<any>>, %arg4: memref<128x128xbf16, #tpu.memory_space<any>>, %arg5: memref<128x128xbf16, #tpu.memory_space<any>>, %arg6: memref<128x128xbf16, #tpu.memory_space<any>>, %arg7: memref<128x128xbf16, #tpu.memory_space<any>>, %arg8: memref<128x128xbf16, #tpu.memory_space<any>>, %arg9: memref<128x128xbf16, #tpu.memory_space<any>>, %arg10: memref<128x128xbf16, #tpu.memory_space<any>>, %arg11: memref<128x128xbf16, #tpu.memory_space<any>>, %arg12: memref<128x128xbf16, #tpu.memory_space<any>>, %arg13: memref<128x128xbf16, #tpu.memory_space<any>>, %arg14: memref<128x128xbf16, #tpu.memory_space<any>>, %arg15: memref<8x128xf32, #tpu.memory_space<vmem>>, %arg16: memref<2x128x128xbf16, #tpu.memory_space<vmem>>, %arg17: memref<2x!tpu.dma_semaphore, #tpu.memory_space<semaphore_mem>>) attributes {dimension_semantics = [], scalar_prefetch = 0 : i64, scratch_operands = 2 : i64, tpu.core_type = #tpu.core_type<tc>} {
    %c0_i32 = arith.constant 0 : i32
    %c0_i32_0 = arith.constant 0 : i32
    %c0_i32_1 = arith.constant 0 : i32
    %c0_i32_2 = arith.constant 0 : i32
    %0 = tpu.memref_slice %arg16[%c0_i32, %c0_i32_1, %c0_i32_2] : memref<2x128x128xbf16, #tpu.memory_space<vmem>> -> memref<1x128x128xbf16, #tpu.memory_space<vmem>>
    %1 = tpu.memref_squeeze %0 : memref<1x128x128xbf16, #tpu.memory_space<vmem>> -> memref<128x128xbf16, #tpu.memory_space<vmem>>
    %2 = tpu.memref_slice %arg17[%c0_i32_0] : memref<2x!tpu.dma_semaphore, #tpu.memory_space<semaphore_mem>> -> memref<1x!tpu.dma_semaphore, #tpu.memory_space<semaphore_mem>>
    %3 = tpu.memref_squeeze %2 : memref<1x!tpu.dma_semaphore, #tpu.memory_space<semaphore_mem>> -> memref<!tpu.dma_semaphore, #tpu.memory_space<semaphore_mem>>
    tpu.enqueue_dma source(%arg3 : memref<128x128xbf16, #tpu.memory_space<any>>) target(%1 : memref<128x128xbf16, #tpu.memory_space<vmem>>) target_semaphore(%3 : memref<!tpu.dma_semaphore, #tpu.memory_space<semaphore_mem>>)
    %c0 = arith.constant 0 : index
    %c0_3 = arith.constant 0 : index
    %4 = vector.load %arg0[%c0, %c0_3] : memref<8x128xf32, #tpu.memory_space<vmem>>, vector<8x128xf32>
    %c0_4 = arith.constant 0 : index
    %c0_5 = arith.constant 0 : index
    %5 = vector.load %arg1[%c0_4, %c0_5] : memref<128x128xbf16, #tpu.memory_space<vmem>>, vector<128x128xbf16>
    %6 = arith.truncf %4 : vector<8x128xf32> to vector<8x128xbf16>
    %cst = arith.constant dense<0.000000e+00> : vector<8x128xf32>
    %7 = tpu.matmul %6, %5, %cst {dimension_numbers = #tpu.dot_dimension_numbers<[1], [0], [0], [1], [0, 0, 1, 1], [], []>} : vector<8x128xbf16>, vector<128x128xbf16>, vector<8x128xf32> -> vector<8x128xf32>
    %8 = math.sin %7 : vector<8x128xf32>
    %9 = arith.mulf %8, %8 : vector<8x128xf32>
    %10 = arith.addf %9, %7 : vector<8x128xf32>
    %cst_6 = arith.constant 1.000000e-01 : f32
    %11 = vector.broadcast %cst_6 : f32 to vector<8x128xf32>
    %12 = arith.mulf %11, %10 : vector<8x128xf32>
    %13 = arith.maximumf %12, %10 : vector<8x128xf32>
    %c1_i32 = arith.constant 1 : i32
    %c1_i32_7 = arith.constant 1 : i32
    %c0_i32_8 = arith.constant 0 : i32
    %c0_i32_9 = arith.constant 0 : i32
    %14 = tpu.memref_slice %arg16[%c1_i32, %c0_i32_8, %c0_i32_9] : memref<2x128x128xbf16, #tpu.memory_space<vmem>> -> memref<1x128x128xbf16, #tpu.memory_space<vmem>>
    %15 = tpu.memref_squeeze %14 : memref<1x128x128xbf16, #tpu.memory_space<vmem>> -> memref<128x128xbf16, #tpu.memory_space<vmem>>
    %16 = tpu.memref_slice %arg17[%c1_i32_7] : memref<2x!tpu.dma_semaphore, #tpu.memory_space<semaphore_mem>> -> memref<1x!tpu.dma_semaphore, #tpu.memory_space<semaphore_mem>>
    %17 = tpu.memref_squeeze %16 : memref<1x!tpu.dma_semaphore, #tpu.memory_space<semaphore_mem>> -> memref<!tpu.dma_semaphore, #tpu.memory_space<semaphore_mem>>
    tpu.enqueue_dma source(%arg4 : memref<128x128xbf16, #tpu.memory_space<any>>) target(%15 : memref<128x128xbf16, #tpu.memory_space<vmem>>) target_semaphore(%17 : memref<!tpu.dma_semaphore, #tpu.memory_space<semaphore_mem>>)
    %c0_i32_10 = arith.constant 0 : i32
    %c0_i32_11 = arith.constant 0 : i32
    %c0_i32_12 = arith.constant 0 : i32
    %c0_i32_13 = arith.constant 0 : i32
    %18 = tpu.memref_slice %arg16[%c0_i32_10, %c0_i32_12, %c0_i32_13] : memref<2x128x128xbf16, #tpu.memory_space<vmem>> -> memref<1x128x128xbf16, #tpu.memory_space<vmem>>
    %19 = tpu.memref_squeeze %18 : memref<1x128x128xbf16, #tpu.memory_space<vmem>> -> memref<128x128xbf16, #tpu.memory_space<vmem>>
    %20 = tpu.memref_slice %arg17[%c0_i32_11] : memref<2x!tpu.dma_semaphore, #tpu.memory_space<semaphore_mem>> -> memref<1x!tpu.dma_semaphore, #tpu.memory_space<semaphore_mem>>
    %21 = tpu.memref_squeeze %20 : memref<1x!tpu.dma_semaphore, #tpu.memory_space<semaphore_mem>> -> memref<!tpu.dma_semaphore, #tpu.memory_space<semaphore_mem>>
    tpu.wait_dma2 semaphore(%21 : memref<!tpu.dma_semaphore, #tpu.memory_space<semaphore_mem>>) src(%arg3 : memref<128x128xbf16, #tpu.memory_space<any>>) dst(%19 : memref<128x128xbf16, #tpu.memory_space<vmem>>)
    %c0_14 = arith.constant 0 : index
    %c0_15 = arith.constant 0 : index
    %c0_16 = arith.constant 0 : index
    %22 = vector.load %arg16[%c0_14, %c0_15, %c0_16] : memref<2x128x128xbf16, #tpu.memory_space<vmem>>, vector<1x128x128xbf16>
    %23 = vector.shape_cast %22 : vector<1x128x128xbf16> to vector<128x128xbf16>
    %c0_17 = arith.constant 0 : index
    %c0_18 = arith.constant 0 : index
    %c0_19 = arith.constant 0 : index
    %24 = vector.load %arg2[%c0_17, %c0_18, %c0_19] : memref<12x1x128xf32, #tpu.memory_space<vmem>>, vector<1x1x128xf32>
    %25 = vector.shape_cast %24 : vector<1x1x128xf32> to vector<1x128xf32>
    %26 = arith.truncf %13 : vector<8x128xf32> to vector<8x128xbf16>
    %cst_20 = arith.constant dense<0.000000e+00> : vector<8x128xf32>
    %27 = tpu.matmul %26, %23, %cst_20 {dimension_numbers = #tpu.dot_dimension_numbers<[1], [0], [0], [1], [0, 0, 1, 1], [], []>} : vector<8x128xbf16>, vector<128x128xbf16>, vector<8x128xf32> -> vector<8x128xf32>
    %28 = vector.broadcast %25 : vector<1x128xf32> to vector<8x128xf32>
    %29 = arith.addf %27, %28 : vector<8x128xf32>
    %30 = math.sin %29 : vector<8x128xf32>
    %31 = arith.mulf %30, %30 : vector<8x128xf32>
    %32 = arith.addf %31, %29 : vector<8x128xf32>
    %cst_21 = arith.constant 1.000000e-01 : f32
    %33 = vector.broadcast %cst_21 : f32 to vector<8x128xf32>
    %34 = arith.mulf %33, %32 : vector<8x128xf32>
    %35 = arith.maximumf %34, %32 : vector<8x128xf32>
    %c0_i32_22 = arith.constant 0 : i32
    %c0_i32_23 = arith.constant 0 : i32
    %c0_i32_24 = arith.constant 0 : i32
    %c0_i32_25 = arith.constant 0 : i32
    %36 = tpu.memref_slice %arg16[%c0_i32_22, %c0_i32_24, %c0_i32_25] : memref<2x128x128xbf16, #tpu.memory_space<vmem>> -> memref<1x128x128xbf16, #tpu.memory_space<vmem>>
    %37 = tpu.memref_squeeze %36 : memref<1x128x128xbf16, #tpu.memory_space<vmem>> -> memref<128x128xbf16, #tpu.memory_space<vmem>>
    %38 = tpu.memref_slice %arg17[%c0_i32_23] : memref<2x!tpu.dma_semaphore, #tpu.memory_space<semaphore_mem>> -> memref<1x!tpu.dma_semaphore, #tpu.memory_space<semaphore_mem>>
    %39 = tpu.memref_squeeze %38 : memref<1x!tpu.dma_semaphore, #tpu.memory_space<semaphore_mem>> -> memref<!tpu.dma_semaphore, #tpu.memory_space<semaphore_mem>>
    tpu.enqueue_dma source(%arg5 : memref<128x128xbf16, #tpu.memory_space<any>>) target(%37 : memref<128x128xbf16, #tpu.memory_space<vmem>>) target_semaphore(%39 : memref<!tpu.dma_semaphore, #tpu.memory_space<semaphore_mem>>)
    %c1_i32_26 = arith.constant 1 : i32
    %c1_i32_27 = arith.constant 1 : i32
    %c0_i32_28 = arith.constant 0 : i32
    %c0_i32_29 = arith.constant 0 : i32
    %40 = tpu.memref_slice %arg16[%c1_i32_26, %c0_i32_28, %c0_i32_29] : memref<2x128x128xbf16, #tpu.memory_space<vmem>> -> memref<1x128x128xbf16, #tpu.memory_space<vmem>>
    %41 = tpu.memref_squeeze %40 : memref<1x128x128xbf16, #tpu.memory_space<vmem>> -> memref<128x128xbf16, #tpu.memory_space<vmem>>
    %42 = tpu.memref_slice %arg17[%c1_i32_27] : memref<2x!tpu.dma_semaphore, #tpu.memory_space<semaphore_mem>> -> memref<1x!tpu.dma_semaphore, #tpu.memory_space<semaphore_mem>>
    %43 = tpu.memref_squeeze %42 : memref<1x!tpu.dma_semaphore, #tpu.memory_space<semaphore_mem>> -> memref<!tpu.dma_semaphore, #tpu.memory_space<semaphore_mem>>
    tpu.wait_dma2 semaphore(%43 : memref<!tpu.dma_semaphore, #tpu.memory_space<semaphore_mem>>) src(%arg4 : memref<128x128xbf16, #tpu.memory_space<any>>) dst(%41 : memref<128x128xbf16, #tpu.memory_space<vmem>>)
    %c1 = arith.constant 1 : index
    %c0_30 = arith.constant 0 : index
    %c0_31 = arith.constant 0 : index
    %44 = vector.load %arg16[%c1, %c0_30, %c0_31] : memref<2x128x128xbf16, #tpu.memory_space<vmem>>, vector<1x128x128xbf16>
    %45 = vector.shape_cast %44 : vector<1x128x128xbf16> to vector<128x128xbf16>
    %c1_32 = arith.constant 1 : index
    %c0_33 = arith.constant 0 : index
    %c0_34 = arith.constant 0 : index
    %46 = vector.load %arg2[%c1_32, %c0_33, %c0_34] : memref<12x1x128xf32, #tpu.memory_space<vmem>>, vector<1x1x128xf32>
    %47 = vector.shape_cast %46 : vector<1x1x128xf32> to vector<1x128xf32>
    %48 = arith.truncf %35 : vector<8x128xf32> to vector<8x128xbf16>
    %cst_35 = arith.constant dense<0.000000e+00> : vector<8x128xf32>
    %49 = tpu.matmul %48, %45, %cst_35 {dimension_numbers = #tpu.dot_dimension_numbers<[1], [0], [0], [1], [0, 0, 1, 1], [], []>} : vector<8x128xbf16>, vector<128x128xbf16>, vector<8x128xf32> -> vector<8x128xf32>
    %50 = vector.broadcast %47 : vector<1x128xf32> to vector<8x128xf32>
    %51 = arith.addf %49, %50 : vector<8x128xf32>
    %52 = math.sin %51 : vector<8x128xf32>
    %53 = arith.mulf %52, %52 : vector<8x128xf32>
    %54 = arith.addf %53, %51 : vector<8x128xf32>
    %cst_36 = arith.constant 1.000000e-01 : f32
    %55 = vector.broadcast %cst_36 : f32 to vector<8x128xf32>
    %56 = arith.mulf %55, %54 : vector<8x128xf32>
    %57 = arith.maximumf %56, %54 : vector<8x128xf32>
    %c1_i32_37 = arith.constant 1 : i32
    %c1_i32_38 = arith.constant 1 : i32
    %c0_i32_39 = arith.constant 0 : i32
    %c0_i32_40 = arith.constant 0 : i32
    %58 = tpu.memref_slice %arg16[%c1_i32_37, %c0_i32_39, %c0_i32_40] : memref<2x128x128xbf16, #tpu.memory_space<vmem>> -> memref<1x128x128xbf16, #tpu.memory_space<vmem>>
    %59 = tpu.memref_squeeze %58 : memref<1x128x128xbf16, #tpu.memory_space<vmem>> -> memref<128x128xbf16, #tpu.memory_space<vmem>>
    %60 = tpu.memref_slice %arg17[%c1_i32_38] : memref<2x!tpu.dma_semaphore, #tpu.memory_space<semaphore_mem>> -> memref<1x!tpu.dma_semaphore, #tpu.memory_space<semaphore_mem>>
    %61 = tpu.memref_squeeze %60 : memref<1x!tpu.dma_semaphore, #tpu.memory_space<semaphore_mem>> -> memref<!tpu.dma_semaphore, #tpu.memory_space<semaphore_mem>>
    tpu.enqueue_dma source(%arg6 : memref<128x128xbf16, #tpu.memory_space<any>>) target(%59 : memref<128x128xbf16, #tpu.memory_space<vmem>>) target_semaphore(%61 : memref<!tpu.dma_semaphore, #tpu.memory_space<semaphore_mem>>)
    %c0_i32_41 = arith.constant 0 : i32
    %c0_i32_42 = arith.constant 0 : i32
    %c0_i32_43 = arith.constant 0 : i32
    %c0_i32_44 = arith.constant 0 : i32
    %62 = tpu.memref_slice %arg16[%c0_i32_41, %c0_i32_43, %c0_i32_44] : memref<2x128x128xbf16, #tpu.memory_space<vmem>> -> memref<1x128x128xbf16, #tpu.memory_space<vmem>>
    %63 = tpu.memref_squeeze %62 : memref<1x128x128xbf16, #tpu.memory_space<vmem>> -> memref<128x128xbf16, #tpu.memory_space<vmem>>
    %64 = tpu.memref_slice %arg17[%c0_i32_42] : memref<2x!tpu.dma_semaphore, #tpu.memory_space<semaphore_mem>> -> memref<1x!tpu.dma_semaphore, #tpu.memory_space<semaphore_mem>>
    %65 = tpu.memref_squeeze %64 : memref<1x!tpu.dma_semaphore, #tpu.memory_space<semaphore_mem>> -> memref<!tpu.dma_semaphore, #tpu.memory_space<semaphore_mem>>
    tpu.wait_dma2 semaphore(%65 : memref<!tpu.dma_semaphore, #tpu.memory_space<semaphore_mem>>) src(%arg5 : memref<128x128xbf16, #tpu.memory_space<any>>) dst(%63 : memref<128x128xbf16, #tpu.memory_space<vmem>>)
    %c0_45 = arith.constant 0 : index
    %c0_46 = arith.constant 0 : index
    %c0_47 = arith.constant 0 : index
    %66 = vector.load %arg16[%c0_45, %c0_46, %c0_47] : memref<2x128x128xbf16, #tpu.memory_space<vmem>>, vector<1x128x128xbf16>
    %67 = vector.shape_cast %66 : vector<1x128x128xbf16> to vector<128x128xbf16>
    %c2 = arith.constant 2 : index
    %c0_48 = arith.constant 0 : index
    %c0_49 = arith.constant 0 : index
    %68 = vector.load %arg2[%c2, %c0_48, %c0_49] : memref<12x1x128xf32, #tpu.memory_space<vmem>>, vector<1x1x128xf32>
    %69 = vector.shape_cast %68 : vector<1x1x128xf32> to vector<1x128xf32>
    %70 = arith.truncf %57 : vector<8x128xf32> to vector<8x128xbf16>
    %cst_50 = arith.constant dense<0.000000e+00> : vector<8x128xf32>
    %71 = tpu.matmul %70, %67, %cst_50 {dimension_numbers = #tpu.dot_dimension_numbers<[1], [0], [0], [1], [0, 0, 1, 1], [], []>} : vector<8x128xbf16>, vector<128x128xbf16>, vector<8x128xf32> -> vector<8x128xf32>
    %72 = vector.broadcast %69 : vector<1x128xf32> to vector<8x128xf32>
    %73 = arith.addf %71, %72 : vector<8x128xf32>
    %c0_i32_51 = arith.constant 0 : i32
    %c0_i32_52 = arith.constant 0 : i32
    %c0_i32_53 = arith.constant 0 : i32
    %c0_i32_54 = arith.constant 0 : i32
    %74 = tpu.memref_slice %arg16[%c0_i32_51, %c0_i32_53, %c0_i32_54] : memref<2x128x128xbf16, #tpu.memory_space<vmem>> -> memref<1x128x128xbf16, #tpu.memory_space<vmem>>
    %75 = tpu.memref_squeeze %74 : memref<1x128x128xbf16, #tpu.memory_space<vmem>> -> memref<128x128xbf16, #tpu.memory_space<vmem>>
    %76 = tpu.memref_slice %arg17[%c0_i32_52] : memref<2x!tpu.dma_semaphore, #tpu.memory_space<semaphore_mem>> -> memref<1x!tpu.dma_semaphore, #tpu.memory_space<semaphore_mem>>
    %77 = tpu.memref_squeeze %76 : memref<1x!tpu.dma_semaphore, #tpu.memory_space<semaphore_mem>> -> memref<!tpu.dma_semaphore, #tpu.memory_space<semaphore_mem>>
    tpu.enqueue_dma source(%arg7 : memref<128x128xbf16, #tpu.memory_space<any>>) target(%75 : memref<128x128xbf16, #tpu.memory_space<vmem>>) target_semaphore(%77 : memref<!tpu.dma_semaphore, #tpu.memory_space<semaphore_mem>>)
    %c1_i32_55 = arith.constant 1 : i32
    %c1_i32_56 = arith.constant 1 : i32
    %c0_i32_57 = arith.constant 0 : i32
    %c0_i32_58 = arith.constant 0 : i32
    %78 = tpu.memref_slice %arg16[%c1_i32_55, %c0_i32_57, %c0_i32_58] : memref<2x128x128xbf16, #tpu.memory_space<vmem>> -> memref<1x128x128xbf16, #tpu.memory_space<vmem>>
    %79 = tpu.memref_squeeze %78 : memref<1x128x128xbf16, #tpu.memory_space<vmem>> -> memref<128x128xbf16, #tpu.memory_space<vmem>>
    %80 = tpu.memref_slice %arg17[%c1_i32_56] : memref<2x!tpu.dma_semaphore, #tpu.memory_space<semaphore_mem>> -> memref<1x!tpu.dma_semaphore, #tpu.memory_space<semaphore_mem>>
    %81 = tpu.memref_squeeze %80 : memref<1x!tpu.dma_semaphore, #tpu.memory_space<semaphore_mem>> -> memref<!tpu.dma_semaphore, #tpu.memory_space<semaphore_mem>>
    tpu.wait_dma2 semaphore(%81 : memref<!tpu.dma_semaphore, #tpu.memory_space<semaphore_mem>>) src(%arg6 : memref<128x128xbf16, #tpu.memory_space<any>>) dst(%79 : memref<128x128xbf16, #tpu.memory_space<vmem>>)
    %c1_59 = arith.constant 1 : index
    %c0_60 = arith.constant 0 : index
    %c0_61 = arith.constant 0 : index
    %82 = vector.load %arg16[%c1_59, %c0_60, %c0_61] : memref<2x128x128xbf16, #tpu.memory_space<vmem>>, vector<1x128x128xbf16>
    %83 = vector.shape_cast %82 : vector<1x128x128xbf16> to vector<128x128xbf16>
    %c3 = arith.constant 3 : index
    %c0_62 = arith.constant 0 : index
    %c0_63 = arith.constant 0 : index
    %84 = vector.load %arg2[%c3, %c0_62, %c0_63] : memref<12x1x128xf32, #tpu.memory_space<vmem>>, vector<1x1x128xf32>
    %85 = vector.shape_cast %84 : vector<1x1x128xf32> to vector<1x128xf32>
    %86 = arith.truncf %13 : vector<8x128xf32> to vector<8x128xbf16>
    %cst_64 = arith.constant dense<0.000000e+00> : vector<8x128xf32>
    %87 = tpu.matmul %86, %83, %cst_64 {dimension_numbers = #tpu.dot_dimension_numbers<[1], [0], [0], [1], [0, 0, 1, 1], [], []>} : vector<8x128xbf16>, vector<128x128xbf16>, vector<8x128xf32> -> vector<8x128xf32>
    %88 = arith.addf %73, %87 : vector<8x128xf32>
    %89 = vector.broadcast %85 : vector<1x128xf32> to vector<8x128xf32>
    %90 = arith.addf %88, %89 : vector<8x128xf32>
    %91 = math.sin %90 : vector<8x128xf32>
    %92 = arith.mulf %91, %91 : vector<8x128xf32>
    %93 = arith.addf %92, %90 : vector<8x128xf32>
    %cst_65 = arith.constant 1.000000e-01 : f32
    %94 = vector.broadcast %cst_65 : f32 to vector<8x128xf32>
    %95 = arith.mulf %94, %93 : vector<8x128xf32>
    %96 = arith.maximumf %95, %93 : vector<8x128xf32>
    %c1_i32_66 = arith.constant 1 : i32
    %c1_i32_67 = arith.constant 1 : i32
    %c0_i32_68 = arith.constant 0 : i32
    %c0_i32_69 = arith.constant 0 : i32
    %97 = tpu.memref_slice %arg16[%c1_i32_66, %c0_i32_68, %c0_i32_69] : memref<2x128x128xbf16, #tpu.memory_space<vmem>> -> memref<1x128x128xbf16, #tpu.memory_space<vmem>>
    %98 = tpu.memref_squeeze %97 : memref<1x128x128xbf16, #tpu.memory_space<vmem>> -> memref<128x128xbf16, #tpu.memory_space<vmem>>
    %99 = tpu.memref_slice %arg17[%c1_i32_67] : memref<2x!tpu.dma_semaphore, #tpu.memory_space<semaphore_mem>> -> memref<1x!tpu.dma_semaphore, #tpu.memory_space<semaphore_mem>>
    %100 = tpu.memref_squeeze %99 : memref<1x!tpu.dma_semaphore, #tpu.memory_space<semaphore_mem>> -> memref<!tpu.dma_semaphore, #tpu.memory_space<semaphore_mem>>
    tpu.enqueue_dma source(%arg8 : memref<128x128xbf16, #tpu.memory_space<any>>) target(%98 : memref<128x128xbf16, #tpu.memory_space<vmem>>) target_semaphore(%100 : memref<!tpu.dma_semaphore, #tpu.memory_space<semaphore_mem>>)
    %c0_i32_70 = arith.constant 0 : i32
    %c0_i32_71 = arith.constant 0 : i32
    %c0_i32_72 = arith.constant 0 : i32
    %c0_i32_73 = arith.constant 0 : i32
    %101 = tpu.memref_slice %arg16[%c0_i32_70, %c0_i32_72, %c0_i32_73] : memref<2x128x128xbf16, #tpu.memory_space<vmem>> -> memref<1x128x128xbf16, #tpu.memory_space<vmem>>
    %102 = tpu.memref_squeeze %101 : memref<1x128x128xbf16, #tpu.memory_space<vmem>> -> memref<128x128xbf16, #tpu.memory_space<vmem>>
    %103 = tpu.memref_slice %arg17[%c0_i32_71] : memref<2x!tpu.dma_semaphore, #tpu.memory_space<semaphore_mem>> -> memref<1x!tpu.dma_semaphore, #tpu.memory_space<semaphore_mem>>
    %104 = tpu.memref_squeeze %103 : memref<1x!tpu.dma_semaphore, #tpu.memory_space<semaphore_mem>> -> memref<!tpu.dma_semaphore, #tpu.memory_space<semaphore_mem>>
    tpu.wait_dma2 semaphore(%104 : memref<!tpu.dma_semaphore, #tpu.memory_space<semaphore_mem>>) src(%arg7 : memref<128x128xbf16, #tpu.memory_space<any>>) dst(%102 : memref<128x128xbf16, #tpu.memory_space<vmem>>)
    %c0_74 = arith.constant 0 : index
    %c0_75 = arith.constant 0 : index
    %c0_76 = arith.constant 0 : index
    %105 = vector.load %arg16[%c0_74, %c0_75, %c0_76] : memref<2x128x128xbf16, #tpu.memory_space<vmem>>, vector<1x128x128xbf16>
    %106 = vector.shape_cast %105 : vector<1x128x128xbf16> to vector<128x128xbf16>
    %c4 = arith.constant 4 : index
    %c0_77 = arith.constant 0 : index
    %c0_78 = arith.constant 0 : index
    %107 = vector.load %arg2[%c4, %c0_77, %c0_78] : memref<12x1x128xf32, #tpu.memory_space<vmem>>, vector<1x1x128xf32>
    %108 = vector.shape_cast %107 : vector<1x1x128xf32> to vector<1x128xf32>
    %109 = arith.truncf %96 : vector<8x128xf32> to vector<8x128xbf16>
    %cst_79 = arith.constant dense<0.000000e+00> : vector<8x128xf32>
    %110 = tpu.matmul %109, %106, %cst_79 {dimension_numbers = #tpu.dot_dimension_numbers<[1], [0], [0], [1], [0, 0, 1, 1], [], []>} : vector<8x128xbf16>, vector<128x128xbf16>, vector<8x128xf32> -> vector<8x128xf32>
    %111 = vector.broadcast %108 : vector<1x128xf32> to vector<8x128xf32>
    %112 = arith.addf %110, %111 : vector<8x128xf32>
    %113 = math.sin %112 : vector<8x128xf32>
    %114 = arith.mulf %113, %113 : vector<8x128xf32>
    %115 = arith.addf %114, %112 : vector<8x128xf32>
    %cst_80 = arith.constant 1.000000e-01 : f32
    %116 = vector.broadcast %cst_80 : f32 to vector<8x128xf32>
    %117 = arith.mulf %116, %115 : vector<8x128xf32>
    %118 = arith.maximumf %117, %115 : vector<8x128xf32>
    %c0_i32_81 = arith.constant 0 : i32
    %c0_i32_82 = arith.constant 0 : i32
    %c0_i32_83 = arith.constant 0 : i32
    %c0_i32_84 = arith.constant 0 : i32
    %119 = tpu.memref_slice %arg16[%c0_i32_81, %c0_i32_83, %c0_i32_84] : memref<2x128x128xbf16, #tpu.memory_space<vmem>> -> memref<1x128x128xbf16, #tpu.memory_space<vmem>>
    %120 = tpu.memref_squeeze %119 : memref<1x128x128xbf16, #tpu.memory_space<vmem>> -> memref<128x128xbf16, #tpu.memory_space<vmem>>
    %121 = tpu.memref_slice %arg17[%c0_i32_82] : memref<2x!tpu.dma_semaphore, #tpu.memory_space<semaphore_mem>> -> memref<1x!tpu.dma_semaphore, #tpu.memory_space<semaphore_mem>>
    %122 = tpu.memref_squeeze %121 : memref<1x!tpu.dma_semaphore, #tpu.memory_space<semaphore_mem>> -> memref<!tpu.dma_semaphore, #tpu.memory_space<semaphore_mem>>
    tpu.enqueue_dma source(%arg9 : memref<128x128xbf16, #tpu.memory_space<any>>) target(%120 : memref<128x128xbf16, #tpu.memory_space<vmem>>) target_semaphore(%122 : memref<!tpu.dma_semaphore, #tpu.memory_space<semaphore_mem>>)
    %c1_i32_85 = arith.constant 1 : i32
    %c1_i32_86 = arith.constant 1 : i32
    %c0_i32_87 = arith.constant 0 : i32
    %c0_i32_88 = arith.constant 0 : i32
    %123 = tpu.memref_slice %arg16[%c1_i32_85, %c0_i32_87, %c0_i32_88] : memref<2x128x128xbf16, #tpu.memory_space<vmem>> -> memref<1x128x128xbf16, #tpu.memory_space<vmem>>
    %124 = tpu.memref_squeeze %123 : memref<1x128x128xbf16, #tpu.memory_space<vmem>> -> memref<128x128xbf16, #tpu.memory_space<vmem>>
    %125 = tpu.memref_slice %arg17[%c1_i32_86] : memref<2x!tpu.dma_semaphore, #tpu.memory_space<semaphore_mem>> -> memref<1x!tpu.dma_semaphore, #tpu.memory_space<semaphore_mem>>
    %126 = tpu.memref_squeeze %125 : memref<1x!tpu.dma_semaphore, #tpu.memory_space<semaphore_mem>> -> memref<!tpu.dma_semaphore, #tpu.memory_space<semaphore_mem>>
    tpu.wait_dma2 semaphore(%126 : memref<!tpu.dma_semaphore, #tpu.memory_space<semaphore_mem>>) src(%arg8 : memref<128x128xbf16, #tpu.memory_space<any>>) dst(%124 : memref<128x128xbf16, #tpu.memory_space<vmem>>)
    %c1_89 = arith.constant 1 : index
    %c0_90 = arith.constant 0 : index
    %c0_91 = arith.constant 0 : index
    %127 = vector.load %arg16[%c1_89, %c0_90, %c0_91] : memref<2x128x128xbf16, #tpu.memory_space<vmem>>, vector<1x128x128xbf16>
    %128 = vector.shape_cast %127 : vector<1x128x128xbf16> to vector<128x128xbf16>
    %c5 = arith.constant 5 : index
    %c0_92 = arith.constant 0 : index
    %c0_93 = arith.constant 0 : index
    %129 = vector.load %arg2[%c5, %c0_92, %c0_93] : memref<12x1x128xf32, #tpu.memory_space<vmem>>, vector<1x1x128xf32>
    %130 = vector.shape_cast %129 : vector<1x1x128xf32> to vector<1x128xf32>
    %131 = arith.truncf %118 : vector<8x128xf32> to vector<8x128xbf16>
    %cst_94 = arith.constant dense<0.000000e+00> : vector<8x128xf32>
    %132 = tpu.matmul %131, %128, %cst_94 {dimension_numbers = #tpu.dot_dimension_numbers<[1], [0], [0], [1], [0, 0, 1, 1], [], []>} : vector<8x128xbf16>, vector<128x128xbf16>, vector<8x128xf32> -> vector<8x128xf32>
    %133 = vector.broadcast %130 : vector<1x128xf32> to vector<8x128xf32>
    %134 = arith.addf %132, %133 : vector<8x128xf32>
    %135 = math.sin %134 : vector<8x128xf32>
    %136 = arith.mulf %135, %135 : vector<8x128xf32>
    %137 = arith.addf %136, %134 : vector<8x128xf32>
    %cst_95 = arith.constant 1.000000e-01 : f32
    %138 = vector.broadcast %cst_95 : f32 to vector<8x128xf32>
    %139 = arith.mulf %138, %137 : vector<8x128xf32>
    %140 = arith.maximumf %139, %137 : vector<8x128xf32>
    %c1_i32_96 = arith.constant 1 : i32
    %c1_i32_97 = arith.constant 1 : i32
    %c0_i32_98 = arith.constant 0 : i32
    %c0_i32_99 = arith.constant 0 : i32
    %141 = tpu.memref_slice %arg16[%c1_i32_96, %c0_i32_98, %c0_i32_99] : memref<2x128x128xbf16, #tpu.memory_space<vmem>> -> memref<1x128x128xbf16, #tpu.memory_space<vmem>>
    %142 = tpu.memref_squeeze %141 : memref<1x128x128xbf16, #tpu.memory_space<vmem>> -> memref<128x128xbf16, #tpu.memory_space<vmem>>
    %143 = tpu.memref_slice %arg17[%c1_i32_97] : memref<2x!tpu.dma_semaphore, #tpu.memory_space<semaphore_mem>> -> memref<1x!tpu.dma_semaphore, #tpu.memory_space<semaphore_mem>>
    %144 = tpu.memref_squeeze %143 : memref<1x!tpu.dma_semaphore, #tpu.memory_space<semaphore_mem>> -> memref<!tpu.dma_semaphore, #tpu.memory_space<semaphore_mem>>
    tpu.enqueue_dma source(%arg10 : memref<128x128xbf16, #tpu.memory_space<any>>) target(%142 : memref<128x128xbf16, #tpu.memory_space<vmem>>) target_semaphore(%144 : memref<!tpu.dma_semaphore, #tpu.memory_space<semaphore_mem>>)
    %c0_i32_100 = arith.constant 0 : i32
    %c0_i32_101 = arith.constant 0 : i32
    %c0_i32_102 = arith.constant 0 : i32
    %c0_i32_103 = arith.constant 0 : i32
    %145 = tpu.memref_slice %arg16[%c0_i32_100, %c0_i32_102, %c0_i32_103] : memref<2x128x128xbf16, #tpu.memory_space<vmem>> -> memref<1x128x128xbf16, #tpu.memory_space<vmem>>
    %146 = tpu.memref_squeeze %145 : memref<1x128x128xbf16, #tpu.memory_space<vmem>> -> memref<128x128xbf16, #tpu.memory_space<vmem>>
    %147 = tpu.memref_slice %arg17[%c0_i32_101] : memref<2x!tpu.dma_semaphore, #tpu.memory_space<semaphore_mem>> -> memref<1x!tpu.dma_semaphore, #tpu.memory_space<semaphore_mem>>
    %148 = tpu.memref_squeeze %147 : memref<1x!tpu.dma_semaphore, #tpu.memory_space<semaphore_mem>> -> memref<!tpu.dma_semaphore, #tpu.memory_space<semaphore_mem>>
    tpu.wait_dma2 semaphore(%148 : memref<!tpu.dma_semaphore, #tpu.memory_space<semaphore_mem>>) src(%arg9 : memref<128x128xbf16, #tpu.memory_space<any>>) dst(%146 : memref<128x128xbf16, #tpu.memory_space<vmem>>)
    %c0_104 = arith.constant 0 : index
    %c0_105 = arith.constant 0 : index
    %c0_106 = arith.constant 0 : index
    %149 = vector.load %arg16[%c0_104, %c0_105, %c0_106] : memref<2x128x128xbf16, #tpu.memory_space<vmem>>, vector<1x128x128xbf16>
    %150 = vector.shape_cast %149 : vector<1x128x128xbf16> to vector<128x128xbf16>
    %c6 = arith.constant 6 : index
    %c0_107 = arith.constant 0 : index
    %c0_108 = arith.constant 0 : index
    %151 = vector.load %arg2[%c6, %c0_107, %c0_108] : memref<12x1x128xf32, #tpu.memory_space<vmem>>, vector<1x1x128xf32>
    %152 = vector.shape_cast %151 : vector<1x1x128xf32> to vector<1x128xf32>
    %153 = arith.truncf %140 : vector<8x128xf32> to vector<8x128xbf16>
    %cst_109 = arith.constant dense<0.000000e+00> : vector<8x128xf32>
    %154 = tpu.matmul %153, %150, %cst_109 {dimension_numbers = #tpu.dot_dimension_numbers<[1], [0], [0], [1], [0, 0, 1, 1], [], []>} : vector<8x128xbf16>, vector<128x128xbf16>, vector<8x128xf32> -> vector<8x128xf32>
    %155 = vector.broadcast %152 : vector<1x128xf32> to vector<8x128xf32>
    %156 = arith.addf %154, %155 : vector<8x128xf32>
    %c0_i32_110 = arith.constant 0 : i32
    %c0_i32_111 = arith.constant 0 : i32
    %c0_i32_112 = arith.constant 0 : i32
    %c0_i32_113 = arith.constant 0 : i32
    %157 = tpu.memref_slice %arg16[%c0_i32_110, %c0_i32_112, %c0_i32_113] : memref<2x128x128xbf16, #tpu.memory_space<vmem>> -> memref<1x128x128xbf16, #tpu.memory_space<vmem>>
    %158 = tpu.memref_squeeze %157 : memref<1x128x128xbf16, #tpu.memory_space<vmem>> -> memref<128x128xbf16, #tpu.memory_space<vmem>>
    %159 = tpu.memref_slice %arg17[%c0_i32_111] : memref<2x!tpu.dma_semaphore, #tpu.memory_space<semaphore_mem>> -> memref<1x!tpu.dma_semaphore, #tpu.memory_space<semaphore_mem>>
    %160 = tpu.memref_squeeze %159 : memref<1x!tpu.dma_semaphore, #tpu.memory_space<semaphore_mem>> -> memref<!tpu.dma_semaphore, #tpu.memory_space<semaphore_mem>>
    tpu.enqueue_dma source(%arg11 : memref<128x128xbf16, #tpu.memory_space<any>>) target(%158 : memref<128x128xbf16, #tpu.memory_space<vmem>>) target_semaphore(%160 : memref<!tpu.dma_semaphore, #tpu.memory_space<semaphore_mem>>)
    %c1_i32_114 = arith.constant 1 : i32
    %c1_i32_115 = arith.constant 1 : i32
    %c0_i32_116 = arith.constant 0 : i32
    %c0_i32_117 = arith.constant 0 : i32
    %161 = tpu.memref_slice %arg16[%c1_i32_114, %c0_i32_116, %c0_i32_117] : memref<2x128x128xbf16, #tpu.memory_space<vmem>> -> memref<1x128x128xbf16, #tpu.memory_space<vmem>>
    %162 = tpu.memref_squeeze %161 : memref<1x128x128xbf16, #tpu.memory_space<vmem>> -> memref<128x128xbf16, #tpu.memory_space<vmem>>
    %163 = tpu.memref_slice %arg17[%c1_i32_115] : memref<2x!tpu.dma_semaphore, #tpu.memory_space<semaphore_mem>> -> memref<1x!tpu.dma_semaphore, #tpu.memory_space<semaphore_mem>>
    %164 = tpu.memref_squeeze %163 : memref<1x!tpu.dma_semaphore, #tpu.memory_space<semaphore_mem>> -> memref<!tpu.dma_semaphore, #tpu.memory_space<semaphore_mem>>
    tpu.wait_dma2 semaphore(%164 : memref<!tpu.dma_semaphore, #tpu.memory_space<semaphore_mem>>) src(%arg10 : memref<128x128xbf16, #tpu.memory_space<any>>) dst(%162 : memref<128x128xbf16, #tpu.memory_space<vmem>>)
    %c1_118 = arith.constant 1 : index
    %c0_119 = arith.constant 0 : index
    %c0_120 = arith.constant 0 : index
    %165 = vector.load %arg16[%c1_118, %c0_119, %c0_120] : memref<2x128x128xbf16, #tpu.memory_space<vmem>>, vector<1x128x128xbf16>
    %166 = vector.shape_cast %165 : vector<1x128x128xbf16> to vector<128x128xbf16>
    %c7 = arith.constant 7 : index
    %c0_121 = arith.constant 0 : index
    %c0_122 = arith.constant 0 : index
    %167 = vector.load %arg2[%c7, %c0_121, %c0_122] : memref<12x1x128xf32, #tpu.memory_space<vmem>>, vector<1x1x128xf32>
    %168 = vector.shape_cast %167 : vector<1x1x128xf32> to vector<1x128xf32>
    %169 = arith.truncf %96 : vector<8x128xf32> to vector<8x128xbf16>
    %cst_123 = arith.constant dense<0.000000e+00> : vector<8x128xf32>
    %170 = tpu.matmul %169, %166, %cst_123 {dimension_numbers = #tpu.dot_dimension_numbers<[1], [0], [0], [1], [0, 0, 1, 1], [], []>} : vector<8x128xbf16>, vector<128x128xbf16>, vector<8x128xf32> -> vector<8x128xf32>
    %171 = arith.addf %156, %170 : vector<8x128xf32>
    %172 = vector.broadcast %168 : vector<1x128xf32> to vector<8x128xf32>
    %173 = arith.addf %171, %172 : vector<8x128xf32>
    %174 = math.sin %173 : vector<8x128xf32>
    %175 = arith.mulf %174, %174 : vector<8x128xf32>
    %176 = arith.addf %175, %173 : vector<8x128xf32>
    %cst_124 = arith.constant 1.000000e-01 : f32
    %177 = vector.broadcast %cst_124 : f32 to vector<8x128xf32>
    %178 = arith.mulf %177, %176 : vector<8x128xf32>
    %179 = arith.maximumf %178, %176 : vector<8x128xf32>
    %c1_i32_125 = arith.constant 1 : i32
    %c1_i32_126 = arith.constant 1 : i32
    %c0_i32_127 = arith.constant 0 : i32
    %c0_i32_128 = arith.constant 0 : i32
    %180 = tpu.memref_slice %arg16[%c1_i32_125, %c0_i32_127, %c0_i32_128] : memref<2x128x128xbf16, #tpu.memory_space<vmem>> -> memref<1x128x128xbf16, #tpu.memory_space<vmem>>
    %181 = tpu.memref_squeeze %180 : memref<1x128x128xbf16, #tpu.memory_space<vmem>> -> memref<128x128xbf16, #tpu.memory_space<vmem>>
    %182 = tpu.memref_slice %arg17[%c1_i32_126] : memref<2x!tpu.dma_semaphore, #tpu.memory_space<semaphore_mem>> -> memref<1x!tpu.dma_semaphore, #tpu.memory_space<semaphore_mem>>
    %183 = tpu.memref_squeeze %182 : memref<1x!tpu.dma_semaphore, #tpu.memory_space<semaphore_mem>> -> memref<!tpu.dma_semaphore, #tpu.memory_space<semaphore_mem>>
    tpu.enqueue_dma source(%arg12 : memref<128x128xbf16, #tpu.memory_space<any>>) target(%181 : memref<128x128xbf16, #tpu.memory_space<vmem>>) target_semaphore(%183 : memref<!tpu.dma_semaphore, #tpu.memory_space<semaphore_mem>>)
    %c0_i32_129 = arith.constant 0 : i32
    %c0_i32_130 = arith.constant 0 : i32
    %c0_i32_131 = arith.constant 0 : i32
    %c0_i32_132 = arith.constant 0 : i32
    %184 = tpu.memref_slice %arg16[%c0_i32_129, %c0_i32_131, %c0_i32_132] : memref<2x128x128xbf16, #tpu.memory_space<vmem>> -> memref<1x128x128xbf16, #tpu.memory_space<vmem>>
    %185 = tpu.memref_squeeze %184 : memref<1x128x128xbf16, #tpu.memory_space<vmem>> -> memref<128x128xbf16, #tpu.memory_space<vmem>>
    %186 = tpu.memref_slice %arg17[%c0_i32_130] : memref<2x!tpu.dma_semaphore, #tpu.memory_space<semaphore_mem>> -> memref<1x!tpu.dma_semaphore, #tpu.memory_space<semaphore_mem>>
    %187 = tpu.memref_squeeze %186 : memref<1x!tpu.dma_semaphore, #tpu.memory_space<semaphore_mem>> -> memref<!tpu.dma_semaphore, #tpu.memory_space<semaphore_mem>>
    tpu.wait_dma2 semaphore(%187 : memref<!tpu.dma_semaphore, #tpu.memory_space<semaphore_mem>>) src(%arg11 : memref<128x128xbf16, #tpu.memory_space<any>>) dst(%185 : memref<128x128xbf16, #tpu.memory_space<vmem>>)
    %c0_133 = arith.constant 0 : index
    %c0_134 = arith.constant 0 : index
    %c0_135 = arith.constant 0 : index
    %188 = vector.load %arg16[%c0_133, %c0_134, %c0_135] : memref<2x128x128xbf16, #tpu.memory_space<vmem>>, vector<1x128x128xbf16>
    %189 = vector.shape_cast %188 : vector<1x128x128xbf16> to vector<128x128xbf16>
    %c8 = arith.constant 8 : index
    %c0_136 = arith.constant 0 : index
    %c0_137 = arith.constant 0 : index
    %190 = vector.load %arg2[%c8, %c0_136, %c0_137] : memref<12x1x128xf32, #tpu.memory_space<vmem>>, vector<1x1x128xf32>
    %191 = vector.shape_cast %190 : vector<1x1x128xf32> to vector<1x128xf32>
    %192 = arith.truncf %179 : vector<8x128xf32> to vector<8x128xbf16>
    %cst_138 = arith.constant dense<0.000000e+00> : vector<8x128xf32>
    %193 = tpu.matmul %192, %189, %cst_138 {dimension_numbers = #tpu.dot_dimension_numbers<[1], [0], [0], [1], [0, 0, 1, 1], [], []>} : vector<8x128xbf16>, vector<128x128xbf16>, vector<8x128xf32> -> vector<8x128xf32>
    %194 = vector.broadcast %191 : vector<1x128xf32> to vector<8x128xf32>
    %195 = arith.addf %193, %194 : vector<8x128xf32>
    %196 = math.sin %195 : vector<8x128xf32>
    %197 = arith.mulf %196, %196 : vector<8x128xf32>
    %198 = arith.addf %197, %195 : vector<8x128xf32>
    %cst_139 = arith.constant 1.000000e-01 : f32
    %199 = vector.broadcast %cst_139 : f32 to vector<8x128xf32>
    %200 = arith.mulf %199, %198 : vector<8x128xf32>
    %201 = arith.maximumf %200, %198 : vector<8x128xf32>
    %c0_i32_140 = arith.constant 0 : i32
    %c0_i32_141 = arith.constant 0 : i32
    %c0_i32_142 = arith.constant 0 : i32
    %c0_i32_143 = arith.constant 0 : i32
    %202 = tpu.memref_slice %arg16[%c0_i32_140, %c0_i32_142, %c0_i32_143] : memref<2x128x128xbf16, #tpu.memory_space<vmem>> -> memref<1x128x128xbf16, #tpu.memory_space<vmem>>
    %203 = tpu.memref_squeeze %202 : memref<1x128x128xbf16, #tpu.memory_space<vmem>> -> memref<128x128xbf16, #tpu.memory_space<vmem>>
    %204 = tpu.memref_slice %arg17[%c0_i32_141] : memref<2x!tpu.dma_semaphore, #tpu.memory_space<semaphore_mem>> -> memref<1x!tpu.dma_semaphore, #tpu.memory_space<semaphore_mem>>
    %205 = tpu.memref_squeeze %204 : memref<1x!tpu.dma_semaphore, #tpu.memory_space<semaphore_mem>> -> memref<!tpu.dma_semaphore, #tpu.memory_space<semaphore_mem>>
    tpu.enqueue_dma source(%arg13 : memref<128x128xbf16, #tpu.memory_space<any>>) target(%203 : memref<128x128xbf16, #tpu.memory_space<vmem>>) target_semaphore(%205 : memref<!tpu.dma_semaphore, #tpu.memory_space<semaphore_mem>>)
    %c1_i32_144 = arith.constant 1 : i32
    %c1_i32_145 = arith.constant 1 : i32
    %c0_i32_146 = arith.constant 0 : i32
    %c0_i32_147 = arith.constant 0 : i32
    %206 = tpu.memref_slice %arg16[%c1_i32_144, %c0_i32_146, %c0_i32_147] : memref<2x128x128xbf16, #tpu.memory_space<vmem>> -> memref<1x128x128xbf16, #tpu.memory_space<vmem>>
    %207 = tpu.memref_squeeze %206 : memref<1x128x128xbf16, #tpu.memory_space<vmem>> -> memref<128x128xbf16, #tpu.memory_space<vmem>>
    %208 = tpu.memref_slice %arg17[%c1_i32_145] : memref<2x!tpu.dma_semaphore, #tpu.memory_space<semaphore_mem>> -> memref<1x!tpu.dma_semaphore, #tpu.memory_space<semaphore_mem>>
    %209 = tpu.memref_squeeze %208 : memref<1x!tpu.dma_semaphore, #tpu.memory_space<semaphore_mem>> -> memref<!tpu.dma_semaphore, #tpu.memory_space<semaphore_mem>>
    tpu.wait_dma2 semaphore(%209 : memref<!tpu.dma_semaphore, #tpu.memory_space<semaphore_mem>>) src(%arg12 : memref<128x128xbf16, #tpu.memory_space<any>>) dst(%207 : memref<128x128xbf16, #tpu.memory_space<vmem>>)
    %c1_148 = arith.constant 1 : index
    %c0_149 = arith.constant 0 : index
    %c0_150 = arith.constant 0 : index
    %210 = vector.load %arg16[%c1_148, %c0_149, %c0_150] : memref<2x128x128xbf16, #tpu.memory_space<vmem>>, vector<1x128x128xbf16>
    %211 = vector.shape_cast %210 : vector<1x128x128xbf16> to vector<128x128xbf16>
    %c9 = arith.constant 9 : index
    %c0_151 = arith.constant 0 : index
    %c0_152 = arith.constant 0 : index
    %212 = vector.load %arg2[%c9, %c0_151, %c0_152] : memref<12x1x128xf32, #tpu.memory_space<vmem>>, vector<1x1x128xf32>
    %213 = vector.shape_cast %212 : vector<1x1x128xf32> to vector<1x128xf32>
    %214 = arith.truncf %201 : vector<8x128xf32> to vector<8x128xbf16>
    %cst_153 = arith.constant dense<0.000000e+00> : vector<8x128xf32>
    %215 = tpu.matmul %214, %211, %cst_153 {dimension_numbers = #tpu.dot_dimension_numbers<[1], [0], [0], [1], [0, 0, 1, 1], [], []>} : vector<8x128xbf16>, vector<128x128xbf16>, vector<8x128xf32> -> vector<8x128xf32>
    %216 = vector.broadcast %213 : vector<1x128xf32> to vector<8x128xf32>
    %217 = arith.addf %215, %216 : vector<8x128xf32>
    %218 = math.sin %217 : vector<8x128xf32>
    %219 = arith.mulf %218, %218 : vector<8x128xf32>
    %220 = arith.addf %219, %217 : vector<8x128xf32>
    %cst_154 = arith.constant 1.000000e-01 : f32
    %221 = vector.broadcast %cst_154 : f32 to vector<8x128xf32>
    %222 = arith.mulf %221, %220 : vector<8x128xf32>
    %223 = arith.maximumf %222, %220 : vector<8x128xf32>
    %c1_i32_155 = arith.constant 1 : i32
    %c1_i32_156 = arith.constant 1 : i32
    %c0_i32_157 = arith.constant 0 : i32
    %c0_i32_158 = arith.constant 0 : i32
    %224 = tpu.memref_slice %arg16[%c1_i32_155, %c0_i32_157, %c0_i32_158] : memref<2x128x128xbf16, #tpu.memory_space<vmem>> -> memref<1x128x128xbf16, #tpu.memory_space<vmem>>
    %225 = tpu.memref_squeeze %224 : memref<1x128x128xbf16, #tpu.memory_space<vmem>> -> memref<128x128xbf16, #tpu.memory_space<vmem>>
    %226 = tpu.memref_slice %arg17[%c1_i32_156] : memref<2x!tpu.dma_semaphore, #tpu.memory_space<semaphore_mem>> -> memref<1x!tpu.dma_semaphore, #tpu.memory_space<semaphore_mem>>
    %227 = tpu.memref_squeeze %226 : memref<1x!tpu.dma_semaphore, #tpu.memory_space<semaphore_mem>> -> memref<!tpu.dma_semaphore, #tpu.memory_space<semaphore_mem>>
    tpu.enqueue_dma source(%arg14 : memref<128x128xbf16, #tpu.memory_space<any>>) target(%225 : memref<128x128xbf16, #tpu.memory_space<vmem>>) target_semaphore(%227 : memref<!tpu.dma_semaphore, #tpu.memory_space<semaphore_mem>>)
    %c0_i32_159 = arith.constant 0 : i32
    %c0_i32_160 = arith.constant 0 : i32
    %c0_i32_161 = arith.constant 0 : i32
    %c0_i32_162 = arith.constant 0 : i32
    %228 = tpu.memref_slice %arg16[%c0_i32_159, %c0_i32_161, %c0_i32_162] : memref<2x128x128xbf16, #tpu.memory_space<vmem>> -> memref<1x128x128xbf16, #tpu.memory_space<vmem>>
    %229 = tpu.memref_squeeze %228 : memref<1x128x128xbf16, #tpu.memory_space<vmem>> -> memref<128x128xbf16, #tpu.memory_space<vmem>>
    %230 = tpu.memref_slice %arg17[%c0_i32_160] : memref<2x!tpu.dma_semaphore, #tpu.memory_space<semaphore_mem>> -> memref<1x!tpu.dma_semaphore, #tpu.memory_space<semaphore_mem>>
    %231 = tpu.memref_squeeze %230 : memref<1x!tpu.dma_semaphore, #tpu.memory_space<semaphore_mem>> -> memref<!tpu.dma_semaphore, #tpu.memory_space<semaphore_mem>>
    tpu.wait_dma2 semaphore(%231 : memref<!tpu.dma_semaphore, #tpu.memory_space<semaphore_mem>>) src(%arg13 : memref<128x128xbf16, #tpu.memory_space<any>>) dst(%229 : memref<128x128xbf16, #tpu.memory_space<vmem>>)
    %c0_163 = arith.constant 0 : index
    %c0_164 = arith.constant 0 : index
    %c0_165 = arith.constant 0 : index
    %232 = vector.load %arg16[%c0_163, %c0_164, %c0_165] : memref<2x128x128xbf16, #tpu.memory_space<vmem>>, vector<1x128x128xbf16>
    %233 = vector.shape_cast %232 : vector<1x128x128xbf16> to vector<128x128xbf16>
    %c10 = arith.constant 10 : index
    %c0_166 = arith.constant 0 : index
    %c0_167 = arith.constant 0 : index
    %234 = vector.load %arg2[%c10, %c0_166, %c0_167] : memref<12x1x128xf32, #tpu.memory_space<vmem>>, vector<1x1x128xf32>
    %235 = vector.shape_cast %234 : vector<1x1x128xf32> to vector<1x128xf32>
    %236 = arith.truncf %223 : vector<8x128xf32> to vector<8x128xbf16>
    %cst_168 = arith.constant dense<0.000000e+00> : vector<8x128xf32>
    %237 = tpu.matmul %236, %233, %cst_168 {dimension_numbers = #tpu.dot_dimension_numbers<[1], [0], [0], [1], [0, 0, 1, 1], [], []>} : vector<8x128xbf16>, vector<128x128xbf16>, vector<8x128xf32> -> vector<8x128xf32>
    %238 = vector.broadcast %235 : vector<1x128xf32> to vector<8x128xf32>
    %239 = arith.addf %237, %238 : vector<8x128xf32>
    %c1_i32_169 = arith.constant 1 : i32
    %c1_i32_170 = arith.constant 1 : i32
    %c0_i32_171 = arith.constant 0 : i32
    %c0_i32_172 = arith.constant 0 : i32
    %240 = tpu.memref_slice %arg16[%c1_i32_169, %c0_i32_171, %c0_i32_172] : memref<2x128x128xbf16, #tpu.memory_space<vmem>> -> memref<1x128x128xbf16, #tpu.memory_space<vmem>>
    %241 = tpu.memref_squeeze %240 : memref<1x128x128xbf16, #tpu.memory_space<vmem>> -> memref<128x128xbf16, #tpu.memory_space<vmem>>
    %242 = tpu.memref_slice %arg17[%c1_i32_170] : memref<2x!tpu.dma_semaphore, #tpu.memory_space<semaphore_mem>> -> memref<1x!tpu.dma_semaphore, #tpu.memory_space<semaphore_mem>>
    %243 = tpu.memref_squeeze %242 : memref<1x!tpu.dma_semaphore, #tpu.memory_space<semaphore_mem>> -> memref<!tpu.dma_semaphore, #tpu.memory_space<semaphore_mem>>
    tpu.wait_dma2 semaphore(%243 : memref<!tpu.dma_semaphore, #tpu.memory_space<semaphore_mem>>) src(%arg14 : memref<128x128xbf16, #tpu.memory_space<any>>) dst(%241 : memref<128x128xbf16, #tpu.memory_space<vmem>>)
    %c1_173 = arith.constant 1 : index
    %c0_174 = arith.constant 0 : index
    %c0_175 = arith.constant 0 : index
    %244 = vector.load %arg16[%c1_173, %c0_174, %c0_175] : memref<2x128x128xbf16, #tpu.memory_space<vmem>>, vector<1x128x128xbf16>
    %245 = vector.shape_cast %244 : vector<1x128x128xbf16> to vector<128x128xbf16>
    %c11 = arith.constant 11 : index
    %c0_176 = arith.constant 0 : index
    %c0_177 = arith.constant 0 : index
    %246 = vector.load %arg2[%c11, %c0_176, %c0_177] : memref<12x1x128xf32, #tpu.memory_space<vmem>>, vector<1x1x128xf32>
    %247 = vector.shape_cast %246 : vector<1x1x128xf32> to vector<1x128xf32>
    %248 = arith.truncf %179 : vector<8x128xf32> to vector<8x128xbf16>
    %cst_178 = arith.constant dense<0.000000e+00> : vector<8x128xf32>
    %249 = tpu.matmul %248, %245, %cst_178 {dimension_numbers = #tpu.dot_dimension_numbers<[1], [0], [0], [1], [0, 0, 1, 1], [], []>} : vector<8x128xbf16>, vector<128x128xbf16>, vector<8x128xf32> -> vector<8x128xf32>
    %250 = arith.addf %239, %249 : vector<8x128xf32>
    %251 = vector.broadcast %247 : vector<1x128xf32> to vector<8x128xf32>
    %252 = arith.addf %250, %251 : vector<8x128xf32>
    %253 = math.sin %252 : vector<8x128xf32>
    %254 = arith.mulf %253, %253 : vector<8x128xf32>
    %255 = arith.addf %254, %252 : vector<8x128xf32>
    %cst_179 = arith.constant 1.000000e-01 : f32
    %256 = vector.broadcast %cst_179 : f32 to vector<8x128xf32>
    %257 = arith.mulf %256, %255 : vector<8x128xf32>
    %258 = arith.maximumf %257, %255 : vector<8x128xf32>
    %c0_180 = arith.constant 0 : index
    %c0_181 = arith.constant 0 : index
    %259 = vector.load %arg15[%c0_180, %c0_181] : memref<8x128xf32, #tpu.memory_space<vmem>>, vector<8x128xf32>
    tpu.vector_store %arg15[%c0_180, %c0_181], %258 {strides = array<i32>} : memref<8x128xf32, #tpu.memory_space<vmem>>, vector<8x128xf32>,
    return
  }
}

</mosaic_0001>

<bundles_post_ra>
// kernel: forward.1
= control target key start
LH: loop header
LB: loop body
LE: loop exit
PB: predicated region body
PF: predicated region fallthrough
CT: control target
= control target key end

     0   :  { %20 = vsyncpa [#allocation5], 0  ;;  %s4495_s0 = inlined_call_operand.vmem [shape: f32[8,128], index: 0, kind: input, shape index: {}]   ;;  %s4496_s1 = inlined_call_operand.hbm [shape: bf16[128,128], index: 1, kind: input, shape index: {}]   ;;  %s4497_s2 = inlined_call_operand.hbm [shape: f32[12,1,128], index: 2, kind: input, shape index: {}]   ;;  %s4498_s3 = inlined_call_operand.hbm [shape: bf16[128,128], index: 3, kind: input, shape index: {}]   ;;  %s4499_s4 = inlined_call_operand.hbm [shape: bf16[128,128], index: 4, kind: input, shape index: {}]   ;;  %s4500_s5 = inlined_call_operand.hbm [shape: bf16[128,128], index: 5, kind: input, shape index: {}]   ;;  %s4501_s6 = inlined_call_operand.hbm [shape: bf16[128,128], index: 6, kind: input, shape index: {}]   ;;  %s4502_s7 = inlined_call_operand.hbm [shape: bf16[128,128], index: 7, kind: input, shape index: {}]   ;;  %s4503_s8 = inlined_call_operand.hbm [shape: bf16[128,128], index: 8, kind: input, shape index: {}]   ;;  %s4504_s9 = inlined_call_operand.hbm [shape: bf16[128,128], index: 9, kind: input, shape index: {}]   ;;  %s4505_s10 = inlined_call_operand.hbm [shape: bf16[128,128], index: 10, kind: input, shape index: {}]   ;;  %s4506_s11 = inlined_call_operand.hbm [shape: bf16[128,128], index: 11, kind: input, shape index: {}]   ;;  %s4507_s12 = inlined_call_operand.hbm [shape: bf16[128,128], index: 12, kind: input, shape index: {}]   ;;  %s4508_s13 = inlined_call_operand.hbm [shape: bf16[128,128], index: 13, kind: input, shape index: {}]   ;;  %s4509_s14 = inlined_call_operand.hbm [shape: bf16[128,128], index: 14, kind: input, shape index: {}]   ;;  %s4510_s15 = inlined_call_operand.vmem [shape: f32[8,128], index: 15, kind: output, shape index: {}]  }
   0x1   :  { %21 = vsyncpa [#allocation7], 0  ;;  %s3822_s18 = smov [#allocation4]  }
   0x2   :  { %s29_s19 = sshll.u32 %s3822_s18, 4  ;;  %s30_s19 = int_to_ptr.vmem [resolvable:$true] %s29_s19 }
   0x3   :  { %s3522_s20 = scalar_lea.vmem %s30_s19, 1024  ;;  %p3527_p1 = scmp.lt.s32.totalorder %s30_s19, %s30_s19 }
   0x4   :  { %p3523_p0 = scmp.ne.s32.totalorder %s30_s19, %s3522_s20  ;;  %p3528_p2 = scmp.lt.s32.totalorder %s3522_s20, %s3522_s20 }
   0x6   :  { %p3529_p3 = por %p3528_p2, %p3527_p1 }
   0x8   :  { %p3530_p4 = pnand %p3529_p3, %p3523_p0 }
   0xa   :  { %3533 = shalt.err (!%p3530_p4)
}
   0xb   :  { %s3823_s21 = smov 64   ;;  %s3824_s22 = smov 4  }
   0xc   :  { %35 = dma.hbm_to_vmem [thread:$0]  %s4496_s1, 1024, %s30_s19, [#allocation5], %s3823_s21, %s3823_s21, %s3824_s22  }
   0xd   :  { %s3825_s25 = smov [#allocation6]  }
   0xe   :  { %s41_s26 = sshll.u32 %s3825_s25, 4  ;;  %s42_s26 = int_to_ptr.vmem [resolvable:$true] %s41_s26 }
   0xf   :  { %s3542_s27 = scalar_lea.vmem %s42_s26, 192  ;;  %p3547_p6 = scmp.lt.s32.totalorder %s42_s26, %s42_s26 }
  0x10   :  { %p3543_p5 = scmp.ne.s32.totalorder %s42_s26, %s3542_s27  ;;  %p3548_p7 = scmp.lt.s32.totalorder %s3542_s27, %s3542_s27 }
  0x12   :  { %p3549_p8 = por %p3548_p7, %p3547_p6 }
  0x14   :  { %p3550_p9 = pnand %p3549_p8, %p3543_p5 }
  0x16   :  { %3553 = shalt.err (!%p3550_p9)
}
  0x17   :  { %s3826_s28 = smov 16   ;;  %s3827_s29 = smov 1  }
  0x18   :  { %47 = dma.hbm_to_vmem [thread:$0]  %s4497_s2, 192, %s42_s26, [#allocation7], %s3826_s28, %s3826_s28, %s3827_s29  }
  0x19   :  { %3794 = dma.done.wait [#allocation5], 1024  }
  0x1a   :  { %3795 = vsyncadd [#allocation5], 4294966272 }
  0x1b   :  { %3796 = dma.done.wait [#allocation7], 192  }
  0x1c   :  { %3797 = vsyncadd [#allocation7], 4294967104  ;;  %v3828_v0 = vmov 0.0   ;;  %vm3829_vm0 = vmmov 0   ;;  %v3370_v1 = vld [vmem:[#allocation4 + $0x38] sm:$0xff]   ;;  %v3371_v2 = vld [vmem:[#allocation4 + $0x30] sm:$0xff]  }
  0x1d   :  { %3054 = vmatprep.subr.bf16.mxu0 %v3828_v0  ;;  %3070 = vmatprep.mubr.msk.bf16.mxu0 %vm3829_vm0, %v3828_v0  ;;  %v3372_v3 = vld [vmem:[#allocation4 + $0x28] sm:$0xff]   ;;  %v3373_v4 = vld [vmem:[#allocation4 + $0x20] sm:$0xff]   ;;  %v3374_v5 = vld [vmem:[#allocation4 + $0x18] sm:$0xff]   ;;  %s3830_s17 = smov [#allocation2]   ;;  %s3831_s19 = smov [#allocation2 + $0x40]  }
  0x1e   :  { %3055 = vmatpush3.bf16.msra.mxu0 %v3370_v1  ;;  %v3375_v6 = vld [vmem:[#allocation4 + $0x10] sm:$0xff]   ;;  %v3376_v7 = vld [vmem:[#allocation4 + $0x8] sm:$0xff]   ;;  %v3377_v8 = vld [vmem:[#allocation4] sm:$0xff]   ;;  %s62_s18 = sshll.u32 %s3830_s17, 4  ;;  %s289_s20 = sshll.u32 %s3831_s19, 4  ;;  %s3937_s18 = int_to_ptr.vmem [resolvable:$true] %s62_s18  ;;  %s3954_s20 = int_to_ptr.vmem [resolvable:$true] %s289_s20 }
  0x1f   :  { %3056 = vmatprep.subr.bf16.mxu0 %v3828_v0  ;;  %v66_v9 = vld [vmem:[%s4495_s0] sm:$0xff]  ;;  %s3562_s21 = scalar_lea.vmem %s3937_s18, 1024  ;;  %s3566_s22 = scalar_lea.vmem %s3937_s18, 2048 }
  0x20   :  { %v83_v10 = vpack.c.bf16 %v66_v9, %v66_v9  ;;  %p3563_p10 = scmp.ne.s32.totalorder %s3937_s18, %s3562_s21  ;;  %p3567_p11 = scmp.lt.s32.totalorder %s3937_s18, %s3937_s18 }
  0x21   :  { %p3568_p12 = scmp.lt.s32.totalorder %s3566_s22, %s3562_s21 }
  0x22   :  { %3057 = vmatpush3.bf16.msra.mxu0 %v3371_v2 }
  0x23   :  { %3058 = vmatprep.subr.bf16.mxu0 %v3828_v0  ;;  %p3569_p13 = por %p3568_p12, %p3567_p11 }
  0x25   :  { %p3944_p0 = pnand %p3569_p13, %p3563_p10 }
  0x26   :  { %3059 = vmatpush3.bf16.msra.mxu0 %v3372_v3 }
  0x27   :  { %3060 = vmatprep.subr.bf16.mxu0 %v3828_v0 }
  0x2a   :  { %3061 = vmatpush3.bf16.msra.mxu0 %v3373_v4 }
  0x2b   :  { %3062 = vmatprep.subr.bf16.mxu0 %v3828_v0 }
  0x2e   :  { %3063 = vmatpush3.bf16.msra.mxu0 %v3374_v5 }
  0x2f   :  { %3064 = vmatprep.subr.bf16.mxu0 %v3828_v0 }
  0x32   :  { %3065 = vmatpush3.bf16.msra.mxu0 %v3375_v6 }
  0x33   :  { %3066 = vmatprep.subr.bf16.mxu0 %v3828_v0 }
  0x36   :  { %3067 = vmatpush3.bf16.msra.mxu0 %v3376_v7 }
  0x37   :  { %3068 = vmatprep.subr.bf16.mxu0 %v3828_v0 }
  0x3a   :  { %3069 = vmatpush3.bf16.msra.mxu0 %v3377_v8 }
  0x3d   :  { %3071 = vmatmul.mubr.bf16.vlgmr.msra.gmra.mxu0 %v83_v10 }
  0x3e   :  { %3573 = shalt.err (!%p3944_p0)  }
  0x3f   :  { %65 = dma.hbm_to_vmem [thread:$0]  %s4498_s3, 1024, %s3937_s18, [#allocation3] }
  0x40   :  { %s3582_s25 = scalar_lea.vmem %s3954_s20, 1024  ;;  %p3587_p2 = scmp.lt.s32.totalorder %s3954_s20, %s3937_s18 }
  0x41   :  { %p3583_p1 = scmp.ne.s32.totalorder %s3954_s20, %s3582_s25  ;;  %p3588_p3 = scmp.lt.s32.totalorder %s3566_s22, %s3582_s25 }
  0x43   :  { %p3589_p4 = por %p3588_p3, %p3587_p2 }
  0x45   :  { %p3960_p5 = pnand %p3589_p4, %p3583_p1 }
  0x47   :  { %3593 = shalt.err (!%p3960_p5)  }
  0x48   :  { %292 = dma.hbm_to_vmem [thread:$0]  %s4499_s4, 1024, %s3954_s20, [#allocation3 + $0x1]  ;;  %v3832_v25 = vmov 683565275   ;;  %v3833_v27 = vmov 2475754826  }
  0x49   :  { %v3834_v30 = vmov 2131351028   ;;  %v3835_v33 = vmov 2102212464   ;;  %v3836_v36 = vmov 920167782  }
  0x4a   :  { %v3837_v39 = vmov 1326507024  }
  0xfd   :  { %v3970_v11 = vpop.f32.mrf.mxu0 }
  0xfe   :  { %v175_v12 = vand.u32 2139095040, %v3970_v11  ;;  %v172_v19 = vand.u32 2147483647, %v3970_v11  ;;  %vm174_vm8 = vcmp.lt.s32.totalorder %v3970_v11, 0  ;;  %vm264_vm13 = vweird.f32 %v3970_v11 }
  0xff   :  { %v3072_v13 = vpop.f32.mrf.mxu0 }
 0x100   :  { %v176_v14 = vshrl.u32 %v175_v12, 23  ;;  %v179_v22 = vand.u32 8388607, %v172_v19  ;;  %vm173_vm9 = vcmp.le.f32.partialorder %v172_v19, 0.7853982 }
 0x101   :  { %v169_v15 = vpop.f32.mrf.mxu0 }
 0x102   :  { %v2787_v16 = vadd.s32 4294967169, %v176_v14  ;;  %v180_v41 = vor.u32 8388608, %v179_v22 }
 0x103   :  { %v3073_v17 = vpop.f32.mrf.mxu0 }
 0x104   :  { %v182_v18 = vadd.s32 1, %v2787_v16  ;;  %v220_v55 = vshll.u32 %v180_v41, 8 }
 0x106   :  { %vm183_vm1 = vcmp.gt.s32.totalorder %v182_v18, 0 }
 0x107   :  { %v184_v20 = vsel %vm183_vm1, %v182_v18, 0 }
 0x108   :  { %v186_v21 = vand.u32 31, %v184_v20  ;;  %v185_v24 = vshrl.u32 %v184_v20, 5 }
 0x10a   :  { %v187_v23 = vsub.s32 32, %v186_v21  ;;  %v189_v26 = vshll.u32 %v3832_v25, %v186_v21  ;;  %v192_v28 = vshll.u32 %v3833_v27, %v186_v21  ;;  %v195_v32 = vshll.u32 %v3834_v30, %v186_v21 }
 0x10b   :  { %v198_v35 = vshll.u32 %v3835_v33, %v186_v21  ;;  %v201_v38 = vshll.u32 %v3836_v36, %v186_v21  ;;  %vm204_vm2 = vcmp.lt.s32.totalorder %v185_v24, 1  ;;  %vm207_vm3 = vcmp.lt.s32.totalorder %v185_v24, 4 }
 0x10c   :  { %v190_v29 = vshrl.u32 %v3833_v27, %v187_v23  ;;  %v193_v31 = vshrl.u32 %v3834_v30, %v187_v23  ;;  %v196_v34 = vshrl.u32 %v3835_v33, %v187_v23  ;;  %v199_v37 = vshrl.u32 %v3836_v36, %v187_v23 }
 0x10d   :  { %v202_v40 = vshrl.u32 %v3837_v39, %v187_v23  ;;  %v188_v50 = vshrl.u32 %v3832_v25, %v187_v23  ;;  %vm206_vm4 = vcmp.lt.s32.totalorder %v185_v24, 3  ;;  %vm205_vm5 = vcmp.lt.s32.totalorder %v185_v24, 2 }
 0x10e   :  { %v191_v42 = vor.u32 %v190_v29, %v189_v26  ;;  %v194_v43 = vor.u32 %v193_v31, %v192_v28  ;;  %v197_v44 = vor.u32 %v196_v34, %v195_v32  ;;  %v200_v45 = vor.u32 %v199_v37, %v198_v35 }
 0x10f   :  { %v203_v46 = vor.u32 %v202_v40, %v201_v38 }
 0x110   :  { %v209_v47 = vsel %vm207_vm3, %v197_v44, 2102212464  ;;  %v212_v48 = vsel %vm204_vm2, %v191_v42, %v194_v43  ;;  %v216_v49 = vsel %vm204_vm2, %v194_v43, %v197_v44  ;;  %v213_v51 = vsel %vm207_vm3, %v200_v45, 920167782 }
 0x111   :  { %v217_v52 = vsel %vm207_vm3, %v203_v46, 1326507024  ;;  %v214_v53 = vsel %vm206_vm4, %v197_v44, %v213_v51  ;;  %v208_v56 = vsel %vm204_vm2, %v188_v50, %v191_v42  ;;  %v210_v57 = vsel %vm206_vm4, %v194_v43, %v209_v47 }
 0x112   :  { %v218_v54 = vsel %vm206_vm4, %v200_v45, %v217_v52  ;;  %v215_v58 = vsel %vm205_vm5, %v212_v48, %v214_v53  ;;  %v211_v1 = vsel %vm205_vm5, %v208_v56, %v210_v57 }
 0x113   :  { %v219_v59 = vsel %vm205_vm5, %v216_v49, %v218_v54  ;;  %v3990_v62 = vmul.u32.u64.low %v220_v55, %v215_v58  ;;  %v3991_v63 = vmul.u32.u64.high %v220_v55, %v215_v58, %v3990_v62  ;;  %v227_v3 = vmul.u32 %v220_v55, %v211_v1 }
 0x114   :  { %v3987_v60 = vmul.u32.u64.low %v220_v55, %v219_v59  ;;  %v3988_v61 = vmul.u32.u64.high %v220_v55, %v219_v59, %v3987_v60 }
 0x115   :  { %v230_v2 = vadd.s32 1, %v3991_v63 }
 0x116   :  { %vm229_vm6 = vc.u32 %v3988_v61, %v3990_v62  ;;  %v228_v16 = vadd.s32 %v3990_v62, %v3988_v61 }
 0x117   :  { %v231_v4 = vsel %vm229_vm6, %v230_v2, %v3991_v63 }
 0x118   :  { %v232_v5 = vadd.s32 %v231_v4, %v227_v3 }
 0x11a   :  { %v233_v6 = vadd.s32 536870912, %v232_v5 }
 0x11c   :  { %v234_v7 = vshrl.u32 %v233_v6, 30 }
 0x11e   :  { %v235_v8 = vshll.u32 %v234_v7, 30  ;;  %v258_v34 = vsub.s32 4, %v234_v7 }
 0x120   :  { %v236_v9 = vsub.s32 %v232_v5, %v235_v8  ;;  %v259_v38 = vsel %vm174_vm8, %v258_v34, %v234_v7 }
 0x121   :  { %v261_v40 = vsel %vm173_vm9, 0, %v259_v38 }
 0x122   :  { %v238_v10 = vsub.s32 0, %v236_v9  ;;  %v265_v41 = vadd.s32 3, %v261_v40 }
 0x124   :  { %v2788_v12 = vmin.u32 %v238_v10, %v236_v9  ;;  %v266_v42 = vand.u32 3, %v265_v41 }
 0x126   :  { %v240_v13 = vclz %v2788_v12  ;;  %vm271_vm10 = vcmp.eq.s32.totalorder %v266_v42, 2  ;;  %vm268_vm11 = vcmp.eq.s32.totalorder %v266_v42, 0  ;;  %vm267_vm12 = vcmp.lt.s32.totalorder %v266_v42, 2 }
 0x128   :  { %v2789_v14 = vadd.s32 4294967294, %v240_v13 }
 0x12a   :  { %vm2790_vm7 = vcmp.lt.s32.totalorder %v2789_v14, 0 }
 0x12b   :  { %v243_v15 = vsel %vm2790_vm7, 0, %v2789_v14 }
 0x12c   :  { %v244_v17 = vsub.s32 32, %v243_v15  ;;  %v248_v18 = vsub.s32 4294967266, %v243_v15  ;;  %v245_v20 = vshll.u32 %v236_v9, %v243_v15 }
 0x12e   :  { %v246_v21 = vshrl.u32 %v228_v16, %v244_v17  ;;  %v249_v22 = vadd.s32 127, %v248_v18 }
 0x130   :  { %v247_v23 = vor.u32 %v246_v21, %v245_v20  ;;  %v250_v24 = vshll.u32 %v249_v22, 23 }
 0x132   :  { %v251_v26 = vor.u32 4788187, %v250_v24  ;;  %v254_v29 = vcvt.s32.f32 %v247_v23 }
 0x134   :  { %v252_v28 = vand.u32 2147483647, %v251_v26 }
 0x136   :  { %v255_v31 = vmul.f32 %v254_v29, %v252_v28 }
 0x138   :  { %v256_v32 = vxor.u32 2147483648, %v255_v31 }
 0x13a   :  { %v257_v35 = vsel %vm174_vm8, %v256_v32, %v255_v31 }
 0x13b   :  { %v260_v37 = vsel %vm173_vm9, %v3970_v11, %v257_v35 }
 0x13c   :  { %3378 = vcosq.f32 %v260_v37 }
 0x13d   :  { %3380 = vsinq.f32 %v260_v37 }
 0x149   :  { %v3379_v43 = vpop.eup %3378 }
 0x14a   :  { %v3381_v44 = vpop.eup %3380  ;;  %v272_v45 = vxor.u32 2147483648, %v3379_v43 }
 0x14b   :  { %v269_v46 = vxor.u32 2147483648, %v3381_v44 }
 0x14c   :  { %v273_v47 = vsel %vm271_vm10, %v272_v45, %v3381_v44 }
 0x14d   :  { %v270_v48 = vsel %vm268_vm11, %v3379_v43, %v269_v46 }
 0x14e   :  { %v274_v19 = vsel %vm267_vm12, %v270_v48, %v273_v47 }
 0x14f   :  { %v275_v49 = vsel %vm264_vm13, nan, %v274_v19 }
 0x150   :  { %v276_v50 = vmul.f32 %v275_v49, %v275_v49 }
 0x152   :  { %v277_v51 = vadd.f32 %v276_v50, %v3970_v11 }
 0x154   :  { %v278_v52 = vmul.f32 0.1, %v277_v51 }
 0x156   :  { %v279_v53 = vmax.f32 %v278_v52, %v277_v51 }
 0x157   :  { %3798 = dma.done.wait [#allocation3], 1024 }
 0x158   :  { %3799 = vsyncadd [#allocation3], 4294966272  ;;  %3074 = vmatprep.subr.bf16.mxu1 %v3828_v0  ;;  %3090 = vmatprep.mubr.msk.bf16.mxu1 %vm3829_vm0, %v3828_v0  ;;  %v3382_v54 = vld [vmem:[#allocation2 + $0x38] sm:$0xff]   ;;  %v3383_v55 = vld [vmem:[#allocation2 + $0x30] sm:$0xff]  }
 0x159   :  { %3075 = vmatpush3.bf16.msra.mxu1 %v3382_v54  ;;  %v3384_v56 = vld [vmem:[#allocation2 + $0x28] sm:$0xff]   ;;  %v3385_v57 = vld [vmem:[#allocation2 + $0x20] sm:$0xff]   ;;  %v3386_v58 = vld [vmem:[#allocation2 + $0x18] sm:$0xff]  }
 0x15a   :  { %3076 = vmatprep.subr.bf16.mxu1 %v3828_v0  ;;  %v3387_v59 = vld [vmem:[#allocation2 + $0x10] sm:$0xff]   ;;  %v3388_v11 = vld [vmem:[#allocation2 + $0x8] sm:$0xff]   ;;  %v3389_v60 = vld [vmem:[#allocation2] sm:$0xff]  }
 0x15d   :  { %3077 = vmatpush3.bf16.msra.mxu1 %v3383_v55 }
 0x15e   :  { %3078 = vmatprep.subr.bf16.mxu1 %v3828_v0 }
 0x15f   :  { %3613 = shalt.err (!%p3944_p0)  }
 0x160   :  { %527 = dma.hbm_to_vmem [thread:$0]  %s4500_s5, 1024, %s3937_s18, [#allocation3]  ;;  %v4019_v61 = vpack.c.bf16 %v279_v53, %v279_v53  ;;  %v2791_v62 = vld [vmem:[#allocation6] ss:$0 sm:$0xff] }
 0x161   :  { %3079 = vmatpush3.bf16.msra.mxu1 %v3384_v56 }
 0x162   :  { %3080 = vmatprep.subr.bf16.mxu1 %v3828_v0 }
 0x165   :  { %3081 = vmatpush3.bf16.msra.mxu1 %v3385_v57 }
 0x166   :  { %3082 = vmatprep.subr.bf16.mxu1 %v3828_v0 }
 0x169   :  { %3083 = vmatpush3.bf16.msra.mxu1 %v3386_v58 }
 0x16a   :  { %3084 = vmatprep.subr.bf16.mxu1 %v3828_v0 }
 0x16d   :  { %3085 = vmatpush3.bf16.msra.mxu1 %v3387_v59 }
 0x16e   :  { %3086 = vmatprep.subr.bf16.mxu1 %v3828_v0 }
 0x171   :  { %3087 = vmatpush3.bf16.msra.mxu1 %v3388_v11 }
 0x172   :  { %3088 = vmatprep.subr.bf16.mxu1 %v3828_v0 }
 0x175   :  { %3089 = vmatpush3.bf16.msra.mxu1 %v3389_v60 }
 0x178   :  { %3091 = vmatmul.mubr.bf16.vlgmr.msra.gmra.mxu1 %v4019_v61 }
 0x238   :  { %v403_v63 = vpop.f32.mrf.mxu1 }
 0x239   :  { %v4022_v1 = vadd.f32 %v2791_v62, %v403_v63 }
 0x23a   :  { %v3092_v2 = vpop.f32.mrf.mxu1 }
 0x23b   :  { %v412_v3 = vand.u32 2139095040, %v4022_v1  ;;  %v409_v9 = vand.u32 2147483647, %v4022_v1  ;;  %vm411_vm6 = vcmp.lt.s32.totalorder %v4022_v1, 0  ;;  %vm501_vm11 = vweird.f32 %v4022_v1 }
 0x23c   :  { %v406_v4 = vpop.f32.mrf.mxu1 }
 0x23d   :  { %v413_v5 = vshrl.u32 %v412_v3, 23  ;;  %v416_v13 = vand.u32 8388607, %v409_v9  ;;  %vm410_vm7 = vcmp.le.f32.partialorder %v409_v9, 0.7853982 }
 0x23e   :  { %v3093_v6 = vpop.f32.mrf.mxu1 }
 0x23f   :  { %v2800_v7 = vadd.s32 4294967169, %v413_v5  ;;  %v417_v29 = vor.u32 8388608, %v416_v13 }
 0x241   :  { %v419_v8 = vadd.s32 1, %v2800_v7  ;;  %v457_v47 = vshll.u32 %v417_v29, 8 }
 0x243   :  { %vm420_vm14 = vcmp.gt.s32.totalorder %v419_v8, 0 }
 0x244   :  { %v421_v10 = vsel %vm420_vm14, %v419_v8, 0 }
 0x245   :  { %v423_v12 = vand.u32 31, %v421_v10  ;;  %v422_v15 = vshrl.u32 %v421_v10, 5 }
 0x247   :  { %v424_v14 = vsub.s32 32, %v423_v12  ;;  %v426_v16 = vshll.u32 %v3832_v25, %v423_v12  ;;  %v429_v17 = vshll.u32 %v3833_v27, %v423_v12  ;;  %v432_v21 = vshll.u32 %v3834_v30, %v423_v12 }
 0x248   :  { %v435_v23 = vshll.u32 %v3835_v33, %v423_v12  ;;  %v438_v26 = vshll.u32 %v3836_v36, %v423_v12  ;;  %vm441_vm15 = vcmp.lt.s32.totalorder %v422_v15, 1  ;;  %vm444_vm1 = vcmp.lt.s32.totalorder %v422_v15, 4 }
 0x249   :  { %v427_v18 = vshrl.u32 %v3833_v27, %v424_v14  ;;  %v430_v20 = vshrl.u32 %v3834_v30, %v424_v14  ;;  %v433_v22 = vshrl.u32 %v3835_v33, %v424_v14  ;;  %v436_v24 = vshrl.u32 %v3836_v36, %v424_v14 }
 0x24a   :  { %v439_v28 = vshrl.u32 %v3837_v39, %v424_v14  ;;  %v425_v42 = vshrl.u32 %v3832_v25, %v424_v14  ;;  %vm443_vm2 = vcmp.lt.s32.totalorder %v422_v15, 3  ;;  %vm442_vm3 = vcmp.lt.s32.totalorder %v422_v15, 2 }
 0x24b   :  { %v428_v31 = vor.u32 %v427_v18, %v426_v16  ;;  %v431_v32 = vor.u32 %v430_v20, %v429_v17  ;;  %v434_v34 = vor.u32 %v433_v22, %v432_v21  ;;  %v437_v35 = vor.u32 %v436_v24, %v435_v23 }
 0x24c   :  { %v440_v37 = vor.u32 %v439_v28, %v438_v26 }
 0x24d   :  { %v446_v38 = vsel %vm444_vm1, %v434_v34, 2102212464  ;;  %v449_v40 = vsel %vm441_vm15, %v428_v31, %v431_v32  ;;  %v453_v41 = vsel %vm441_vm15, %v431_v32, %v434_v34  ;;  %v450_v43 = vsel %vm444_vm1, %v437_v35, 920167782 }
 0x24e   :  { %v454_v44 = vsel %vm444_vm1, %v440_v37, 1326507024  ;;  %v451_v45 = vsel %vm443_vm2, %v434_v34, %v450_v43  ;;  %v445_v48 = vsel %vm441_vm15, %v425_v42, %v428_v31  ;;  %v447_v19 = vsel %vm443_vm2, %v431_v32, %v446_v38 }
 0x24f   :  { %v455_v46 = vsel %vm443_vm2, %v437_v35, %v454_v44  ;;  %v452_v49 = vsel %vm442_vm3, %v449_v40, %v451_v45  ;;  %v448_v55 = vsel %vm442_vm3, %v445_v48, %v447_v19 }
 0x250   :  { %v456_v50 = vsel %vm442_vm3, %v453_v41, %v455_v46  ;;  %v4042_v53 = vmul.u32.u64.low %v457_v47, %v452_v49  ;;  %v4043_v54 = vmul.u32.u64.high %v457_v47, %v452_v49, %v4042_v53  ;;  %v464_v57 = vmul.u32 %v457_v47, %v448_v55 }
 0x251   :  { %v4039_v51 = vmul.u32.u64.low %v457_v47, %v456_v50  ;;  %v4040_v52 = vmul.u32.u64.high %v457_v47, %v456_v50, %v4039_v51 }
 0x252   :  { %v467_v56 = vadd.s32 1, %v4043_v54 }
 0x253   :  { %vm466_vm4 = vc.u32 %v4040_v52, %v4042_v53  ;;  %v465_v7 = vadd.s32 %v4042_v53, %v4040_v52 }
 0x254   :  { %v468_v58 = vsel %vm466_vm4, %v467_v56, %v4043_v54 }
 0x255   :  { %v469_v59 = vadd.s32 %v468_v58, %v464_v57 }
 0x257   :  { %v470_v11 = vadd.s32 536870912, %v469_v59 }
 0x259   :  { %v471_v60 = vshrl.u32 %v470_v11, 30 }
 0x25b   :  { %v472_v62 = vshll.u32 %v471_v60, 30  ;;  %v495_v23 = vsub.s32 4, %v471_v60 }
 0x25d   :  { %v473_v63 = vsub.s32 %v469_v59, %v472_v62  ;;  %v496_v28 = vsel %vm411_vm6, %v495_v23, %v471_v60 }
 0x25e   :  { %v498_v29 = vsel %vm410_vm7, 0, %v496_v28 }
 0x25f   :  { %v475_v2 = vsub.s32 0, %v473_v63  ;;  %v502_v31 = vadd.s32 3, %v498_v29 }
 0x261   :  { %v2801_v3 = vmin.u32 %v475_v2, %v473_v63  ;;  %v503_v32 = vand.u32 3, %v502_v31 }
 0x263   :  { %v477_v4 = vclz %v2801_v3  ;;  %vm508_vm8 = vcmp.eq.s32.totalorder %v503_v32, 2  ;;  %vm505_vm9 = vcmp.eq.s32.totalorder %v503_v32, 0  ;;  %vm504_vm10 = vcmp.lt.s32.totalorder %v503_v32, 2 }
 0x265   :  { %v2802_v5 = vadd.s32 4294967294, %v477_v4 }
 0x267   :  { %vm2803_vm5 = vcmp.lt.s32.totalorder %v2802_v5, 0 }
 0x268   :  { %v480_v6 = vsel %vm2803_vm5, 0, %v2802_v5 }
 0x269   :  { %v481_v8 = vsub.s32 32, %v480_v6  ;;  %v485_v10 = vsub.s32 4294967266, %v480_v6  ;;  %v482_v12 = vshll.u32 %v473_v63, %v480_v6 }
 0x26b   :  { %v483_v13 = vshrl.u32 %v465_v7, %v481_v8  ;;  %v486_v14 = vadd.s32 127, %v485_v10 }
 0x26d   :  { %v484_v15 = vor.u32 %v483_v13, %v482_v12  ;;  %v487_v16 = vshll.u32 %v486_v14, 23 }
 0x26f   :  { %v488_v17 = vor.u32 4788187, %v487_v16  ;;  %v491_v20 = vcvt.s32.f32 %v484_v15 }
 0x271   :  { %v489_v18 = vand.u32 2147483647, %v488_v17 }
 0x273   :  { %v492_v21 = vmul.f32 %v491_v20, %v489_v18 }
 0x275   :  { %v493_v22 = vxor.u32 2147483648, %v492_v21 }
 0x277   :  { %v494_v24 = vsel %vm411_vm6, %v493_v22, %v492_v21 }
 0x278   :  { %v497_v26 = vsel %vm410_vm7, %v4022_v1, %v494_v24 }
 0x279   :  { %3390 = vcosq.f32 %v497_v26 }
 0x27a   :  { %3392 = vsinq.f32 %v497_v26 }
 0x286   :  { %v3391_v34 = vpop.eup %3390 }
 0x287   :  { %v3393_v35 = vpop.eup %3392  ;;  %v509_v37 = vxor.u32 2147483648, %v3391_v34 }
 0x288   :  { %v506_v38 = vxor.u32 2147483648, %v3393_v35 }
 0x289   :  { %v510_v40 = vsel %vm508_vm8, %v509_v37, %v3393_v35 }
 0x28a   :  { %v507_v41 = vsel %vm505_vm9, %v3391_v34, %v506_v38 }
 0x28b   :  { %v511_v9 = vsel %vm504_vm10, %v507_v41, %v510_v40 }
 0x28c   :  { %v512_v42 = vsel %vm501_vm11, nan, %v511_v9 }
 0x28d   :  { %v513_v43 = vmul.f32 %v512_v42, %v512_v42 }
 0x28f   :  { %v514_v44 = vadd.f32 %v513_v43, %v4022_v1 }
 0x291   :  { %v515_v45 = vmul.f32 0.1, %v514_v44 }
 0x293   :  { %v516_v46 = vmax.f32 %v515_v45, %v514_v44 }
 0x294   :  { %3800 = dma.done.wait [#allocation3 + $0x1], 1024 }
 0x295   :  { %3801 = vsyncadd [#allocation3 + $0x1], 4294966272  ;;  %3094 = vmatprep.subr.bf16.mxu0 %v3828_v0  ;;  %3110 = vmatprep.mubr.msk.bf16.mxu0 %vm3829_vm0, %v3828_v0  ;;  %v3394_v47 = vld [vmem:[#allocation2 + $0x78] sm:$0xff]   ;;  %v3395_v48 = vld [vmem:[#allocation2 + $0x70] sm:$0xff]  }
 0x296   :  { %3095 = vmatpush3.bf16.msra.mxu0 %v3394_v47  ;;  %v3396_v19 = vld [vmem:[#allocation2 + $0x68] sm:$0xff]   ;;  %v3397_v49 = vld [vmem:[#allocation2 + $0x60] sm:$0xff]   ;;  %v3398_v50 = vld [vmem:[#allocation2 + $0x58] sm:$0xff]  }
 0x297   :  { %3096 = vmatprep.subr.bf16.mxu0 %v3828_v0  ;;  %v3399_v51 = vld [vmem:[#allocation2 + $0x50] sm:$0xff]   ;;  %v3400_v1 = vld [vmem:[#allocation2 + $0x48] sm:$0xff]   ;;  %v3401_v52 = vld [vmem:[#allocation2 + $0x40] sm:$0xff]  }
 0x29a   :  { %3097 = vmatpush3.bf16.msra.mxu0 %v3395_v48 }
 0x29b   :  { %3098 = vmatprep.subr.bf16.mxu0 %v3828_v0 }
 0x29c   :  { %3633 = shalt.err (!%p3960_p5)  }
 0x29d   :  { %761 = dma.hbm_to_vmem [thread:$0]  %s4501_s6, 1024, %s3954_s20, [#allocation3 + $0x1]  ;;  %v548_v53 = vpack.c.bf16 %v516_v46, %v516_v46  ;;  %v2804_v54 = vld [vmem:[#allocation6 + $0x1] ss:$0 sm:$0xff] }
 0x29e   :  { %3099 = vmatpush3.bf16.msra.mxu0 %v3396_v19 }
 0x29f   :  { %3100 = vmatprep.subr.bf16.mxu0 %v3828_v0 }
 0x2a2   :  { %3101 = vmatpush3.bf16.msra.mxu0 %v3397_v49 }
 0x2a3   :  { %3102 = vmatprep.subr.bf16.mxu0 %v3828_v0 }
 0x2a6   :  { %3103 = vmatpush3.bf16.msra.mxu0 %v3398_v50 }
 0x2a7   :  { %3104 = vmatprep.subr.bf16.mxu0 %v3828_v0 }
 0x2aa   :  { %3105 = vmatpush3.bf16.msra.mxu0 %v3399_v51 }
 0x2ab   :  { %3106 = vmatprep.subr.bf16.mxu0 %v3828_v0 }
 0x2ae   :  { %3107 = vmatpush3.bf16.msra.mxu0 %v3400_v1 }
 0x2af   :  { %3108 = vmatprep.subr.bf16.mxu0 %v3828_v0 }
 0x2b2   :  { %3109 = vmatpush3.bf16.msra.mxu0 %v3401_v52 }
 0x2b5   :  { %3111 = vmatmul.mubr.bf16.vlgmr.msra.gmra.mxu0 %v548_v53 }
 0x375   :  { %v637_v55 = vpop.f32.mrf.mxu0 }
 0x376   :  { %v4071_v56 = vadd.f32 %v2804_v54, %v637_v55 }
 0x377   :  { %v3112_v57 = vpop.f32.mrf.mxu0 }
 0x378   :  { %v646_v58 = vand.u32 2139095040, %v4071_v56  ;;  %v643_v2 = vand.u32 2147483647, %v4071_v56  ;;  %vm645_vm4 = vcmp.lt.s32.totalorder %v4071_v56, 0  ;;  %vm735_vm9 = vweird.f32 %v4071_v56 }
 0x379   :  { %v640_v59 = vpop.f32.mrf.mxu0 }
 0x37a   :  { %v647_v11 = vshrl.u32 %v646_v58, 23  ;;  %v650_v5 = vand.u32 8388607, %v643_v2  ;;  %vm644_vm5 = vcmp.le.f32.partialorder %v643_v2, 0.7853982 }
 0x37b   :  { %v3113_v60 = vpop.f32.mrf.mxu0 }
 0x37c   :  { %v2813_v62 = vadd.s32 4294967169, %v647_v11  ;;  %v651_v21 = vor.u32 8388608, %v650_v5 }
 0x37e   :  { %v653_v63 = vadd.s32 1, %v2813_v62  ;;  %v691_v41 = vshll.u32 %v651_v21, 8 }
 0x380   :  { %vm654_vm12 = vcmp.gt.s32.totalorder %v653_v63, 0 }
 0x381   :  { %v655_v3 = vsel %vm654_vm12, %v653_v63, 0 }
 0x382   :  { %v657_v4 = vand.u32 31, %v655_v3  ;;  %v656_v7 = vshrl.u32 %v655_v3, 5 }
 0x384   :  { %v658_v6 = vsub.s32 32, %v657_v4  ;;  %v660_v8 = vshll.u32 %v3832_v25, %v657_v4  ;;  %v663_v10 = vshll.u32 %v3833_v27, %v657_v4  ;;  %v666_v14 = vshll.u32 %v3834_v30, %v657_v4 }
 0x385   :  { %v669_v16 = vshll.u32 %v3835_v33, %v657_v4  ;;  %v672_v18 = vshll.u32 %v3836_v36, %v657_v4  ;;  %vm675_vm13 = vcmp.lt.s32.totalorder %v656_v7, 1  ;;  %vm678_vm14 = vcmp.lt.s32.totalorder %v656_v7, 4 }
 0x386   :  { %v661_v12 = vshrl.u32 %v3833_v27, %v658_v6  ;;  %v664_v13 = vshrl.u32 %v3834_v30, %v658_v6  ;;  %v667_v15 = vshrl.u32 %v3835_v33, %v658_v6  ;;  %v670_v17 = vshrl.u32 %v3836_v36, %v658_v6 }
 0x387   :  { %v673_v20 = vshrl.u32 %v3837_v39, %v658_v6  ;;  %v659_v34 = vshrl.u32 %v3832_v25, %v658_v6  ;;  %vm677_vm15 = vcmp.lt.s32.totalorder %v656_v7, 3  ;;  %vm676_vm1 = vcmp.lt.s32.totalorder %v656_v7, 2 }
 0x388   :  { %v662_v22 = vor.u32 %v661_v12, %v660_v8  ;;  %v665_v23 = vor.u32 %v664_v13, %v663_v10  ;;  %v668_v24 = vor.u32 %v667_v15, %v666_v14  ;;  %v671_v26 = vor.u32 %v670_v17, %v669_v16 }
 0x389   :  { %v674_v28 = vor.u32 %v673_v20, %v672_v18 }
 0x38a   :  { %v680_v29 = vsel %vm678_vm14, %v668_v24, 2102212464  ;;  %v683_v31 = vsel %vm675_vm13, %v662_v22, %v665_v23  ;;  %v687_v32 = vsel %vm675_vm13, %v665_v23, %v668_v24  ;;  %v684_v35 = vsel %vm678_vm14, %v671_v26, 920167782 }
 0x38b   :  { %v688_v37 = vsel %vm678_vm14, %v674_v28, 1326507024  ;;  %v685_v38 = vsel %vm677_vm15, %v668_v24, %v684_v35  ;;  %v679_v9 = vsel %vm675_vm13, %v659_v34, %v662_v22  ;;  %v681_v42 = vsel %vm677_vm15, %v665_v23, %v680_v29 }
 0x38c   :  { %v689_v40 = vsel %vm677_vm15, %v671_v26, %v688_v37  ;;  %v686_v43 = vsel %vm676_vm1, %v683_v31, %v685_v38  ;;  %v682_v19 = vsel %vm676_vm1, %v679_v9, %v681_v42 }
 0x38d   :  { %v690_v44 = vsel %vm676_vm1, %v687_v32, %v689_v40  ;;  %v4091_v47 = vmul.u32.u64.low %v691_v41, %v686_v43  ;;  %v4092_v48 = vmul.u32.u64.high %v691_v41, %v686_v43, %v4091_v47  ;;  %v698_v50 = vmul.u32 %v691_v41, %v682_v19 }
 0x38e   :  { %v4088_v45 = vmul.u32.u64.low %v691_v41, %v690_v44  ;;  %v4089_v46 = vmul.u32.u64.high %v691_v41, %v690_v44, %v4088_v45 }
 0x38f   :  { %v701_v49 = vadd.s32 1, %v4092_v48 }
 0x390   :  { %vm700_vm2 = vc.u32 %v4089_v46, %v4091_v47  ;;  %v699_v62 = vadd.s32 %v4091_v47, %v4089_v46 }
 0x391   :  { %v702_v51 = vsel %vm700_vm2, %v701_v49, %v4092_v48 }
 0x392   :  { %v703_v1 = vadd.s32 %v702_v51, %v698_v50 }
 0x394   :  { %v704_v52 = vadd.s32 536870912, %v703_v1 }
 0x396   :  { %v705_v53 = vshrl.u32 %v704_v52, 30 }
 0x398   :  { %v706_v54 = vshll.u32 %v705_v53, 30  ;;  %v729_v16 = vsub.s32 4, %v705_v53 }
 0x39a   :  { %v707_v55 = vsub.s32 %v703_v1, %v706_v54  ;;  %v730_v20 = vsel %vm645_vm4, %v729_v16, %v705_v53 }
 0x39b   :  { %v732_v21 = vsel %vm644_vm5, 0, %v730_v20 }
 0x39c   :  { %v709_v57 = vsub.s32 0, %v707_v55  ;;  %v736_v22 = vadd.s32 3, %v732_v21 }
 0x39e   :  { %v2814_v58 = vmin.u32 %v709_v57, %v707_v55  ;;  %v737_v23 = vand.u32 3, %v736_v22 }
 0x3a0   :  { %v711_v59 = vclz %v2814_v58  ;;  %vm742_vm6 = vcmp.eq.s32.totalorder %v737_v23, 2  ;;  %vm739_vm7 = vcmp.eq.s32.totalorder %v737_v23, 0  ;;  %vm738_vm8 = vcmp.lt.s32.totalorder %v737_v23, 2 }
 0x3a2   :  { %v2815_v11 = vadd.s32 4294967294, %v711_v59 }
 0x3a4   :  { %vm2816_vm3 = vcmp.lt.s32.totalorder %v2815_v11, 0 }
 0x3a5   :  { %v714_v60 = vsel %vm2816_vm3, 0, %v2815_v11 }
 0x3a6   :  { %v715_v63 = vsub.s32 32, %v714_v60  ;;  %v719_v3 = vsub.s32 4294967266, %v714_v60  ;;  %v716_v4 = vshll.u32 %v707_v55, %v714_v60 }
 0x3a8   :  { %v717_v5 = vshrl.u32 %v699_v62, %v715_v63  ;;  %v720_v6 = vadd.s32 127, %v719_v3 }
 0x3aa   :  { %v718_v7 = vor.u32 %v717_v5, %v716_v4  ;;  %v721_v8 = vshll.u32 %v720_v6, 23 }
 0x3ac   :  { %v722_v10 = vor.u32 4788187, %v721_v8  ;;  %v725_v13 = vcvt.s32.f32 %v718_v7 }
 0x3ae   :  { %v723_v12 = vand.u32 2147483647, %v722_v10 }
 0x3b0   :  { %v726_v14 = vmul.f32 %v725_v13, %v723_v12 }
 0x3b2   :  { %v727_v15 = vxor.u32 2147483648, %v726_v14 }
 0x3b4   :  { %v728_v17 = vsel %vm645_vm4, %v727_v15, %v726_v14 }
 0x3b5   :  { %v731_v18 = vsel %vm644_vm5, %v4071_v56, %v728_v17 }
 0x3b6   :  { %3402 = vcosq.f32 %v731_v18 }
 0x3b7   :  { %3404 = vsinq.f32 %v731_v18 }
 0x3c3   :  { %v3403_v24 = vpop.eup %3402 }
 0x3c4   :  { %v3405_v26 = vpop.eup %3404  ;;  %v743_v28 = vxor.u32 2147483648, %v3403_v24 }
 0x3c5   :  { %v740_v29 = vxor.u32 2147483648, %v3405_v26 }
 0x3c6   :  { %v744_v31 = vsel %vm742_vm6, %v743_v28, %v3405_v26 }
 0x3c7   :  { %v741_v32 = vsel %vm739_vm7, %v3403_v24, %v740_v29 }
 0x3c8   :  { %v745_v2 = vsel %vm738_vm8, %v741_v32, %v744_v31 }
 0x3c9   :  { %v746_v34 = vsel %vm735_vm9, nan, %v745_v2 }
 0x3ca   :  { %v747_v35 = vmul.f32 %v746_v34, %v746_v34 }
 0x3cc   :  { %v748_v37 = vadd.f32 %v747_v35, %v4071_v56 }
 0x3ce   :  { %v749_v38 = vmul.f32 0.1, %v748_v37 }
 0x3d0   :  { %v750_v40 = vmax.f32 %v749_v38, %v748_v37 }
 0x3d1   :  { %3802 = dma.done.wait [#allocation3], 1024 }
 0x3d2   :  { %3803 = vsyncadd [#allocation3], 4294966272  ;;  %3114 = vmatprep.subr.bf16.mxu1 %v3828_v0  ;;  %3130 = vmatprep.mubr.msk.bf16.mxu1 %vm3829_vm0, %v3828_v0  ;;  %v3406_v41 = vld [vmem:[#allocation2 + $0x38] sm:$0xff]   ;;  %v3407_v9 = vld [vmem:[#allocation2 + $0x30] sm:$0xff]  }
 0x3d3   :  { %3115 = vmatpush3.bf16.msra.mxu1 %v3406_v41  ;;  %v3408_v42 = vld [vmem:[#allocation2 + $0x28] sm:$0xff]   ;;  %v3409_v43 = vld [vmem:[#allocation2 + $0x20] sm:$0xff]   ;;  %v3410_v44 = vld [vmem:[#allocation2 + $0x18] sm:$0xff]  }
 0x3d4   :  { %3116 = vmatprep.subr.bf16.mxu1 %v3828_v0  ;;  %v3411_v45 = vld [vmem:[#allocation2 + $0x10] sm:$0xff]   ;;  %v3412_v56 = vld [vmem:[#allocation2 + $0x8] sm:$0xff]   ;;  %v3413_v46 = vld [vmem:[#allocation2] sm:$0xff]  }
 0x3d7   :  { %3117 = vmatpush3.bf16.msra.mxu1 %v3407_v9 }
 0x3d8   :  { %3118 = vmatprep.subr.bf16.mxu1 %v3828_v0 }
 0x3d9   :  { %3653 = shalt.err (!%p3944_p0)  }
 0x3da   :  { %887 = dma.hbm_to_vmem [thread:$0]  %s4502_s7, 1024, %s3937_s18, [#allocation3]  ;;  %v782_v47 = vpack.c.bf16 %v750_v40, %v750_v40  ;;  %v2817_v48 = vld [vmem:[#allocation6 + $0x2] ss:$0 sm:$0xff] }
 0x3db   :  { %3119 = vmatpush3.bf16.msra.mxu1 %v3408_v42 }
 0x3dc   :  { %3120 = vmatprep.subr.bf16.mxu1 %v3828_v0 }
 0x3df   :  { %3121 = vmatpush3.bf16.msra.mxu1 %v3409_v43 }
 0x3e0   :  { %3122 = vmatprep.subr.bf16.mxu1 %v3828_v0 }
 0x3e3   :  { %3123 = vmatpush3.bf16.msra.mxu1 %v3410_v44 }
 0x3e4   :  { %3124 = vmatprep.subr.bf16.mxu1 %v3828_v0 }
 0x3e7   :  { %3125 = vmatpush3.bf16.msra.mxu1 %v3411_v45 }
 0x3e8   :  { %3126 = vmatprep.subr.bf16.mxu1 %v3828_v0 }
 0x3eb   :  { %3127 = vmatpush3.bf16.msra.mxu1 %v3412_v56 }
 0x3ec   :  { %3128 = vmatprep.subr.bf16.mxu1 %v3828_v0 }
 0x3ef   :  { %3129 = vmatpush3.bf16.msra.mxu1 %v3413_v46 }
 0x3f2   :  { %3131 = vmatmul.mubr.bf16.vlgmr.msra.gmra.mxu1 %v782_v47 }
 0x4b2   :  { %v871_v19 = vpop.f32.mrf.mxu1 }
 0x4b3   :  { %v872_v49 = vadd.f32 %v2817_v48, %v871_v19 }
 0x4b4   :  { %v3132_v50 = vpop.f32.mrf.mxu1 }
 0x4b6   :  { %v874_v51 = vpop.f32.mrf.mxu1 }
 0x4b8   :  { %v3133_v1 = vpop.f32.mrf.mxu1 }
 0x4b9   :  { %3804 = dma.done.wait [#allocation3 + $0x1], 1024 }
 0x4ba   :  { %3805 = vsyncadd [#allocation3 + $0x1], 4294966272  ;;  %3134 = vmatprep.subr.bf16.mxu0 %v3828_v0  ;;  %3150 = vmatprep.mubr.msk.bf16.mxu0 %vm3829_vm0, %v3828_v0  ;;  %v3414_v52 = vld [vmem:[#allocation2 + $0x78] sm:$0xff]   ;;  %v3415_v53 = vld [vmem:[#allocation2 + $0x70] sm:$0xff]  }
 0x4bb   :  { %3135 = vmatpush3.bf16.msra.mxu0 %v3414_v52  ;;  %v3416_v54 = vld [vmem:[#allocation2 + $0x68] sm:$0xff]   ;;  %v3417_v55 = vld [vmem:[#allocation2 + $0x60] sm:$0xff]   ;;  %v3418_v57 = vld [vmem:[#allocation2 + $0x58] sm:$0xff]  }
 0x4bc   :  { %3136 = vmatprep.subr.bf16.mxu0 %v3828_v0  ;;  %v3419_v58 = vld [vmem:[#allocation2 + $0x50] sm:$0xff]   ;;  %v3420_v59 = vld [vmem:[#allocation2 + $0x48] sm:$0xff]   ;;  %v3421_v11 = vld [vmem:[#allocation2 + $0x40] sm:$0xff]  }
 0x4bf   :  { %3137 = vmatpush3.bf16.msra.mxu0 %v3415_v53 }
 0x4c0   :  { %3138 = vmatprep.subr.bf16.mxu0 %v3828_v0 }
 0x4c1   :  { %3673 = shalt.err (!%p3960_p5)  }
 0x4c2   :  { %1122 = dma.hbm_to_vmem [thread:$0]  %s4503_s8, 1024, %s3954_s20, [#allocation3 + $0x1]  ;;  %v2834_v60 = vld [vmem:[#allocation6 + $0x3] ss:$0 sm:$0xff] }
 0x4c3   :  { %3139 = vmatpush3.bf16.msra.mxu0 %v3416_v54 }
 0x4c4   :  { %3140 = vmatprep.subr.bf16.mxu0 %v3828_v0 }
 0x4c7   :  { %3141 = vmatpush3.bf16.msra.mxu0 %v3417_v55 }
 0x4c8   :  { %3142 = vmatprep.subr.bf16.mxu0 %v3828_v0 }
 0x4cb   :  { %3143 = vmatpush3.bf16.msra.mxu0 %v3418_v57 }
 0x4cc   :  { %3144 = vmatprep.subr.bf16.mxu0 %v3828_v0 }
 0x4cf   :  { %3145 = vmatpush3.bf16.msra.mxu0 %v3419_v58 }
 0x4d0   :  { %3146 = vmatprep.subr.bf16.mxu0 %v3828_v0 }
 0x4d3   :  { %3147 = vmatpush3.bf16.msra.mxu0 %v3420_v59 }
 0x4d4   :  { %3148 = vmatprep.subr.bf16.mxu0 %v3828_v0 }
 0x4d7   :  { %3149 = vmatpush3.bf16.msra.mxu0 %v3421_v11 }
 0x4da   :  { %3151 = vmatmul.mubr.bf16.vlgmr.msra.gmra.mxu0 %v4019_v61 }
 0x59a   :  { %v990_v62 = vpop.f32.mrf.mxu0 }
 0x59b   :  { %v996_v63 = vadd.f32 %v990_v62, %v872_v49 }
 0x59c   :  { %v3152_v3 = vpop.f32.mrf.mxu0 }
 0x59d   :  { %v4137_v4 = vadd.f32 %v2834_v60, %v996_v63 }
 0x59e   :  { %v993_v5 = vpop.f32.mrf.mxu0 }
 0x59f   :  { %v1007_v6 = vand.u32 2139095040, %v4137_v4  ;;  %v1004_v13 = vand.u32 2147483647, %v4137_v4  ;;  %vm1006_vm2 = vcmp.lt.s32.totalorder %v4137_v4, 0  ;;  %vm1096_vm7 = vweird.f32 %v4137_v4 }
 0x5a0   :  { %v3153_v7 = vpop.f32.mrf.mxu0 }
 0x5a1   :  { %v1008_v8 = vshrl.u32 %v1007_v6, 23  ;;  %v1011_v61 = vand.u32 8388607, %v1004_v13  ;;  %vm1005_vm3 = vcmp.le.f32.partialorder %v1004_v13, 0.7853982 }
 0x5a3   :  { %v2835_v10 = vadd.s32 4294967169, %v1008_v8  ;;  %v1012_v32 = vor.u32 8388608, %v1011_v61 }
 0x5a5   :  { %v1014_v12 = vadd.s32 1, %v2835_v10  ;;  %v1052_v46 = vshll.u32 %v1012_v32, 8 }
 0x5a7   :  { %vm1015_vm10 = vcmp.gt.s32.totalorder %v1014_v12, 0 }
 0x5a8   :  { %v1016_v14 = vsel %vm1015_vm10, %v1014_v12, 0 }
 0x5a9   :  { %v1018_v15 = vand.u32 31, %v1016_v14  ;;  %v1017_v17 = vshrl.u32 %v1016_v14, 5 }
 0x5ab   :  { %v1019_v16 = vsub.s32 32, %v1018_v15  ;;  %v1021_v18 = vshll.u32 %v3832_v25, %v1018_v15  ;;  %v1024_v20 = vshll.u32 %v3833_v27, %v1018_v15  ;;  %v1027_v23 = vshll.u32 %v3834_v30, %v1018_v15 }
 0x5ac   :  { %v1030_v26 = vshll.u32 %v3835_v33, %v1018_v15  ;;  %v1033_v29 = vshll.u32 %v3836_v36, %v1018_v15  ;;  %vm1036_vm11 = vcmp.lt.s32.totalorder %v1017_v17, 1  ;;  %vm1039_vm12 = vcmp.lt.s32.totalorder %v1017_v17, 4 }
 0x5ad   :  { %v1022_v21 = vshrl.u32 %v3833_v27, %v1019_v16  ;;  %v1025_v22 = vshrl.u32 %v3834_v30, %v1019_v16  ;;  %v1028_v24 = vshrl.u32 %v3835_v33, %v1019_v16  ;;  %v1031_v28 = vshrl.u32 %v3836_v36, %v1019_v16 }
 0x5ae   :  { %v1034_v31 = vshrl.u32 %v3837_v39, %v1019_v16  ;;  %v1020_v42 = vshrl.u32 %v3832_v25, %v1019_v16  ;;  %vm1038_vm13 = vcmp.lt.s32.totalorder %v1017_v17, 3  ;;  %vm1037_vm14 = vcmp.lt.s32.totalorder %v1017_v17, 2 }
 0x5af   :  { %v1023_v2 = vor.u32 %v1022_v21, %v1021_v18  ;;  %v1026_v34 = vor.u32 %v1025_v22, %v1024_v20  ;;  %v1029_v35 = vor.u32 %v1028_v24, %v1027_v23  ;;  %v1032_v37 = vor.u32 %v1031_v28, %v1030_v26 }
 0x5b0   :  { %v1035_v38 = vor.u32 %v1034_v31, %v1033_v29 }
 0x5b1   :  { %v1041_v40 = vsel %vm1039_vm12, %v1029_v35, 2102212464  ;;  %v1044_v41 = vsel %vm1036_vm11, %v1023_v2, %v1026_v34  ;;  %v1048_v9 = vsel %vm1036_vm11, %v1026_v34, %v1029_v35  ;;  %v1045_v43 = vsel %vm1039_vm12, %v1032_v37, 920167782 }
 0x5b2   :  { %v1049_v44 = vsel %vm1039_vm12, %v1035_v38, 1326507024  ;;  %v1046_v45 = vsel %vm1038_vm13, %v1029_v35, %v1045_v43  ;;  %v1040_v47 = vsel %vm1036_vm11, %v1020_v42, %v1023_v2  ;;  %v1042_v48 = vsel %vm1038_vm13, %v1026_v34, %v1041_v40 }
 0x5b3   :  { %v1050_v56 = vsel %vm1038_vm13, %v1032_v37, %v1049_v44  ;;  %v1047_v19 = vsel %vm1037_vm14, %v1044_v41, %v1046_v45  ;;  %v1043_v53 = vsel %vm1037_vm14, %v1040_v47, %v1042_v48 }
 0x5b4   :  { %v1051_v49 = vsel %vm1037_vm14, %v1048_v9, %v1050_v56  ;;  %v4157_v1 = vmul.u32.u64.low %v1052_v46, %v1047_v19  ;;  %v4158_v52 = vmul.u32.u64.high %v1052_v46, %v1047_v19, %v4157_v1  ;;  %v1059_v55 = vmul.u32 %v1052_v46, %v1043_v53 }
 0x5b5   :  { %v4154_v50 = vmul.u32.u64.low %v1052_v46, %v1051_v49  ;;  %v4155_v51 = vmul.u32.u64.high %v1052_v46, %v1051_v49, %v4154_v50 }
 0x5b6   :  { %v1062_v54 = vadd.s32 1, %v4158_v52 }
 0x5b7   :  { %vm1061_vm15 = vc.u32 %v4155_v51, %v4157_v1  ;;  %v1060_v8 = vadd.s32 %v4157_v1, %v4155_v51 }
 0x5b8   :  { %v1063_v57 = vsel %vm1061_vm15, %v1062_v54, %v4158_v52 }
 0x5b9   :  { %v1064_v58 = vadd.s32 %v1063_v57, %v1059_v55 }
 0x5bb   :  { %v1065_v59 = vadd.s32 536870912, %v1064_v58 }
 0x5bd   :  { %v1066_v11 = vshrl.u32 %v1065_v59, 30 }
 0x5bf   :  { %v1067_v60 = vshll.u32 %v1066_v11, 30  ;;  %v1090_v24 = vsub.s32 4, %v1066_v11 }
 0x5c1   :  { %v1068_v62 = vsub.s32 %v1064_v58, %v1067_v60  ;;  %v1091_v29 = vsel %vm1006_vm2, %v1090_v24, %v1066_v11 }
 0x5c2   :  { %v1093_v31 = vsel %vm1005_vm3, 0, %v1091_v29 }
 0x5c3   :  { %v1070_v63 = vsub.s32 0, %v1068_v62  ;;  %v1097_v32 = vadd.s32 3, %v1093_v31 }
 0x5c5   :  { %v2836_v3 = vmin.u32 %v1070_v63, %v1068_v62  ;;  %v1098_v2 = vand.u32 3, %v1097_v32 }
 0x5c7   :  { %v1072_v5 = vclz %v2836_v3  ;;  %vm1103_vm4 = vcmp.eq.s32.totalorder %v1098_v2, 2  ;;  %vm1100_vm5 = vcmp.eq.s32.totalorder %v1098_v2, 0  ;;  %vm1099_vm6 = vcmp.lt.s32.totalorder %v1098_v2, 2 }
 0x5c9   :  { %v2837_v6 = vadd.s32 4294967294, %v1072_v5 }
 0x5cb   :  { %vm2838_vm1 = vcmp.lt.s32.totalorder %v2837_v6, 0 }
 0x5cc   :  { %v1075_v7 = vsel %vm2838_vm1, 0, %v2837_v6 }
 0x5cd   :  { %v1076_v10 = vsub.s32 32, %v1075_v7  ;;  %v1080_v12 = vsub.s32 4294967266, %v1075_v7  ;;  %v1077_v14 = vshll.u32 %v1068_v62, %v1075_v7 }
 0x5cf   :  { %v1078_v15 = vshrl.u32 %v1060_v8, %v1076_v10  ;;  %v1081_v61 = vadd.s32 127, %v1080_v12 }
 0x5d1   :  { %v1079_v16 = vor.u32 %v1078_v15, %v1077_v14  ;;  %v1082_v17 = vshll.u32 %v1081_v61, 23 }
 0x5d3   :  { %v1083_v18 = vor.u32 4788187, %v1082_v17  ;;  %v1086_v21 = vcvt.s32.f32 %v1079_v16 }
 0x5d5   :  { %v1084_v20 = vand.u32 2147483647, %v1083_v18 }
 0x5d7   :  { %v1087_v22 = vmul.f32 %v1086_v21, %v1084_v20 }
 0x5d9   :  { %v1088_v23 = vxor.u32 2147483648, %v1087_v22 }
 0x5db   :  { %v1089_v26 = vsel %vm1006_vm2, %v1088_v23, %v1087_v22 }
 0x5dc   :  { %v1092_v28 = vsel %vm1005_vm3, %v4137_v4, %v1089_v26 }
 0x5dd   :  { %3422 = vcosq.f32 %v1092_v28 }
 0x5de   :  { %3424 = vsinq.f32 %v1092_v28 }
 0x5ea   :  { %v3423_v34 = vpop.eup %3422 }
 0x5eb   :  { %v3425_v35 = vpop.eup %3424  ;;  %v1104_v37 = vxor.u32 2147483648, %v3423_v34 }
 0x5ec   :  { %v1101_v38 = vxor.u32 2147483648, %v3425_v35 }
 0x5ed   :  { %v1105_v40 = vsel %vm1103_vm4, %v1104_v37, %v3425_v35 }
 0x5ee   :  { %v1102_v41 = vsel %vm1100_vm5, %v3423_v34, %v1101_v38 }
 0x5ef   :  { %v1106_v13 = vsel %vm1099_vm6, %v1102_v41, %v1105_v40 }
 0x5f0   :  { %v1107_v9 = vsel %vm1096_vm7, nan, %v1106_v13 }
 0x5f1   :  { %v1108_v42 = vmul.f32 %v1107_v9, %v1107_v9 }
 0x5f3   :  { %v1109_v43 = vadd.f32 %v1108_v42, %v4137_v4 }
 0x5f5   :  { %v1110_v44 = vmul.f32 0.1, %v1109_v43 }
 0x5f7   :  { %v1111_v45 = vmax.f32 %v1110_v44, %v1109_v43 }
 0x5f8   :  { %3806 = dma.done.wait [#allocation3], 1024 }
 0x5f9   :  { %3807 = vsyncadd [#allocation3], 4294966272  ;;  %3154 = vmatprep.subr.bf16.mxu1 %v3828_v0  ;;  %3170 = vmatprep.mubr.msk.bf16.mxu1 %vm3829_vm0, %v3828_v0  ;;  %v3426_v56 = vld [vmem:[#allocation2 + $0x38] sm:$0xff]   ;;  %v3427_v46 = vld [vmem:[#allocation2 + $0x30] sm:$0xff]  }
 0x5fa   :  { %3155 = vmatpush3.bf16.msra.mxu1 %v3426_v56  ;;  %v3428_v47 = vld [vmem:[#allocation2 + $0x28] sm:$0xff]   ;;  %v3429_v48 = vld [vmem:[#allocation2 + $0x20] sm:$0xff]   ;;  %v3430_v19 = vld [vmem:[#allocation2 + $0x18] sm:$0xff]  }
 0x5fb   :  { %3156 = vmatprep.subr.bf16.mxu1 %v3828_v0  ;;  %v3431_v49 = vld [vmem:[#allocation2 + $0x10] sm:$0xff]   ;;  %v3432_v4 = vld [vmem:[#allocation2 + $0x8] sm:$0xff]   ;;  %v3433_v50 = vld [vmem:[#allocation2] sm:$0xff]  }
 0x5fe   :  { %3157 = vmatpush3.bf16.msra.mxu1 %v3427_v46 }
 0x5ff   :  { %3158 = vmatprep.subr.bf16.mxu1 %v3828_v0 }
 0x600   :  { %3693 = shalt.err (!%p3944_p0)  }
 0x601   :  { %1356 = dma.hbm_to_vmem [thread:$0]  %s4504_s9, 1024, %s3937_s18, [#allocation3]  ;;  %v4186_v51 = vpack.c.bf16 %v1111_v45, %v1111_v45  ;;  %v2839_v1 = vld [vmem:[#allocation6 + $0x4] ss:$0 sm:$0xff] }
 0x602   :  { %3159 = vmatpush3.bf16.msra.mxu1 %v3428_v47 }
 0x603   :  { %3160 = vmatprep.subr.bf16.mxu1 %v3828_v0 }
 0x606   :  { %3161 = vmatpush3.bf16.msra.mxu1 %v3429_v48 }
 0x607   :  { %3162 = vmatprep.subr.bf16.mxu1 %v3828_v0 }
 0x60a   :  { %3163 = vmatpush3.bf16.msra.mxu1 %v3430_v19 }
 0x60b   :  { %3164 = vmatprep.subr.bf16.mxu1 %v3828_v0 }
 0x60e   :  { %3165 = vmatpush3.bf16.msra.mxu1 %v3431_v49 }
 0x60f   :  { %3166 = vmatprep.subr.bf16.mxu1 %v3828_v0 }
 0x612   :  { %3167 = vmatpush3.bf16.msra.mxu1 %v3432_v4 }
 0x613   :  { %3168 = vmatprep.subr.bf16.mxu1 %v3828_v0 }
 0x616   :  { %3169 = vmatpush3.bf16.msra.mxu1 %v3433_v50 }
 0x619   :  { %3171 = vmatmul.mubr.bf16.vlgmr.msra.gmra.mxu1 %v4186_v51 }
 0x6d9   :  { %v1232_v52 = vpop.f32.mrf.mxu1 }
 0x6da   :  { %v4189_v53 = vadd.f32 %v2839_v1, %v1232_v52 }
 0x6db   :  { %v3172_v54 = vpop.f32.mrf.mxu1 }
 0x6dc   :  { %v1241_v55 = vand.u32 2139095040, %v4189_v53  ;;  %v1238_v62 = vand.u32 2147483647, %v4189_v53  ;;  %vm1240_vm15 = vcmp.lt.s32.totalorder %v4189_v53, 0  ;;  %vm1330_vm5 = vweird.f32 %v4189_v53 }
 0x6dd   :  { %v1235_v57 = vpop.f32.mrf.mxu1 }
 0x6de   :  { %v1242_v58 = vshrl.u32 %v1241_v55, 23  ;;  %v1245_v5 = vand.u32 8388607, %v1238_v62  ;;  %vm1239_vm1 = vcmp.le.f32.partialorder %v1238_v62, 0.7853982 }
 0x6df   :  { %v3173_v59 = vpop.f32.mrf.mxu1 }
 0x6e0   :  { %v2848_v11 = vadd.s32 4294967169, %v1242_v58  ;;  %v1246_v21 = vor.u32 8388608, %v1245_v5 }
 0x6e2   :  { %v1248_v60 = vadd.s32 1, %v2848_v11  ;;  %v1286_v40 = vshll.u32 %v1246_v21, 8 }
 0x6e4   :  { %vm1249_vm8 = vcmp.gt.s32.totalorder %v1248_v60, 0 }
 0x6e5   :  { %v1250_v63 = vsel %vm1249_vm8, %v1248_v60, 0 }
 0x6e6   :  { %v1252_v3 = vand.u32 31, %v1250_v63  ;;  %v1251_v7 = vshrl.u32 %v1250_v63, 5 }
 0x6e8   :  { %v1253_v6 = vsub.s32 32, %v1252_v3  ;;  %v1255_v8 = vshll.u32 %v3832_v25, %v1252_v3  ;;  %v1258_v10 = vshll.u32 %v3833_v27, %v1252_v3  ;;  %v1261_v15 = vshll.u32 %v3834_v30, %v1252_v3 }
 0x6e9   :  { %v1264_v16 = vshll.u32 %v3835_v33, %v1252_v3  ;;  %v1267_v18 = vshll.u32 %v3836_v36, %v1252_v3  ;;  %vm1270_vm9 = vcmp.lt.s32.totalorder %v1251_v7, 1  ;;  %vm1273_vm10 = vcmp.lt.s32.totalorder %v1251_v7, 4 }
 0x6ea   :  { %v1256_v12 = vshrl.u32 %v3833_v27, %v1253_v6  ;;  %v1259_v14 = vshrl.u32 %v3834_v30, %v1253_v6  ;;  %v1262_v61 = vshrl.u32 %v3835_v33, %v1253_v6  ;;  %v1265_v17 = vshrl.u32 %v3836_v36, %v1253_v6 }
 0x6eb   :  { %v1268_v20 = vshrl.u32 %v3837_v39, %v1253_v6  ;;  %v1254_v2 = vshrl.u32 %v3832_v25, %v1253_v6  ;;  %vm1272_vm11 = vcmp.lt.s32.totalorder %v1251_v7, 3  ;;  %vm1271_vm12 = vcmp.lt.s32.totalorder %v1251_v7, 2 }
 0x6ec   :  { %v1257_v22 = vor.u32 %v1256_v12, %v1255_v8  ;;  %v1260_v23 = vor.u32 %v1259_v14, %v1258_v10  ;;  %v1263_v24 = vor.u32 %v1262_v61, %v1261_v15  ;;  %v1266_v26 = vor.u32 %v1265_v17, %v1264_v16 }
 0x6ed   :  { %v1269_v28 = vor.u32 %v1268_v20, %v1267_v18 }
 0x6ee   :  { %v1275_v29 = vsel %vm1273_vm10, %v1263_v24, 2102212464  ;;  %v1278_v31 = vsel %vm1270_vm9, %v1257_v22, %v1260_v23  ;;  %v1282_v32 = vsel %vm1270_vm9, %v1260_v23, %v1263_v24  ;;  %v1279_v34 = vsel %vm1273_vm10, %v1266_v26, 920167782 }
 0x6ef   :  { %v1283_v35 = vsel %vm1273_vm10, %v1269_v28, 1326507024  ;;  %v1280_v37 = vsel %vm1272_vm11, %v1263_v24, %v1279_v34  ;;  %v1274_v41 = vsel %vm1270_vm9, %v1254_v2, %v1257_v22  ;;  %v1276_v13 = vsel %vm1272_vm11, %v1260_v23, %v1275_v29 }
 0x6f0   :  { %v1284_v38 = vsel %vm1272_vm11, %v1266_v26, %v1283_v35  ;;  %v1281_v9 = vsel %vm1271_vm12, %v1278_v31, %v1280_v37  ;;  %v1277_v46 = vsel %vm1271_vm12, %v1274_v41, %v1276_v13 }
 0x6f1   :  { %v1285_v42 = vsel %vm1271_vm12, %v1282_v32, %v1284_v38  ;;  %v4209_v45 = vmul.u32.u64.low %v1286_v40, %v1281_v9  ;;  %v4210_v56 = vmul.u32.u64.high %v1286_v40, %v1281_v9, %v4209_v45  ;;  %v1293_v48 = vmul.u32 %v1286_v40, %v1277_v46 }
 0x6f2   :  { %v4206_v43 = vmul.u32.u64.low %v1286_v40, %v1285_v42  ;;  %v4207_v44 = vmul.u32.u64.high %v1286_v40, %v1285_v42, %v4206_v43 }
 0x6f3   :  { %v1296_v47 = vadd.s32 1, %v4210_v56 }
 0x6f4   :  { %vm1295_vm13 = vc.u32 %v4207_v44, %v4209_v45  ;;  %v1294_v11 = vadd.s32 %v4209_v45, %v4207_v44 }
 0x6f5   :  { %v1297_v19 = vsel %vm1295_vm13, %v1296_v47, %v4210_v56 }
 0x6f6   :  { %v1298_v49 = vadd.s32 %v1297_v19, %v1293_v48 }
 0x6f8   :  { %v1299_v4 = vadd.s32 536870912, %v1298_v49 }
 0x6fa   :  { %v1300_v50 = vshrl.u32 %v1299_v4, 30 }
 0x6fc   :  { %v1301_v1 = vshll.u32 %v1300_v50, 30  ;;  %v1324_v16 = vsub.s32 4, %v1300_v50 }
 0x6fe   :  { %v1302_v52 = vsub.s32 %v1298_v49, %v1301_v1  ;;  %v1325_v20 = vsel %vm1240_vm15, %v1324_v16, %v1300_v50 }
 0x6ff   :  { %v1327_v21 = vsel %vm1239_vm1, 0, %v1325_v20 }
 0x700   :  { %v1304_v54 = vsub.s32 0, %v1302_v52  ;;  %v1331_v22 = vadd.s32 3, %v1327_v21 }
 0x702   :  { %v2849_v55 = vmin.u32 %v1304_v54, %v1302_v52  ;;  %v1332_v23 = vand.u32 3, %v1331_v22 }
 0x704   :  { %v1306_v57 = vclz %v2849_v55  ;;  %vm1337_vm2 = vcmp.eq.s32.totalorder %v1332_v23, 2  ;;  %vm1334_vm3 = vcmp.eq.s32.totalorder %v1332_v23, 0  ;;  %vm1333_vm4 = vcmp.lt.s32.totalorder %v1332_v23, 2 }
 0x706   :  { %v2850_v58 = vadd.s32 4294967294, %v1306_v57 }
 0x708   :  { %vm2851_vm14 = vcmp.lt.s32.totalorder %v2850_v58, 0 }
 0x709   :  { %v1309_v59 = vsel %vm2851_vm14, 0, %v2850_v58 }
 0x70a   :  { %v1310_v60 = vsub.s32 32, %v1309_v59  ;;  %v1314_v63 = vsub.s32 4294967266, %v1309_v59  ;;  %v1311_v3 = vshll.u32 %v1302_v52, %v1309_v59 }
 0x70c   :  { %v1312_v5 = vshrl.u32 %v1294_v11, %v1310_v60  ;;  %v1315_v6 = vadd.s32 127, %v1314_v63 }
 0x70e   :  { %v1313_v7 = vor.u32 %v1312_v5, %v1311_v3  ;;  %v1316_v8 = vshll.u32 %v1315_v6, 23 }
 0x710   :  { %v1317_v10 = vor.u32 4788187, %v1316_v8  ;;  %v1320_v14 = vcvt.s32.f32 %v1313_v7 }
 0x712   :  { %v1318_v12 = vand.u32 2147483647, %v1317_v10 }
 0x714   :  { %v1321_v15 = vmul.f32 %v1320_v14, %v1318_v12 }
 0x716   :  { %v1322_v61 = vxor.u32 2147483648, %v1321_v15 }
 0x718   :  { %v1323_v17 = vsel %vm1240_vm15, %v1322_v61, %v1321_v15 }
 0x719   :  { %v1326_v18 = vsel %vm1239_vm1, %v4189_v53, %v1323_v17 }
 0x71a   :  { %3434 = vcosq.f32 %v1326_v18 }
 0x71b   :  { %3436 = vsinq.f32 %v1326_v18 }
 0x727   :  { %v3435_v24 = vpop.eup %3434 }
 0x728   :  { %v3437_v26 = vpop.eup %3436  ;;  %v1338_v28 = vxor.u32 2147483648, %v3435_v24 }
 0x729   :  { %v1335_v29 = vxor.u32 2147483648, %v3437_v26 }
 0x72a   :  { %v1339_v31 = vsel %vm1337_vm2, %v1338_v28, %v3437_v26 }
 0x72b   :  { %v1336_v32 = vsel %vm1334_vm3, %v3435_v24, %v1335_v29 }
 0x72c   :  { %v1340_v62 = vsel %vm1333_vm4, %v1336_v32, %v1339_v31 }
 0x72d   :  { %v1341_v2 = vsel %vm1330_vm5, nan, %v1340_v62 }
 0x72e   :  { %v1342_v34 = vmul.f32 %v1341_v2, %v1341_v2 }
 0x730   :  { %v1343_v35 = vadd.f32 %v1342_v34, %v4189_v53 }
 0x732   :  { %v1344_v37 = vmul.f32 0.1, %v1343_v35 }
 0x734   :  { %v1345_v38 = vmax.f32 %v1344_v37, %v1343_v35 }
 0x735   :  { %3808 = dma.done.wait [#allocation3 + $0x1], 1024 }
 0x736   :  { %3809 = vsyncadd [#allocation3 + $0x1], 4294966272  ;;  %3174 = vmatprep.subr.bf16.mxu0 %v3828_v0  ;;  %3190 = vmatprep.mubr.msk.bf16.mxu0 %vm3829_vm0, %v3828_v0  ;;  %v3438_v40 = vld [vmem:[#allocation2 + $0x78] sm:$0xff]   ;;  %v3439_v41 = vld [vmem:[#allocation2 + $0x70] sm:$0xff]  }
 0x737   :  { %3175 = vmatpush3.bf16.msra.mxu0 %v3438_v40  ;;  %v3440_v13 = vld [vmem:[#allocation2 + $0x68] sm:$0xff]   ;;  %v3441_v9 = vld [vmem:[#allocation2 + $0x60] sm:$0xff]   ;;  %v3442_v42 = vld [vmem:[#allocation2 + $0x58] sm:$0xff]  }
 0x738   :  { %3176 = vmatprep.subr.bf16.mxu0 %v3828_v0  ;;  %v3443_v43 = vld [vmem:[#allocation2 + $0x50] sm:$0xff]   ;;  %v3444_v53 = vld [vmem:[#allocation2 + $0x48] sm:$0xff]   ;;  %v3445_v44 = vld [vmem:[#allocation2 + $0x40] sm:$0xff]  }
 0x73b   :  { %3177 = vmatpush3.bf16.msra.mxu0 %v3439_v41 }
 0x73c   :  { %3178 = vmatprep.subr.bf16.mxu0 %v3828_v0 }
 0x73d   :  { %3713 = shalt.err (!%p3960_p5)  }
 0x73e   :  { %1590 = dma.hbm_to_vmem [thread:$0]  %s4505_s10, 1024, %s3954_s20, [#allocation3 + $0x1]  ;;  %v1377_v45 = vpack.c.bf16 %v1345_v38, %v1345_v38  ;;  %v2852_v56 = vld [vmem:[#allocation6 + $0x5] ss:$0 sm:$0xff] }
 0x73f   :  { %3179 = vmatpush3.bf16.msra.mxu0 %v3440_v13 }
 0x740   :  { %3180 = vmatprep.subr.bf16.mxu0 %v3828_v0 }
 0x743   :  { %3181 = vmatpush3.bf16.msra.mxu0 %v3441_v9 }
 0x744   :  { %3182 = vmatprep.subr.bf16.mxu0 %v3828_v0 }
 0x747   :  { %3183 = vmatpush3.bf16.msra.mxu0 %v3442_v42 }
 0x748   :  { %3184 = vmatprep.subr.bf16.mxu0 %v3828_v0 }
 0x74b   :  { %3185 = vmatpush3.bf16.msra.mxu0 %v3443_v43 }
 0x74c   :  { %3186 = vmatprep.subr.bf16.mxu0 %v3828_v0 }
 0x74f   :  { %3187 = vmatpush3.bf16.msra.mxu0 %v3444_v53 }
 0x750   :  { %3188 = vmatprep.subr.bf16.mxu0 %v3828_v0 }
 0x753   :  { %3189 = vmatpush3.bf16.msra.mxu0 %v3445_v44 }
 0x756   :  { %3191 = vmatmul.mubr.bf16.vlgmr.msra.gmra.mxu0 %v1377_v45 }
 0x816   :  { %v1466_v46 = vpop.f32.mrf.mxu0 }
 0x817   :  { %v4238_v47 = vadd.f32 %v2852_v56, %v1466_v46 }
 0x818   :  { %v3192_v48 = vpop.f32.mrf.mxu0 }
 0x819   :  { %v1475_v19 = vand.u32 2139095040, %v4238_v47  ;;  %v1472_v54 = vand.u32 2147483647, %v4238_v47  ;;  %vm1474_vm13 = vcmp.lt.s32.totalorder %v4238_v47, 0  ;;  %vm1564_vm3 = vweird.f32 %v4238_v47 }
 0x81a   :  { %v1469_v49 = vpop.f32.mrf.mxu0 }
 0x81b   :  { %v1476_v4 = vshrl.u32 %v1475_v19, 23  ;;  %v1479_v58 = vand.u32 8388607, %v1472_v54  ;;  %vm1473_vm14 = vcmp.le.f32.partialorder %v1472_v54, 0.7853982 }
 0x81c   :  { %v3193_v50 = vpop.f32.mrf.mxu0 }
 0x81d   :  { %v2861_v1 = vadd.s32 4294967169, %v1476_v4  ;;  %v1480_v15 = vor.u32 8388608, %v1479_v58 }
 0x81f   :  { %v1482_v52 = vadd.s32 1, %v2861_v1  ;;  %v1520_v32 = vshll.u32 %v1480_v15, 8 }
 0x821   :  { %vm1483_vm6 = vcmp.gt.s32.totalorder %v1482_v52, 0 }
 0x822   :  { %v1484_v55 = vsel %vm1483_vm6, %v1482_v52, 0 }
 0x823   :  { %v1486_v57 = vand.u32 31, %v1484_v55  ;;  %v1485_v11 = vshrl.u32 %v1484_v55, 5 }
 0x825   :  { %v1487_v59 = vsub.s32 32, %v1486_v57  ;;  %v1489_v60 = vshll.u32 %v3832_v25, %v1486_v57  ;;  %v1492_v63 = vshll.u32 %v3833_v27, %v1486_v57  ;;  %v1495_v6 = vshll.u32 %v3834_v30, %v1486_v57 }
 0x826   :  { %v1498_v8 = vshll.u32 %v3835_v33, %v1486_v57  ;;  %v1501_v12 = vshll.u32 %v3836_v36, %v1486_v57  ;;  %vm1504_vm7 = vcmp.lt.s32.totalorder %v1485_v11, 1  ;;  %vm1507_vm8 = vcmp.lt.s32.totalorder %v1485_v11, 4 }
 0x827   :  { %v1490_v3 = vshrl.u32 %v3833_v27, %v1487_v59  ;;  %v1493_v5 = vshrl.u32 %v3834_v30, %v1487_v59  ;;  %v1496_v7 = vshrl.u32 %v3835_v33, %v1487_v59  ;;  %v1499_v10 = vshrl.u32 %v3836_v36, %v1487_v59 }
 0x828   :  { %v1502_v14 = vshrl.u32 %v3837_v39, %v1487_v59  ;;  %v1488_v24 = vshrl.u32 %v3832_v25, %v1487_v59  ;;  %vm1506_vm9 = vcmp.lt.s32.totalorder %v1485_v11, 3  ;;  %vm1505_vm10 = vcmp.lt.s32.totalorder %v1485_v11, 2 }
 0x829   :  { %v1491_v61 = vor.u32 %v1490_v3, %v1489_v60  ;;  %v1494_v16 = vor.u32 %v1493_v5, %v1492_v63  ;;  %v1497_v17 = vor.u32 %v1496_v7, %v1495_v6  ;;  %v1500_v18 = vor.u32 %v1499_v10, %v1498_v8 }
 0x82a   :  { %v1503_v20 = vor.u32 %v1502_v14, %v1501_v12 }
 0x82b   :  { %v1509_v21 = vsel %vm1507_vm8, %v1497_v17, 2102212464  ;;  %v1512_v22 = vsel %vm1504_vm7, %v1491_v61, %v1494_v16  ;;  %v1516_v23 = vsel %vm1504_vm7, %v1494_v16, %v1497_v17  ;;  %v1513_v26 = vsel %vm1507_vm8, %v1500_v18, 920167782 }
 0x82c   :  { %v1517_v28 = vsel %vm1507_vm8, %v1503_v20, 1326507024  ;;  %v1514_v29 = vsel %vm1506_vm9, %v1497_v17, %v1513_v26  ;;  %v1508_v62 = vsel %vm1504_vm7, %v1488_v24, %v1491_v61  ;;  %v1510_v2 = vsel %vm1506_vm9, %v1494_v16, %v1509_v21 }
 0x82d   :  { %v1518_v31 = vsel %vm1506_vm9, %v1500_v18, %v1517_v28  ;;  %v1515_v34 = vsel %vm1505_vm10, %v1512_v22, %v1514_v29  ;;  %v1511_v13 = vsel %vm1505_vm10, %v1508_v62, %v1510_v2 }
 0x82e   :  { %v1519_v35 = vsel %vm1505_vm10, %v1516_v23, %v1518_v31  ;;  %v4258_v40 = vmul.u32.u64.low %v1520_v32, %v1515_v34  ;;  %v4259_v41 = vmul.u32.u64.high %v1520_v32, %v1515_v34, %v4258_v40  ;;  %v1527_v42 = vmul.u32 %v1520_v32, %v1511_v13 }
 0x82f   :  { %v4255_v37 = vmul.u32.u64.low %v1520_v32, %v1519_v35  ;;  %v4256_v38 = vmul.u32.u64.high %v1520_v32, %v1519_v35, %v4255_v37 }
 0x830   :  { %v1530_v9 = vadd.s32 1, %v4259_v41 }
 0x831   :  { %vm1529_vm11 = vc.u32 %v4256_v38, %v4258_v40  ;;  %v1528_v1 = vadd.s32 %v4258_v40, %v4256_v38 }
 0x832   :  { %v1531_v43 = vsel %vm1529_vm11, %v1530_v9, %v4259_v41 }
 0x833   :  { %v1532_v53 = vadd.s32 %v1531_v43, %v1527_v42 }
 0x835   :  { %v1533_v44 = vadd.s32 536870912, %v1532_v53 }
 0x837   :  { %v1534_v45 = vshrl.u32 %v1533_v44, 30 }
 0x839   :  { %v1535_v56 = vshll.u32 %v1534_v45, 30  ;;  %v1558_v8 = vsub.s32 4, %v1534_v45 }
 0x83b   :  { %v1536_v46 = vsub.s32 %v1532_v53, %v1535_v56  ;;  %v1559_v14 = vsel %vm1474_vm13, %v1558_v8, %v1534_v45 }
 0x83c   :  { %v1561_v15 = vsel %vm1473_vm14, 0, %v1559_v14 }
 0x83d   :  { %v1538_v48 = vsub.s32 0, %v1536_v46  ;;  %v1565_v61 = vadd.s32 3, %v1561_v15 }
 0x83f   :  { %v2862_v19 = vmin.u32 %v1538_v48, %v1536_v46  ;;  %v1566_v16 = vand.u32 3, %v1565_v61 }
 0x841   :  { %v1540_v49 = vclz %v2862_v19  ;;  %vm1571_vm15 = vcmp.eq.s32.totalorder %v1566_v16, 2  ;;  %vm1568_vm1 = vcmp.eq.s32.totalorder %v1566_v16, 0  ;;  %vm1567_vm2 = vcmp.lt.s32.totalorder %v1566_v16, 2 }
 0x843   :  { %v2863_v4 = vadd.s32 4294967294, %v1540_v49 }
 0x845   :  { %vm2864_vm12 = vcmp.lt.s32.totalorder %v2863_v4, 0 }
 0x846   :  { %v1543_v50 = vsel %vm2864_vm12, 0, %v2863_v4 }
 0x847   :  { %v1544_v52 = vsub.s32 32, %v1543_v50  ;;  %v1548_v55 = vsub.s32 4294967266, %v1543_v50  ;;  %v1545_v57 = vshll.u32 %v1536_v46, %v1543_v50 }
 0x849   :  { %v1546_v58 = vshrl.u32 %v1528_v1, %v1544_v52  ;;  %v1549_v59 = vadd.s32 127, %v1548_v55 }
 0x84b   :  { %v1547_v11 = vor.u32 %v1546_v58, %v1545_v57  ;;  %v1550_v60 = vshll.u32 %v1549_v59, 23 }
 0x84d   :  { %v1551_v63 = vor.u32 4788187, %v1550_v60  ;;  %v1554_v5 = vcvt.s32.f32 %v1547_v11 }
 0x84f   :  { %v1552_v3 = vand.u32 2147483647, %v1551_v63 }
 0x851   :  { %v1555_v6 = vmul.f32 %v1554_v5, %v1552_v3 }
 0x853   :  { %v1556_v7 = vxor.u32 2147483648, %v1555_v6 }
 0x855   :  { %v1557_v10 = vsel %vm1474_vm13, %v1556_v7, %v1555_v6 }
 0x856   :  { %v1560_v12 = vsel %vm1473_vm14, %v4238_v47, %v1557_v10 }
 0x857   :  { %3446 = vcosq.f32 %v1560_v12 }
 0x858   :  { %3448 = vsinq.f32 %v1560_v12 }
 0x864   :  { %v3447_v17 = vpop.eup %3446 }
 0x865   :  { %v3449_v18 = vpop.eup %3448  ;;  %v1572_v20 = vxor.u32 2147483648, %v3447_v17 }
 0x866   :  { %v1569_v21 = vxor.u32 2147483648, %v3449_v18 }
 0x867   :  { %v1573_v22 = vsel %vm1571_vm15, %v1572_v20, %v3449_v18 }
 0x868   :  { %v1570_v23 = vsel %vm1568_vm1, %v3447_v17, %v1569_v21 }
 0x869   :  { %v1574_v54 = vsel %vm1567_vm2, %v1570_v23, %v1573_v22 }
 0x86a   :  { %v1575_v24 = vsel %vm1564_vm3, nan, %v1574_v54 }
 0x86b   :  { %v1576_v26 = vmul.f32 %v1575_v24, %v1575_v24 }
 0x86d   :  { %v1577_v28 = vadd.f32 %v1576_v26, %v4238_v47 }
 0x86f   :  { %v1578_v29 = vmul.f32 0.1, %v1577_v28 }
 0x871   :  { %v1579_v31 = vmax.f32 %v1578_v29, %v1577_v28 }
 0x872   :  { %3810 = dma.done.wait [#allocation3], 1024 }
 0x873   :  { %3811 = vsyncadd [#allocation3], 4294966272  ;;  %3194 = vmatprep.subr.bf16.mxu1 %v3828_v0  ;;  %3210 = vmatprep.mubr.msk.bf16.mxu1 %vm3829_vm0, %v3828_v0  ;;  %v3450_v32 = vld [vmem:[#allocation2 + $0x38] sm:$0xff]   ;;  %v3451_v62 = vld [vmem:[#allocation2 + $0x30] sm:$0xff]  }
 0x874   :  { %3195 = vmatpush3.bf16.msra.mxu1 %v3450_v32  ;;  %v3452_v2 = vld [vmem:[#allocation2 + $0x28] sm:$0xff]   ;;  %v3453_v34 = vld [vmem:[#allocation2 + $0x20] sm:$0xff]   ;;  %v3454_v35 = vld [vmem:[#allocation2 + $0x18] sm:$0xff]  }
 0x875   :  { %3196 = vmatprep.subr.bf16.mxu1 %v3828_v0  ;;  %v3455_v37 = vld [vmem:[#allocation2 + $0x10] sm:$0xff]   ;;  %v3456_v47 = vld [vmem:[#allocation2 + $0x8] sm:$0xff]   ;;  %v3457_v38 = vld [vmem:[#allocation2] sm:$0xff]  }
 0x878   :  { %3197 = vmatpush3.bf16.msra.mxu1 %v3451_v62 }
 0x879   :  { %3198 = vmatprep.subr.bf16.mxu1 %v3828_v0 }
 0x87a   :  { %3733 = shalt.err (!%p3944_p0)  }
 0x87b   :  { %1716 = dma.hbm_to_vmem [thread:$0]  %s4506_s11, 1024, %s3937_s18, [#allocation3]  ;;  %v1611_v40 = vpack.c.bf16 %v1579_v31, %v1579_v31  ;;  %v2865_v41 = vld [vmem:[#allocation6 + $0x6] ss:$0 sm:$0xff] }
 0x87c   :  { %3199 = vmatpush3.bf16.msra.mxu1 %v3452_v2 }
 0x87d   :  { %3200 = vmatprep.subr.bf16.mxu1 %v3828_v0 }
 0x880   :  { %3201 = vmatpush3.bf16.msra.mxu1 %v3453_v34 }
 0x881   :  { %3202 = vmatprep.subr.bf16.mxu1 %v3828_v0 }
 0x884   :  { %3203 = vmatpush3.bf16.msra.mxu1 %v3454_v35 }
 0x885   :  { %3204 = vmatprep.subr.bf16.mxu1 %v3828_v0 }
 0x888   :  { %3205 = vmatpush3.bf16.msra.mxu1 %v3455_v37 }
 0x889   :  { %3206 = vmatprep.subr.bf16.mxu1 %v3828_v0 }
 0x88c   :  { %3207 = vmatpush3.bf16.msra.mxu1 %v3456_v47 }
 0x88d   :  { %3208 = vmatprep.subr.bf16.mxu1 %v3828_v0 }
 0x890   :  { %3209 = vmatpush3.bf16.msra.mxu1 %v3457_v38 }
 0x893   :  { %3211 = vmatmul.mubr.bf16.vlgmr.msra.gmra.mxu1 %v1611_v40 }
 0x953   :  { %v1700_v13 = vpop.f32.mrf.mxu1 }
 0x954   :  { %v1701_v9 = vadd.f32 %v2865_v41, %v1700_v13 }
 0x955   :  { %v3212_v42 = vpop.f32.mrf.mxu1 }
 0x957   :  { %v1703_v43 = vpop.f32.mrf.mxu1 }
 0x959   :  { %v3213_v53 = vpop.f32.mrf.mxu1 }
 0x95a   :  { %3812 = dma.done.wait [#allocation3 + $0x1], 1024 }
 0x95b   :  { %3813 = vsyncadd [#allocation3 + $0x1], 4294966272  ;;  %3214 = vmatprep.subr.bf16.mxu0 %v3828_v0  ;;  %3230 = vmatprep.mubr.msk.bf16.mxu0 %vm3829_vm0, %v3828_v0  ;;  %v3458_v44 = vld [vmem:[#allocation2 + $0x78] sm:$0xff]   ;;  %v3459_v45 = vld [vmem:[#allocation2 + $0x70] sm:$0xff]  }
 0x95c   :  { %3215 = vmatpush3.bf16.msra.mxu0 %v3458_v44  ;;  %v3460_v56 = vld [vmem:[#allocation2 + $0x68] sm:$0xff]   ;;  %v3461_v46 = vld [vmem:[#allocation2 + $0x60] sm:$0xff]   ;;  %v3462_v48 = vld [vmem:[#allocation2 + $0x58] sm:$0xff]  }
 0x95d   :  { %3216 = vmatprep.subr.bf16.mxu0 %v3828_v0  ;;  %v3463_v19 = vld [vmem:[#allocation2 + $0x50] sm:$0xff]   ;;  %v3464_v49 = vld [vmem:[#allocation2 + $0x48] sm:$0xff]   ;;  %v3465_v4 = vld [vmem:[#allocation2 + $0x40] sm:$0xff]  }
 0x960   :  { %3217 = vmatpush3.bf16.msra.mxu0 %v3459_v45 }
 0x961   :  { %3218 = vmatprep.subr.bf16.mxu0 %v3828_v0 }
 0x962   :  { %3753 = shalt.err (!%p3960_p5)  }
 0x963   :  { %1951 = dma.hbm_to_vmem [thread:$0]  %s4507_s12, 1024, %s3954_s20, [#allocation3 + $0x1]  ;;  %v2882_v50 = vld [vmem:[#allocation6 + $0x7] ss:$0 sm:$0xff] }
 0x964   :  { %3219 = vmatpush3.bf16.msra.mxu0 %v3460_v56 }
 0x965   :  { %3220 = vmatprep.subr.bf16.mxu0 %v3828_v0 }
 0x968   :  { %3221 = vmatpush3.bf16.msra.mxu0 %v3461_v46 }
 0x969   :  { %3222 = vmatprep.subr.bf16.mxu0 %v3828_v0 }
 0x96c   :  { %3223 = vmatpush3.bf16.msra.mxu0 %v3462_v48 }
 0x96d   :  { %3224 = vmatprep.subr.bf16.mxu0 %v3828_v0 }
 0x970   :  { %3225 = vmatpush3.bf16.msra.mxu0 %v3463_v19 }
 0x971   :  { %3226 = vmatprep.subr.bf16.mxu0 %v3828_v0 }
 0x974   :  { %3227 = vmatpush3.bf16.msra.mxu0 %v3464_v49 }
 0x975   :  { %3228 = vmatprep.subr.bf16.mxu0 %v3828_v0 }
 0x978   :  { %3229 = vmatpush3.bf16.msra.mxu0 %v3465_v4 }
 0x97b   :  { %3231 = vmatmul.mubr.bf16.vlgmr.msra.gmra.mxu0 %v4186_v51 }
 0xa3b   :  { %v1819_v1 = vpop.f32.mrf.mxu0 }
 0xa3c   :  { %v1825_v52 = vadd.f32 %v1819_v1, %v1701_v9 }
 0xa3d   :  { %v3232_v55 = vpop.f32.mrf.mxu0 }
 0xa3e   :  { %v4304_v57 = vadd.f32 %v2882_v50, %v1825_v52 }
 0xa3f   :  { %v1822_v58 = vpop.f32.mrf.mxu0 }
 0xa40   :  { %v1836_v59 = vand.u32 2139095040, %v4304_v57  ;;  %v1833_v5 = vand.u32 2147483647, %v4304_v57  ;;  %vm1835_vm11 = vcmp.lt.s32.totalorder %v4304_v57, 0  ;;  %vm1925_vm1 = vweird.f32 %v4304_v57 }
 0xa41   :  { %v3233_v11 = vpop.f32.mrf.mxu0 }
 0xa42   :  { %v1837_v60 = vshrl.u32 %v1836_v59, 23  ;;  %v1840_v51 = vand.u32 8388607, %v1833_v5  ;;  %vm1834_vm12 = vcmp.le.f32.partialorder %v1833_v5, 0.7853982 }
 0xa44   :  { %v2883_v63 = vadd.s32 4294967169, %v1837_v60  ;;  %v1841_v23 = vor.u32 8388608, %v1840_v51 }
 0xa46   :  { %v1843_v3 = vadd.s32 1, %v2883_v63  ;;  %v1881_v38 = vshll.u32 %v1841_v23, 8 }
 0xa48   :  { %vm1844_vm4 = vcmp.gt.s32.totalorder %v1843_v3, 0 }
 0xa49   :  { %v1845_v6 = vsel %vm1844_vm4, %v1843_v3, 0 }
 0xa4a   :  { %v1847_v7 = vand.u32 31, %v1845_v6  ;;  %v1846_v10 = vshrl.u32 %v1845_v6, 5 }
 0xa4c   :  { %v1848_v8 = vsub.s32 32, %v1847_v7  ;;  %v1850_v12 = vshll.u32 %v3832_v25, %v1847_v7  ;;  %v1853_v14 = vshll.u32 %v3833_v27, %v1847_v7  ;;  %v1856_v16 = vshll.u32 %v3834_v30, %v1847_v7 }
 0xa4d   :  { %v1859_v18 = vshll.u32 %v3835_v33, %v1847_v7  ;;  %v1862_v21 = vshll.u32 %v3836_v36, %v1847_v7  ;;  %vm1865_vm5 = vcmp.lt.s32.totalorder %v1846_v10, 1  ;;  %vm1868_vm6 = vcmp.lt.s32.totalorder %v1846_v10, 4 }
 0xa4e   :  { %v1851_v15 = vshrl.u32 %v3833_v27, %v1848_v8  ;;  %v1854_v61 = vshrl.u32 %v3834_v30, %v1848_v8  ;;  %v1857_v17 = vshrl.u32 %v3835_v33, %v1848_v8  ;;  %v1860_v20 = vshrl.u32 %v3836_v36, %v1848_v8 }
 0xa4f   :  { %v1863_v22 = vshrl.u32 %v3837_v39, %v1848_v8  ;;  %v1849_v2 = vshrl.u32 %v3832_v25, %v1848_v8  ;;  %vm1867_vm7 = vcmp.lt.s32.totalorder %v1846_v10, 3  ;;  %vm1866_vm8 = vcmp.lt.s32.totalorder %v1846_v10, 2 }
 0xa50   :  { %v1852_v54 = vor.u32 %v1851_v15, %v1850_v12  ;;  %v1855_v24 = vor.u32 %v1854_v61, %v1853_v14  ;;  %v1858_v26 = vor.u32 %v1857_v17, %v1856_v16  ;;  %v1861_v28 = vor.u32 %v1860_v20, %v1859_v18 }
 0xa51   :  { %v1864_v29 = vor.u32 %v1863_v22, %v1862_v21 }
 0xa52   :  { %v1870_v31 = vsel %vm1868_vm6, %v1858_v26, 2102212464  ;;  %v1873_v32 = vsel %vm1865_vm5, %v1852_v54, %v1855_v24  ;;  %v1877_v62 = vsel %vm1865_vm5, %v1855_v24, %v1858_v26  ;;  %v1874_v34 = vsel %vm1868_vm6, %v1861_v28, 920167782 }
 0xa53   :  { %v1878_v35 = vsel %vm1868_vm6, %v1864_v29, 1326507024  ;;  %v1875_v37 = vsel %vm1867_vm7, %v1858_v26, %v1874_v34  ;;  %v1869_v40 = vsel %vm1865_vm5, %v1849_v2, %v1852_v54  ;;  %v1871_v41 = vsel %vm1867_vm7, %v1855_v24, %v1870_v31 }
 0xa54   :  { %v1879_v47 = vsel %vm1867_vm7, %v1861_v28, %v1878_v35  ;;  %v1876_v13 = vsel %vm1866_vm8, %v1873_v32, %v1875_v37  ;;  %v1872_v45 = vsel %vm1866_vm8, %v1869_v40, %v1871_v41 }
 0xa55   :  { %v1880_v9 = vsel %vm1866_vm8, %v1877_v62, %v1879_v47  ;;  %v4324_v53 = vmul.u32.u64.low %v1881_v38, %v1876_v13  ;;  %v4325_v44 = vmul.u32.u64.high %v1881_v38, %v1876_v13, %v4324_v53  ;;  %v1888_v46 = vmul.u32 %v1881_v38, %v1872_v45 }
 0xa56   :  { %v4321_v42 = vmul.u32.u64.low %v1881_v38, %v1880_v9  ;;  %v4322_v43 = vmul.u32.u64.high %v1881_v38, %v1880_v9, %v4321_v42 }
 0xa57   :  { %v1891_v56 = vadd.s32 1, %v4325_v44 }
 0xa58   :  { %vm1890_vm9 = vc.u32 %v4322_v43, %v4324_v53  ;;  %v1889_v60 = vadd.s32 %v4324_v53, %v4322_v43 }
 0xa59   :  { %v1892_v48 = vsel %vm1890_vm9, %v1891_v56, %v4325_v44 }
 0xa5a   :  { %v1893_v19 = vadd.s32 %v1892_v48, %v1888_v46 }
 0xa5c   :  { %v1894_v49 = vadd.s32 536870912, %v1893_v19 }
 0xa5e   :  { %v1895_v4 = vshrl.u32 %v1894_v49, 30 }
 0xa60   :  { %v1896_v50 = vshll.u32 %v1895_v4, 30  ;;  %v1919_v17 = vsub.s32 4, %v1895_v4 }
 0xa62   :  { %v1897_v1 = vsub.s32 %v1893_v19, %v1896_v50  ;;  %v1920_v21 = vsel %vm1835_vm11, %v1919_v17, %v1895_v4 }
 0xa63   :  { %v1922_v22 = vsel %vm1834_vm12, 0, %v1920_v21 }
 0xa64   :  { %v1899_v52 = vsub.s32 0, %v1897_v1  ;;  %v1926_v23 = vadd.s32 3, %v1922_v22 }
 0xa66   :  { %v2884_v55 = vmin.u32 %v1899_v52, %v1897_v1  ;;  %v1927_v54 = vand.u32 3, %v1926_v23 }
 0xa68   :  { %v1901_v58 = vclz %v2884_v55  ;;  %vm1932_vm13 = vcmp.eq.s32.totalorder %v1927_v54, 2  ;;  %vm1929_vm14 = vcmp.eq.s32.totalorder %v1927_v54, 0  ;;  %vm1928_vm15 = vcmp.lt.s32.totalorder %v1927_v54, 2 }
 0xa6a   :  { %v2885_v59 = vadd.s32 4294967294, %v1901_v58 }
 0xa6c   :  { %vm2886_vm10 = vcmp.lt.s32.totalorder %v2885_v59, 0 }
 0xa6d   :  { %v1904_v11 = vsel %vm2886_vm10, 0, %v2885_v59 }
 0xa6e   :  { %v1905_v63 = vsub.s32 32, %v1904_v11  ;;  %v1909_v3 = vsub.s32 4294967266, %v1904_v11  ;;  %v1906_v6 = vshll.u32 %v1897_v1, %v1904_v11 }
 0xa70   :  { %v1907_v7 = vshrl.u32 %v1889_v60, %v1905_v63  ;;  %v1910_v51 = vadd.s32 127, %v1909_v3 }
 0xa72   :  { %v1908_v8 = vor.u32 %v1907_v7, %v1906_v6  ;;  %v1911_v10 = vshll.u32 %v1910_v51, 23 }
 0xa74   :  { %v1912_v12 = vor.u32 4788187, %v1911_v10  ;;  %v1915_v15 = vcvt.s32.f32 %v1908_v8 }
 0xa76   :  { %v1913_v14 = vand.u32 2147483647, %v1912_v12 }
 0xa78   :  { %v1916_v61 = vmul.f32 %v1915_v15, %v1913_v14 }
 0xa7a   :  { %v1917_v16 = vxor.u32 2147483648, %v1916_v61 }
 0xa7c   :  { %v1918_v18 = vsel %vm1835_vm11, %v1917_v16, %v1916_v61 }
 0xa7d   :  { %v1921_v20 = vsel %vm1834_vm12, %v4304_v57, %v1918_v18 }
 0xa7e   :  { %3466 = vcosq.f32 %v1921_v20 }
 0xa7f   :  { %3468 = vsinq.f32 %v1921_v20 }
 0xa8b   :  { %v3467_v24 = vpop.eup %3466 }
 0xa8c   :  { %v3469_v26 = vpop.eup %3468  ;;  %v1933_v28 = vxor.u32 2147483648, %v3467_v24 }
 0xa8d   :  { %v1930_v29 = vxor.u32 2147483648, %v3469_v26 }
 0xa8e   :  { %v1934_v31 = vsel %vm1932_vm13, %v1933_v28, %v3469_v26 }
 0xa8f   :  { %v1931_v32 = vsel %vm1929_vm14, %v3467_v24, %v1930_v29 }
 0xa90   :  { %v1935_v5 = vsel %vm1928_vm15, %v1931_v32, %v1934_v31 }
 0xa91   :  { %v1936_v62 = vsel %vm1925_vm1, nan, %v1935_v5 }
 0xa92   :  { %v1937_v2 = vmul.f32 %v1936_v62, %v1936_v62 }
 0xa94   :  { %v1938_v34 = vadd.f32 %v1937_v2, %v4304_v57 }
 0xa96   :  { %v1939_v35 = vmul.f32 0.1, %v1938_v34 }
 0xa98   :  { %v1940_v37 = vmax.f32 %v1939_v35, %v1938_v34 }
 0xa99   :  { %3814 = dma.done.wait [#allocation3], 1024 }
 0xa9a   :  { %3815 = vsyncadd [#allocation3], 4294966272  ;;  %3234 = vmatprep.subr.bf16.mxu1 %v3828_v0  ;;  %3250 = vmatprep.mubr.msk.bf16.mxu1 %vm3829_vm0, %v3828_v0  ;;  %v3470_v47 = vld [vmem:[#allocation2 + $0x38] sm:$0xff]   ;;  %v3471_v38 = vld [vmem:[#allocation2 + $0x30] sm:$0xff]  }
 0xa9b   :  { %3235 = vmatpush3.bf16.msra.mxu1 %v3470_v47  ;;  %v3472_v40 = vld [vmem:[#allocation2 + $0x28] sm:$0xff]   ;;  %v3473_v41 = vld [vmem:[#allocation2 + $0x20] sm:$0xff]   ;;  %v3474_v13 = vld [vmem:[#allocation2 + $0x18] sm:$0xff]  }
 0xa9c   :  { %3236 = vmatprep.subr.bf16.mxu1 %v3828_v0  ;;  %v3475_v9 = vld [vmem:[#allocation2 + $0x10] sm:$0xff]   ;;  %v3476_v57 = vld [vmem:[#allocation2 + $0x8] sm:$0xff]   ;;  %v3477_v42 = vld [vmem:[#allocation2] sm:$0xff]  }
 0xa9f   :  { %3237 = vmatpush3.bf16.msra.mxu1 %v3471_v38 }
 0xaa0   :  { %3238 = vmatprep.subr.bf16.mxu1 %v3828_v0 }
 0xaa1   :  { %3773 = shalt.err (!%p3944_p0)  }
 0xaa2   :  { %2185 = dma.hbm_to_vmem [thread:$0]  %s4508_s13, 1024, %s3937_s18, [#allocation3]  ;;  %v4353_v43 = vpack.c.bf16 %v1940_v37, %v1940_v37  ;;  %v2887_v53 = vld [vmem:[#allocation6 + $0x8] ss:$0 sm:$0xff] }
 0xaa3   :  { %3239 = vmatpush3.bf16.msra.mxu1 %v3472_v40 }
 0xaa4   :  { %3240 = vmatprep.subr.bf16.mxu1 %v3828_v0 }
 0xaa7   :  { %3241 = vmatpush3.bf16.msra.mxu1 %v3473_v41 }
 0xaa8   :  { %3242 = vmatprep.subr.bf16.mxu1 %v3828_v0 }
 0xaab   :  { %3243 = vmatpush3.bf16.msra.mxu1 %v3474_v13 }
 0xaac   :  { %3244 = vmatprep.subr.bf16.mxu1 %v3828_v0 }
 0xaaf   :  { %3245 = vmatpush3.bf16.msra.mxu1 %v3475_v9 }
 0xab0   :  { %3246 = vmatprep.subr.bf16.mxu1 %v3828_v0 }
 0xab3   :  { %3247 = vmatpush3.bf16.msra.mxu1 %v3476_v57 }
 0xab4   :  { %3248 = vmatprep.subr.bf16.mxu1 %v3828_v0 }
 0xab7   :  { %3249 = vmatpush3.bf16.msra.mxu1 %v3477_v42 }
 0xaba   :  { %3251 = vmatmul.mubr.bf16.vlgmr.msra.gmra.mxu1 %v4353_v43 }
 0xb7a   :  { %v2061_v44 = vpop.f32.mrf.mxu1 }
 0xb7b   :  { %v4356_v45 = vadd.f32 %v2887_v53, %v2061_v44 }
 0xb7c   :  { %v3252_v56 = vpop.f32.mrf.mxu1 }
 0xb7d   :  { %v2070_v46 = vand.u32 2139095040, %v4356_v45  ;;  %v2067_v1 = vand.u32 2147483647, %v4356_v45  ;;  %vm2069_vm9 = vcmp.lt.s32.totalorder %v4356_v45, 0  ;;  %vm2159_vm14 = vweird.f32 %v4356_v45 }
 0xb7e   :  { %v2064_v48 = vpop.f32.mrf.mxu1 }
 0xb7f   :  { %v2071_v19 = vshrl.u32 %v2070_v46, 23  ;;  %v2074_v58 = vand.u32 8388607, %v2067_v1  ;;  %vm2068_vm10 = vcmp.le.f32.partialorder %v2067_v1, 0.7853982 }
 0xb80   :  { %v3253_v49 = vpop.f32.mrf.mxu1 }
 0xb81   :  { %v2896_v4 = vadd.s32 4294967169, %v2071_v19  ;;  %v2075_v15 = vor.u32 8388608, %v2074_v58 }
 0xb83   :  { %v2077_v50 = vadd.s32 1, %v2896_v4  ;;  %v2115_v31 = vshll.u32 %v2075_v15, 8 }
 0xb85   :  { %vm2078_vm2 = vcmp.gt.s32.totalorder %v2077_v50, 0 }
 0xb86   :  { %v2079_v52 = vsel %vm2078_vm2, %v2077_v50, 0 }
 0xb87   :  { %v2081_v55 = vand.u32 31, %v2079_v52  ;;  %v2080_v11 = vshrl.u32 %v2079_v52, 5 }
 0xb89   :  { %v2082_v59 = vsub.s32 32, %v2081_v55  ;;  %v2084_v60 = vshll.u32 %v3832_v25, %v2081_v55  ;;  %v2087_v63 = vshll.u32 %v3833_v27, %v2081_v55  ;;  %v2090_v7 = vshll.u32 %v3834_v30, %v2081_v55 }
 0xb8a   :  { %v2093_v8 = vshll.u32 %v3835_v33, %v2081_v55  ;;  %v2096_v12 = vshll.u32 %v3836_v36, %v2081_v55  ;;  %vm2099_vm3 = vcmp.lt.s32.totalorder %v2080_v11, 1  ;;  %vm2102_vm4 = vcmp.lt.s32.totalorder %v2080_v11, 4 }
 0xb8b   :  { %v2085_v3 = vshrl.u32 %v3833_v27, %v2082_v59  ;;  %v2088_v6 = vshrl.u32 %v3834_v30, %v2082_v59  ;;  %v2091_v51 = vshrl.u32 %v3835_v33, %v2082_v59  ;;  %v2094_v10 = vshrl.u32 %v3836_v36, %v2082_v59 }
 0xb8c   :  { %v2097_v14 = vshrl.u32 %v3837_v39, %v2082_v59  ;;  %v2083_v54 = vshrl.u32 %v3832_v25, %v2082_v59  ;;  %vm2101_vm5 = vcmp.lt.s32.totalorder %v2080_v11, 3  ;;  %vm2100_vm6 = vcmp.lt.s32.totalorder %v2080_v11, 2 }
 0xb8d   :  { %v2086_v61 = vor.u32 %v2085_v3, %v2084_v60  ;;  %v2089_v16 = vor.u32 %v2088_v6, %v2087_v63  ;;  %v2092_v17 = vor.u32 %v2091_v51, %v2090_v7  ;;  %v2095_v18 = vor.u32 %v2094_v10, %v2093_v8 }
 0xb8e   :  { %v2098_v20 = vor.u32 %v2097_v14, %v2096_v12 }
 0xb8f   :  { %v2104_v21 = vsel %vm2102_vm4, %v2092_v17, 2102212464  ;;  %v2107_v22 = vsel %vm2099_vm3, %v2086_v61, %v2089_v16  ;;  %v2111_v23 = vsel %vm2099_vm3, %v2089_v16, %v2092_v17  ;;  %v2108_v24 = vsel %vm2102_vm4, %v2095_v18, 920167782 }
 0xb90   :  { %v2112_v26 = vsel %vm2102_vm4, %v2098_v20, 1326507024  ;;  %v2109_v28 = vsel %vm2101_vm5, %v2092_v17, %v2108_v24  ;;  %v2103_v32 = vsel %vm2099_vm3, %v2083_v54, %v2086_v61  ;;  %v2105_v5 = vsel %vm2101_vm5, %v2089_v16, %v2104_v21 }
 0xb91   :  { %v2113_v29 = vsel %vm2101_vm5, %v2095_v18, %v2112_v26  ;;  %v2110_v62 = vsel %vm2100_vm6, %v2107_v22, %v2109_v28  ;;  %v2106_v38 = vsel %vm2100_vm6, %v2103_v32, %v2105_v5 }
 0xb92   :  { %v2114_v2 = vsel %vm2100_vm6, %v2111_v23, %v2113_v29  ;;  %v4376_v37 = vmul.u32.u64.low %v2115_v31, %v2110_v62  ;;  %v4377_v47 = vmul.u32.u64.high %v2115_v31, %v2110_v62, %v4376_v37  ;;  %v2122_v41 = vmul.u32 %v2115_v31, %v2106_v38 }
 0xb93   :  { %v4373_v34 = vmul.u32.u64.low %v2115_v31, %v2114_v2  ;;  %v4374_v35 = vmul.u32.u64.high %v2115_v31, %v2114_v2, %v4373_v34 }
 0xb94   :  { %v2125_v40 = vadd.s32 1, %v4377_v47 }
 0xb95   :  { %vm2124_vm7 = vc.u32 %v4374_v35, %v4376_v37  ;;  %v2123_v4 = vadd.s32 %v4376_v37, %v4374_v35 }
 0xb96   :  { %v2126_v13 = vsel %vm2124_vm7, %v2125_v40, %v4377_v47 }
 0xb97   :  { %v2127_v9 = vadd.s32 %v2126_v13, %v2122_v41 }
 0xb99   :  { %v2128_v57 = vadd.s32 536870912, %v2127_v9 }
 0xb9b   :  { %v2129_v42 = vshrl.u32 %v2128_v57, 30 }
 0xb9d   :  { %v2130_v53 = vshll.u32 %v2129_v42, 30  ;;  %v2153_v8 = vsub.s32 4, %v2129_v42 }
 0xb9f   :  { %v2131_v44 = vsub.s32 %v2127_v9, %v2130_v53  ;;  %v2154_v14 = vsel %vm2069_vm9, %v2153_v8, %v2129_v42 }
 0xba0   :  { %v2156_v15 = vsel %vm2068_vm10, 0, %v2154_v14 }
 0xba1   :  { %v2133_v56 = vsub.s32 0, %v2131_v44  ;;  %v2160_v61 = vadd.s32 3, %v2156_v15 }
 0xba3   :  { %v2897_v46 = vmin.u32 %v2133_v56, %v2131_v44  ;;  %v2161_v16 = vand.u32 3, %v2160_v61 }
 0xba5   :  { %v2135_v48 = vclz %v2897_v46  ;;  %vm2166_vm11 = vcmp.eq.s32.totalorder %v2161_v16, 2  ;;  %vm2163_vm12 = vcmp.eq.s32.totalorder %v2161_v16, 0  ;;  %vm2162_vm13 = vcmp.lt.s32.totalorder %v2161_v16, 2 }
 0xba7   :  { %v2898_v19 = vadd.s32 4294967294, %v2135_v48 }
 0xba9   :  { %vm2899_vm8 = vcmp.lt.s32.totalorder %v2898_v19, 0 }
 0xbaa   :  { %v2138_v49 = vsel %vm2899_vm8, 0, %v2898_v19 }
 0xbab   :  { %v2139_v50 = vsub.s32 32, %v2138_v49  ;;  %v2143_v52 = vsub.s32 4294967266, %v2138_v49  ;;  %v2140_v55 = vshll.u32 %v2131_v44, %v2138_v49 }
 0xbad   :  { %v2141_v58 = vshrl.u32 %v2123_v4, %v2139_v50  ;;  %v2144_v59 = vadd.s32 127, %v2143_v52 }
 0xbaf   :  { %v2142_v11 = vor.u32 %v2141_v58, %v2140_v55  ;;  %v2145_v60 = vshll.u32 %v2144_v59, 23 }
 0xbb1   :  { %v2146_v63 = vor.u32 4788187, %v2145_v60  ;;  %v2149_v6 = vcvt.s32.f32 %v2142_v11 }
 0xbb3   :  { %v2147_v3 = vand.u32 2147483647, %v2146_v63 }
 0xbb5   :  { %v2150_v7 = vmul.f32 %v2149_v6, %v2147_v3 }
 0xbb7   :  { %v2151_v51 = vxor.u32 2147483648, %v2150_v7 }
 0xbb9   :  { %v2152_v10 = vsel %vm2069_vm9, %v2151_v51, %v2150_v7 }
 0xbba   :  { %v2155_v12 = vsel %vm2068_vm10, %v4356_v45, %v2152_v10 }
 0xbbb   :  { %3478 = vcosq.f32 %v2155_v12 }
 0xbbc   :  { %3480 = vsinq.f32 %v2155_v12 }
 0xbc8   :  { %v3479_v17 = vpop.eup %3478 }
 0xbc9   :  { %v3481_v18 = vpop.eup %3480  ;;  %v2167_v20 = vxor.u32 2147483648, %v3479_v17 }
 0xbca   :  { %v2164_v21 = vxor.u32 2147483648, %v3481_v18 }
 0xbcb   :  { %v2168_v22 = vsel %vm2166_vm11, %v2167_v20, %v3481_v18 }
 0xbcc   :  { %v2165_v23 = vsel %vm2163_vm12, %v3479_v17, %v2164_v21 }
 0xbcd   :  { %v2169_v1 = vsel %vm2162_vm13, %v2165_v23, %v2168_v22 }
 0xbce   :  { %v2170_v54 = vsel %vm2159_vm14, nan, %v2169_v1 }
 0xbcf   :  { %v2171_v24 = vmul.f32 %v2170_v54, %v2170_v54 }
 0xbd1   :  { %v2172_v26 = vadd.f32 %v2171_v24, %v4356_v45 }
 0xbd3   :  { %v2173_v28 = vmul.f32 0.1, %v2172_v26 }
 0xbd5   :  { %v2174_v29 = vmax.f32 %v2173_v28, %v2172_v26 }
 0xbd6   :  { %3816 = dma.done.wait [#allocation3 + $0x1], 1024 }
 0xbd7   :  { %3817 = vsyncadd [#allocation3 + $0x1], 4294966272  ;;  %3254 = vmatprep.subr.bf16.mxu0 %v3828_v0  ;;  %3270 = vmatprep.mubr.msk.bf16.mxu0 %vm3829_vm0, %v3828_v0  ;;  %v3482_v31 = vld [vmem:[#allocation2 + $0x78] sm:$0xff]   ;;  %v3483_v32 = vld [vmem:[#allocation2 + $0x70] sm:$0xff]  }
 0xbd8   :  { %3255 = vmatpush3.bf16.msra.mxu0 %v3482_v31  ;;  %v3484_v5 = vld [vmem:[#allocation2 + $0x68] sm:$0xff]   ;;  %v3485_v62 = vld [vmem:[#allocation2 + $0x60] sm:$0xff]   ;;  %v3486_v2 = vld [vmem:[#allocation2 + $0x58] sm:$0xff]  }
 0xbd9   :  { %3256 = vmatprep.subr.bf16.mxu0 %v3828_v0  ;;  %v3487_v34 = vld [vmem:[#allocation2 + $0x50] sm:$0xff]   ;;  %v3488_v45 = vld [vmem:[#allocation2 + $0x48] sm:$0xff]   ;;  %v3489_v35 = vld [vmem:[#allocation2 + $0x40] sm:$0xff]  }
 0xbdc   :  { %3257 = vmatpush3.bf16.msra.mxu0 %v3483_v32 }
 0xbdd   :  { %3258 = vmatprep.subr.bf16.mxu0 %v3828_v0 }
 0xbde   :  { %3793 = shalt.err (!%p3960_p5)  }
 0xbdf   :  { %2419 = dma.hbm_to_vmem [thread:$0]  %s4509_s14, 1024, %s3954_s20, [#allocation3 + $0x1]  ;;  %v2206_v37 = vpack.c.bf16 %v2174_v29, %v2174_v29  ;;  %v2900_v47 = vld [vmem:[#allocation6 + $0x9] ss:$0 sm:$0xff] }
 0xbe0   :  { %3259 = vmatpush3.bf16.msra.mxu0 %v3484_v5 }
 0xbe1   :  { %3260 = vmatprep.subr.bf16.mxu0 %v3828_v0 }
 0xbe4   :  { %3261 = vmatpush3.bf16.msra.mxu0 %v3485_v62 }
 0xbe5   :  { %3262 = vmatprep.subr.bf16.mxu0 %v3828_v0 }
 0xbe8   :  { %3263 = vmatpush3.bf16.msra.mxu0 %v3486_v2 }
 0xbe9   :  { %3264 = vmatprep.subr.bf16.mxu0 %v3828_v0 }
 0xbec   :  { %3265 = vmatpush3.bf16.msra.mxu0 %v3487_v34 }
 0xbed   :  { %3266 = vmatprep.subr.bf16.mxu0 %v3828_v0 }
 0xbf0   :  { %3267 = vmatpush3.bf16.msra.mxu0 %v3488_v45 }
 0xbf1   :  { %3268 = vmatprep.subr.bf16.mxu0 %v3828_v0 }
 0xbf4   :  { %3269 = vmatpush3.bf16.msra.mxu0 %v3489_v35 }
 0xbf7   :  { %3271 = vmatmul.mubr.bf16.vlgmr.msra.gmra.mxu0 %v2206_v37 }
 0xcb7   :  { %v2295_v38 = vpop.f32.mrf.mxu0 }
 0xcb8   :  { %v4405_v40 = vadd.f32 %v2900_v47, %v2295_v38 }
 0xcb9   :  { %v3272_v41 = vpop.f32.mrf.mxu0 }
 0xcba   :  { %v2304_v13 = vand.u32 2139095040, %v4405_v40  ;;  %v2301_v56 = vand.u32 2147483647, %v4405_v40  ;;  %vm2303_vm7 = vcmp.lt.s32.totalorder %v4405_v40, 0  ;;  %vm2393_vm12 = vweird.f32 %v4405_v40 }
 0xcbb   :  { %v2298_v9 = vpop.f32.mrf.mxu0 }
 0xcbc   :  { %v2305_v57 = vshrl.u32 %v2304_v13, 23  ;;  %v2308_v19 = vand.u32 8388607, %v2301_v56  ;;  %vm2302_vm8 = vcmp.le.f32.partialorder %v2301_v56, 0.7853982 }
 0xcbd   :  { %v3273_v42 = vpop.f32.mrf.mxu0 }
 0xcbe   :  { %v2909_v53 = vadd.s32 4294967169, %v2305_v57  ;;  %v2309_v7 = vor.u32 8388608, %v2308_v19 }
 0xcc0   :  { %v2311_v44 = vadd.s32 1, %v2909_v53  ;;  %v2349_v23 = vshll.u32 %v2309_v7, 8 }
 0xcc2   :  { %vm2312_vm15 = vcmp.gt.s32.totalorder %v2311_v44, 0 }
 0xcc3   :  { %v2313_v46 = vsel %vm2312_vm15, %v2311_v44, 0 }
 0xcc4   :  { %v2315_v48 = vand.u32 31, %v2313_v46  ;;  %v2314_v4 = vshrl.u32 %v2313_v46, 5 }
 0xcc6   :  { %v2316_v49 = vsub.s32 32, %v2315_v48  ;;  %v2318_v50 = vshll.u32 %v3832_v25, %v2315_v48  ;;  %v2321_v52 = vshll.u32 %v3833_v27, %v2315_v48  ;;  %v2324_v59 = vshll.u32 %v3834_v30, %v2315_v48 }
 0xcc7   :  { %v2327_v60 = vshll.u32 %v3835_v33, %v2315_v48  ;;  %v2330_v3 = vshll.u32 %v3836_v36, %v2315_v48  ;;  %vm2333_vm1 = vcmp.lt.s32.totalorder %v2314_v4, 1  ;;  %vm2336_vm2 = vcmp.lt.s32.totalorder %v2314_v4, 4 }
 0xcc8   :  { %v2319_v55 = vshrl.u32 %v3833_v27, %v2316_v49  ;;  %v2322_v58 = vshrl.u32 %v3834_v30, %v2316_v49  ;;  %v2325_v11 = vshrl.u32 %v3835_v33, %v2316_v49  ;;  %v2328_v63 = vshrl.u32 %v3836_v36, %v2316_v49 }
 0xcc9   :  { %v2331_v6 = vshrl.u32 %v3837_v39, %v2316_v49  ;;  %v2317_v17 = vshrl.u32 %v3832_v25, %v2316_v49  ;;  %vm2335_vm3 = vcmp.lt.s32.totalorder %v2314_v4, 3  ;;  %vm2334_vm4 = vcmp.lt.s32.totalorder %v2314_v4, 2 }
 0xcca   :  { %v2320_v51 = vor.u32 %v2319_v55, %v2318_v50  ;;  %v2323_v8 = vor.u32 %v2322_v58, %v2321_v52  ;;  %v2326_v10 = vor.u32 %v2325_v11, %v2324_v59  ;;  %v2329_v12 = vor.u32 %v2328_v63, %v2327_v60 }
 0xccb   :  { %v2332_v14 = vor.u32 %v2331_v6, %v2330_v3 }
 0xccc   :  { %v2338_v15 = vsel %vm2336_vm2, %v2326_v10, 2102212464  ;;  %v2341_v61 = vsel %vm2333_vm1, %v2320_v51, %v2323_v8  ;;  %v2345_v16 = vsel %vm2333_vm1, %v2323_v8, %v2326_v10  ;;  %v2342_v18 = vsel %vm2336_vm2, %v2329_v12, 920167782 }
 0xccd   :  { %v2346_v20 = vsel %vm2336_vm2, %v2332_v14, 1326507024  ;;  %v2343_v21 = vsel %vm2335_vm3, %v2326_v10, %v2342_v18  ;;  %v2337_v1 = vsel %vm2333_vm1, %v2317_v17, %v2320_v51  ;;  %v2339_v54 = vsel %vm2335_vm3, %v2323_v8, %v2338_v15 }
 0xcce   :  { %v2347_v22 = vsel %vm2335_vm3, %v2329_v12, %v2346_v20  ;;  %v2344_v24 = vsel %vm2334_vm4, %v2341_v61, %v2343_v21  ;;  %v2340_v5 = vsel %vm2334_vm4, %v2337_v1, %v2339_v54 }
 0xccf   :  { %v2348_v26 = vsel %vm2334_vm4, %v2345_v16, %v2347_v22  ;;  %v4425_v31 = vmul.u32.u64.low %v2349_v23, %v2344_v24  ;;  %v4426_v32 = vmul.u32.u64.high %v2349_v23, %v2344_v24, %v4425_v31  ;;  %v2356_v2 = vmul.u32 %v2349_v23, %v2340_v5 }
 0xcd0   :  { %v4422_v28 = vmul.u32.u64.low %v2349_v23, %v2348_v26  ;;  %v4423_v29 = vmul.u32.u64.high %v2349_v23, %v2348_v26, %v4422_v28 }
 0xcd1   :  { %v2359_v62 = vadd.s32 1, %v4426_v32 }
 0xcd2   :  { %vm2358_vm5 = vc.u32 %v4423_v29, %v4425_v31  ;;  %v2357_v53 = vadd.s32 %v4425_v31, %v4423_v29 }
 0xcd3   :  { %v2360_v34 = vsel %vm2358_vm5, %v2359_v62, %v4426_v32 }
 0xcd4   :  { %v2361_v45 = vadd.s32 %v2360_v34, %v2356_v2 }
 0xcd6   :  { %v2362_v35 = vadd.s32 536870912, %v2361_v45 }
 0xcd8   :  { %v2363_v37 = vshrl.u32 %v2362_v35, 30 }
 0xcda   :  { %v2364_v47 = vshll.u32 %v2363_v37, 30  ;;  %v2387_v60 = vsub.s32 4, %v2363_v37 }
 0xcdc   :  { %v2365_v38 = vsub.s32 %v2361_v45, %v2364_v47  ;;  %v2388_v6 = vsel %vm2303_vm7, %v2387_v60, %v2363_v37 }
 0xcdd   :  { %v2390_v7 = vsel %vm2302_vm8, 0, %v2388_v6 }
 0xcde   :  { %v2367_v41 = vsub.s32 0, %v2365_v38  ;;  %v2394_v51 = vadd.s32 3, %v2390_v7 }
 0xce0   :  { %v2910_v13 = vmin.u32 %v2367_v41, %v2365_v38  ;;  %v2395_v8 = vand.u32 3, %v2394_v51 }
 0xce2   :  { %v2369_v9 = vclz %v2910_v13  ;;  %vm2400_vm9 = vcmp.eq.s32.totalorder %v2395_v8, 2  ;;  %vm2397_vm10 = vcmp.eq.s32.totalorder %v2395_v8, 0  ;;  %vm2396_vm11 = vcmp.lt.s32.totalorder %v2395_v8, 2 }
 0xce4   :  { %v2911_v57 = vadd.s32 4294967294, %v2369_v9 }
 0xce6   :  { %vm2912_vm6 = vcmp.lt.s32.totalorder %v2911_v57, 0 }
 0xce7   :  { %v2372_v42 = vsel %vm2912_vm6, 0, %v2911_v57 }
 0xce8   :  { %v2373_v44 = vsub.s32 32, %v2372_v42  ;;  %v2377_v46 = vsub.s32 4294967266, %v2372_v42  ;;  %v2374_v48 = vshll.u32 %v2365_v38, %v2372_v42 }
 0xcea   :  { %v2375_v19 = vshrl.u32 %v2357_v53, %v2373_v44  ;;  %v2378_v49 = vadd.s32 127, %v2377_v46 }
 0xcec   :  { %v2376_v4 = vor.u32 %v2375_v19, %v2374_v48  ;;  %v2379_v50 = vshll.u32 %v2378_v49, 23 }
 0xcee   :  { %v2380_v52 = vor.u32 4788187, %v2379_v50  ;;  %v2383_v58 = vcvt.s32.f32 %v2376_v4 }
 0xcf0   :  { %v2381_v55 = vand.u32 2147483647, %v2380_v52 }
 0xcf2   :  { %v2384_v59 = vmul.f32 %v2383_v58, %v2381_v55 }
 0xcf4   :  { %v2385_v11 = vxor.u32 2147483648, %v2384_v59 }
 0xcf6   :  { %v2386_v63 = vsel %vm2303_vm7, %v2385_v11, %v2384_v59 }
 0xcf7   :  { %v2389_v3 = vsel %vm2302_vm8, %v4405_v40, %v2386_v63 }
 0xcf8   :  { %3490 = vcosq.f32 %v2389_v3 }
 0xcf9   :  { %3492 = vsinq.f32 %v2389_v3 }
 0xd05   :  { %v3491_v10 = vpop.eup %3490 }
 0xd06   :  { %v3493_v12 = vpop.eup %3492  ;;  %v2401_v14 = vxor.u32 2147483648, %v3491_v10 }
 0xd07   :  { %v2398_v15 = vxor.u32 2147483648, %v3493_v12 }
 0xd08   :  { %v2402_v61 = vsel %vm2400_vm9, %v2401_v14, %v3493_v12 }
 0xd09   :  { %v2399_v16 = vsel %vm2397_vm10, %v3491_v10, %v2398_v15 }
 0xd0a   :  { %v2403_v56 = vsel %vm2396_vm11, %v2399_v16, %v2402_v61 }
 0xd0b   :  { %v2404_v17 = vsel %vm2393_vm12, nan, %v2403_v56 }
 0xd0c   :  { %v2405_v18 = vmul.f32 %v2404_v17, %v2404_v17 }
 0xd0e   :  { %v2406_v20 = vadd.f32 %v2405_v18, %v4405_v40 }
 0xd10   :  { %v2407_v21 = vmul.f32 0.1, %v2406_v20 }
 0xd12   :  { %v2408_v22 = vmax.f32 %v2407_v21, %v2406_v20 }
 0xd13   :  { %3818 = dma.done.wait [#allocation3], 1024 }
 0xd14   :  { %3819 = vsyncadd [#allocation3], 4294966272  ;;  %3274 = vmatprep.subr.bf16.mxu1 %v3828_v0  ;;  %3290 = vmatprep.mubr.msk.bf16.mxu1 %vm3829_vm0, %v3828_v0  ;;  %v3494_v23 = vld [vmem:[#allocation2 + $0x38] sm:$0xff]   ;;  %v3495_v1 = vld [vmem:[#allocation2 + $0x30] sm:$0xff]   ;;  %v2440_v31 = vpack.c.bf16 %v2408_v22, %v2408_v22 }
 0xd15   :  { %3275 = vmatpush3.bf16.msra.mxu1 %v3494_v23  ;;  %v3496_v54 = vld [vmem:[#allocation2 + $0x28] sm:$0xff]   ;;  %v3497_v40 = vld [vmem:[#allocation2 + $0x20] sm:$0xff]   ;;  %v3498_v24 = vld [vmem:[#allocation2 + $0x18] sm:$0xff]  }
 0xd16   :  { %3276 = vmatprep.subr.bf16.mxu1 %v3828_v0  ;;  %v3499_v26 = vld [vmem:[#allocation2 + $0x10] sm:$0xff]   ;;  %v3500_v28 = vld [vmem:[#allocation2 + $0x8] sm:$0xff]   ;;  %v3501_v29 = vld [vmem:[#allocation2] sm:$0xff]  }
 0xd17   :  { %v2913_v32 = vld [vmem:[#allocation6 + $0xa] ss:$0 sm:$0xff] }
 0xd19   :  { %3277 = vmatpush3.bf16.msra.mxu1 %v3495_v1 }
 0xd1a   :  { %3278 = vmatprep.subr.bf16.mxu1 %v3828_v0 }
 0xd1d   :  { %3279 = vmatpush3.bf16.msra.mxu1 %v3496_v54 }
 0xd1e   :  { %3280 = vmatprep.subr.bf16.mxu1 %v3828_v0 }
 0xd21   :  { %3281 = vmatpush3.bf16.msra.mxu1 %v3497_v40 }
 0xd22   :  { %3282 = vmatprep.subr.bf16.mxu1 %v3828_v0 }
 0xd25   :  { %3283 = vmatpush3.bf16.msra.mxu1 %v3498_v24 }
 0xd26   :  { %3284 = vmatprep.subr.bf16.mxu1 %v3828_v0 }
 0xd29   :  { %3285 = vmatpush3.bf16.msra.mxu1 %v3499_v26 }
 0xd2a   :  { %3286 = vmatprep.subr.bf16.mxu1 %v3828_v0 }
 0xd2d   :  { %3287 = vmatpush3.bf16.msra.mxu1 %v3500_v28 }
 0xd2e   :  { %3288 = vmatprep.subr.bf16.mxu1 %v3828_v0 }
 0xd31   :  { %3289 = vmatpush3.bf16.msra.mxu1 %v3501_v29 }
 0xd34   :  { %3291 = vmatmul.mubr.bf16.vlgmr.msra.gmra.mxu1 %v2440_v31 }
 0xdf4   :  { %v2529_v5 = vpop.f32.mrf.mxu1 }
 0xdf5   :  { %v2530_v62 = vadd.f32 %v2913_v32, %v2529_v5 }
 0xdf6   :  { %v3292_v2 = vpop.f32.mrf.mxu1 }
 0xdf8   :  { %v2532_v34 = vpop.f32.mrf.mxu1 }
 0xdfa   :  { %v3293_v45 = vpop.f32.mrf.mxu1 }
 0xdfb   :  { %3820 = dma.done.wait [#allocation3 + $0x1], 1024 }
 0xdfc   :  { %3821 = vsyncadd [#allocation3 + $0x1], 4294966272  ;;  %3294 = vmatprep.subr.bf16.mxu0 %v3828_v0  ;;  %3310 = vmatprep.mubr.msk.bf16.mxu0 %vm3829_vm0, %v3828_v0  ;;  %v3502_v35 = vld [vmem:[#allocation2 + $0x78] sm:$0xff]   ;;  %v3503_v37 = vld [vmem:[#allocation2 + $0x70] sm:$0xff]  }
 0xdfd   :  { %3295 = vmatpush3.bf16.msra.mxu0 %v3502_v35  ;;  %v3504_v47 = vld [vmem:[#allocation2 + $0x68] sm:$0xff]   ;;  %v3505_v38 = vld [vmem:[#allocation2 + $0x60] sm:$0xff]   ;;  %v3506_v41 = vld [vmem:[#allocation2 + $0x58] sm:$0xff]  }
 0xdfe   :  { %3296 = vmatprep.subr.bf16.mxu0 %v3828_v0  ;;  %v3507_v13 = vld [vmem:[#allocation2 + $0x50] sm:$0xff]   ;;  %v3508_v9 = vld [vmem:[#allocation2 + $0x48] sm:$0xff]   ;;  %v3509_v57 = vld [vmem:[#allocation2 + $0x40] sm:$0xff]  }
 0xdff   :  { %v2930_v42 = vld [vmem:[#allocation6 + $0xb] ss:$0 sm:$0xff] }
 0xe01   :  { %3297 = vmatpush3.bf16.msra.mxu0 %v3503_v37 }
 0xe02   :  { %3298 = vmatprep.subr.bf16.mxu0 %v3828_v0 }
 0xe05   :  { %3299 = vmatpush3.bf16.msra.mxu0 %v3504_v47 }
 0xe06   :  { %3300 = vmatprep.subr.bf16.mxu0 %v3828_v0 }
 0xe09   :  { %3301 = vmatpush3.bf16.msra.mxu0 %v3505_v38 }
 0xe0a   :  { %3302 = vmatprep.subr.bf16.mxu0 %v3828_v0 }
 0xe0d   :  { %3303 = vmatpush3.bf16.msra.mxu0 %v3506_v41 }
 0xe0e   :  { %3304 = vmatprep.subr.bf16.mxu0 %v3828_v0 }
 0xe11   :  { %3305 = vmatpush3.bf16.msra.mxu0 %v3507_v13 }
 0xe12   :  { %3306 = vmatprep.subr.bf16.mxu0 %v3828_v0 }
 0xe15   :  { %3307 = vmatpush3.bf16.msra.mxu0 %v3508_v9 }
 0xe16   :  { %3308 = vmatprep.subr.bf16.mxu0 %v3828_v0 }
 0xe19   :  { %3309 = vmatpush3.bf16.msra.mxu0 %v3509_v57 }
 0xe1c   :  { %3311 = vmatmul.mubr.bf16.vlgmr.msra.gmra.mxu0 %v4353_v43 }
 0xedc   :  { %v2637_v53 = vpop.f32.mrf.mxu0 }
 0xedd   :  { %v2643_v44 = vadd.f32 %v2637_v53, %v2530_v62 }
 0xede   :  { %v3312_v46 = vpop.f32.mrf.mxu0 }
 0xedf   :  { %v4459_v48 = vadd.f32 %v2930_v42, %v2643_v44 }
 0xee0   :  { %v2640_v19 = vpop.f32.mrf.mxu0 }
 0xee1   :  { %v2654_v49 = vand.u32 2139095040, %v4459_v48  ;;  %v2651_v58 = vand.u32 2147483647, %v4459_v48  ;;  %vm2653_vm4 = vcmp.lt.s32.totalorder %v4459_v48, 0  ;;  %vm2743_vm9 = vweird.f32 %v4459_v48 }
 0xee2   :  { %v3313_v4 = vpop.f32.mrf.mxu0 }
 0xee3   :  { %v2655_v50 = vshrl.u32 %v2654_v49, 23  ;;  %v2658_v43 = vand.u32 8388607, %v2651_v58  ;;  %vm2652_vm5 = vcmp.le.f32.partialorder %v2651_v58, 0.7853982 }
 0xee5   :  { %v2931_v52 = vadd.s32 4294967169, %v2655_v50  ;;  %v2659_v61 = vor.u32 8388608, %v2658_v43 }
 0xee7   :  { %v2661_v55 = vadd.s32 1, %v2931_v52 }
 0xee9   :  { %vm2662_vm0 = vcmp.gt.s32.totalorder %v2661_v55, 0 }
 0xeea   :  { %v2663_v0 = vsel %vm2662_vm0, %v2661_v55, 0 }
 0xeeb   :  { %v2665_v59 = vand.u32 31, %v2663_v0  ;;  %v2664_v60 = vshrl.u32 %v2663_v0, 5 }
 0xeed   :  { %v2666_v11 = vsub.s32 32, %v2665_v59  ;;  %v2668_v63 = vshll.u32 %v3832_v25, %v2665_v59  ;;  %v2671_v3 = vshll.u32 %v3833_v27, %v2665_v59  ;;  %v2674_v51 = vshll.u32 %v3834_v30, %v2665_v59 }
 0xeee   :  { %v2677_v10 = vshll.u32 %v3835_v33, %v2665_v59  ;;  %v2680_v14 = vshll.u32 %v3836_v36, %v2665_v59  ;;  %vm2683_vm13 = vcmp.lt.s32.totalorder %v2664_v60, 1  ;;  %vm2686_vm14 = vcmp.lt.s32.totalorder %v2664_v60, 4 }
 0xeef   :  { %v2669_v6 = vshrl.u32 %v3833_v27, %v2666_v11  ;;  %v2672_v7 = vshrl.u32 %v3834_v30, %v2666_v11  ;;  %v2675_v8 = vshrl.u32 %v3835_v33, %v2666_v11  ;;  %v2678_v12 = vshrl.u32 %v3836_v36, %v2666_v11 }
 0xef0   :  { %v2681_v15 = vshrl.u32 %v3837_v39, %v2666_v11  ;;  %v2667_v22 = vshrl.u32 %v3832_v25, %v2666_v11  ;;  %vm2685_vm15 = vcmp.lt.s32.totalorder %v2664_v60, 3  ;;  %vm2684_vm1 = vcmp.lt.s32.totalorder %v2664_v60, 2 }
 0xef1   :  { %v2670_v16 = vor.u32 %v2669_v6, %v2668_v63  ;;  %v2673_v56 = vor.u32 %v2672_v7, %v2671_v3  ;;  %v2676_v17 = vor.u32 %v2675_v8, %v2674_v51  ;;  %v2679_v18 = vor.u32 %v2678_v12, %v2677_v10 }
 0xef2   :  { %v2682_v27 = vor.u32 %v2681_v15, %v2680_v14  ;;  %v2699_v39 = vshll.u32 %v2659_v61, 8 }
 0xef3   :  { %v2688_v20 = vsel %vm2686_vm14, %v2676_v17, 2102212464  ;;  %v2691_v30 = vsel %vm2683_vm13, %v2670_v16, %v2673_v56  ;;  %v2695_v21 = vsel %vm2683_vm13, %v2673_v56, %v2676_v17  ;;  %v2692_v33 = vsel %vm2686_vm14, %v2679_v18, 920167782 }
 0xef4   :  { %v2696_v23 = vsel %vm2686_vm14, %v2682_v27, 1326507024  ;;  %v2693_v36 = vsel %vm2685_vm15, %v2676_v17, %v2692_v33  ;;  %v2687_v54 = vsel %vm2683_vm13, %v2667_v22, %v2670_v16  ;;  %v2689_v40 = vsel %vm2685_vm15, %v2673_v56, %v2688_v20 }
 0xef5   :  { %v2697_v1 = vsel %vm2685_vm15, %v2679_v18, %v2696_v23  ;;  %v2694_v24 = vsel %vm2684_vm1, %v2691_v30, %v2693_v36  ;;  %v2690_v5 = vsel %vm2684_vm1, %v2687_v54, %v2689_v40 }
 0xef6   :  { %v2698_v26 = vsel %vm2684_vm1, %v2695_v21, %v2697_v1  ;;  %v4479_v31 = vmul.u32.u64.low %v2699_v39, %v2694_v24  ;;  %v4480_v32 = vmul.u32.u64.high %v2699_v39, %v2694_v24, %v4479_v31  ;;  %v2706_v62 = vmul.u32 %v2699_v39, %v2690_v5 }
 0xef7   :  { %v4476_v28 = vmul.u32.u64.low %v2699_v39, %v2698_v26  ;;  %v4477_v29 = vmul.u32.u64.high %v2699_v39, %v2698_v26, %v4476_v28 }
 0xef8   :  { %v2709_v25 = vadd.s32 1, %v4480_v32 }
 0xef9   :  { %vm2708_vm2 = vc.u32 %v4477_v29, %v4479_v31  ;;  %v2707_v42 = vadd.s32 %v4479_v31, %v4477_v29 }
 0xefa   :  { %v2710_v2 = vsel %vm2708_vm2, %v2709_v25, %v4480_v32 }
 0xefb   :  { %v2711_v34 = vadd.s32 %v2710_v2, %v2706_v62 }
 0xefd   :  { %v2712_v45 = vadd.s32 536870912, %v2711_v34 }
 0xeff   :  { %v2713_v35 = vshrl.u32 %v2712_v45, 30 }
 0xf01   :  { %v2714_v37 = vshll.u32 %v2713_v35, 30  ;;  %v2737_v11 = vsub.s32 4, %v2713_v35 }
 0xf03   :  { %v2715_v47 = vsub.s32 %v2711_v34, %v2714_v37  ;;  %v2738_v3 = vsel %vm2653_vm4, %v2737_v11, %v2713_v35 }
 0xf04   :  { %v2740_v6 = vsel %vm2652_vm5, 0, %v2738_v3 }
 0xf05   :  { %v2717_v38 = vsub.s32 0, %v2715_v47  ;;  %v2744_v7 = vadd.s32 3, %v2740_v6 }
 0xf07   :  { %v2932_v41 = vmin.u32 %v2717_v38, %v2715_v47  ;;  %v2745_v51 = vand.u32 3, %v2744_v7 }
 0xf09   :  { %v2719_v13 = vclz %v2932_v41  ;;  %vm2750_vm6 = vcmp.eq.s32.totalorder %v2745_v51, 2  ;;  %vm2747_vm7 = vcmp.eq.s32.totalorder %v2745_v51, 0  ;;  %vm2746_vm8 = vcmp.lt.s32.totalorder %v2745_v51, 2 }
 0xf0b   :  { %v2933_v9 = vadd.s32 4294967294, %v2719_v13 }
 0xf0d   :  { %vm2934_vm3 = vcmp.lt.s32.totalorder %v2933_v9, 0 }
 0xf0e   :  { %v2722_v57 = vsel %vm2934_vm3, 0, %v2933_v9 }
 0xf0f   :  { %v2723_v53 = vsub.s32 32, %v2722_v57  ;;  %v2727_v44 = vsub.s32 4294967266, %v2722_v57  ;;  %v2724_v46 = vshll.u32 %v2715_v47, %v2722_v57 }
 0xf11   :  { %v2725_v19 = vshrl.u32 %v2707_v42, %v2723_v53  ;;  %v2728_v49 = vadd.s32 127, %v2727_v44 }
 0xf13   :  { %v2726_v4 = vor.u32 %v2725_v19, %v2724_v46  ;;  %v2729_v50 = vshll.u32 %v2728_v49, 23 }
 0xf15   :  { %v2730_v52 = vor.u32 4788187, %v2729_v50  ;;  %v2733_v0 = vcvt.s32.f32 %v2726_v4 }
 0xf17   :  { %v2731_v55 = vand.u32 2147483647, %v2730_v52 }
 0xf19   :  { %v2734_v59 = vmul.f32 %v2733_v0, %v2731_v55 }
 0xf1b   :  { %v2735_v43 = vxor.u32 2147483648, %v2734_v59 }
 0xf1d   :  { %v2736_v60 = vsel %vm2653_vm4, %v2735_v43, %v2734_v59 }
 0xf1e   :  { %v2739_v63 = vsel %vm2652_vm5, %v4459_v48, %v2736_v60 }
 0xf1f   :  { %3510 = vcosq.f32 %v2739_v63 }
 0xf20   :  { %3512 = vsinq.f32 %v2739_v63 }
 0xf2c   :  { %v3511_v8 = vpop.eup %3510 }
 0xf2d   :  { %v3513_v10 = vpop.eup %3512  ;;  %v2751_v12 = vxor.u32 2147483648, %v3511_v8 }
 0xf2e   :  { %v2748_v14 = vxor.u32 2147483648, %v3513_v10 }
 0xf2f   :  { %v2752_v15 = vsel %vm2750_vm6, %v2751_v12, %v3513_v10 }
 0xf30   :  { %v2749_v61 = vsel %vm2747_vm7, %v3511_v8, %v2748_v14 }
 0xf31   :  { %v2753_v58 = vsel %vm2746_vm8, %v2749_v61, %v2752_v15 }
 0xf32   :  { %v2754_v16 = vsel %vm2743_vm9, nan, %v2753_v58 }
 0xf33   :  { %v2755_v56 = vmul.f32 %v2754_v16, %v2754_v16 }
 0xf35   :  { %v2756_v17 = vadd.f32 %v2755_v56, %v4459_v48 }
 0xf37   :  { %v2757_v18 = vmul.f32 0.1, %v2756_v17 }
 0xf39   :  { %v2758_v27 = vmax.f32 %v2757_v18, %v2756_v17 }
 0xf3b   :  { %2759 = vst [vmem:[%s4510_s15] sm:$0xff] %v2758_v27 }
 0xf3c   :  { %2764 = vsyncpa [#allocation5], 1 }
 0xf3d   :  { %2765 = vsyncpa [#allocation7], 1 }
 0xf3e   :  { %2766 = vsyncmov [#allocation3] }
 0xf41   :  { %s2767_s22 = vpop.sfrf %2766 }
 0xf42   :  { %p2935_p6 = scmp.ne.s32.totalorder %s2767_s22, 0 }
 0xf44   :  { %2771 = shalt.err (%p2935_p6)  }
 0xf45   :  { %2773 = vsyncmov [#allocation3 + $0x1] }
 0xf48   :  { %s2774_s0 = vpop.sfrf %2773 }
 0xf49   :  { %p2936_p7 = scmp.ne.s32.totalorder %s2774_s0, 0 }
 0xf4b   :  { %2778 = shalt.err (%p2936_p7)  }

</bundles_post_ra>
